<compile_context>
chip_gen: v6e
topology: v6e:2x2x1
jax: 0.10.0
libtpu: 0.0.40
codegen_flags: <defaults>
</compile_context>

<pallas_src>
import math

import numpy as np
import jax
import jax.numpy as jnp
from jax.experimental import pallas as pl
from jax.experimental.pallas import tpu as pltpu

BN_EPS = 1e-5  # torch BatchNorm2d default


# ----------------------------------------------------------------------------
# Kernel (one batch element per grid step)
# ----------------------------------------------------------------------------
def stgcn_kernel(x_ref, a_ref,
                 w1_ref, b1_ref, th1_ref, w2_ref, b2_ref, bn1s_ref, bn1b_ref,
                 w3_ref, b3_ref, th2_ref, w4_ref, b4_ref, bn2s_ref, bn2b_ref,
                 w5_ref, b5_ref, wf_ref, bf_ref,
                 out_ref):
    """All activations are (N, T_cur * C): nodes on sublanes, time packed
    along lanes (lane index = t * C + c)."""

    def timeblock(h_bf16, w_ref, b_ref):
        # Whole-sequence temporal conv: one matmul against a banded weight
        # whose lanes are [conv1 | conv2 | conv3], each group T_out*64 wide
        # (a multiple of 128 -> vreg-aligned slices, lane-dense stores).
        acc = jnp.dot(h_bf16, w_ref[...],
                      preferred_element_type=jnp.float32) + b_ref[...]
        w = acc.shape[-1] // 3
        gated = acc[:, :w] + jax.nn.sigmoid(acc[:, w:2 * w]) + acc[:, 2 * w:]
        return jnp.maximum(gated, 0.0)                      # f32, (N, T_out*64)

    def graph_conv(h_f32, th_ref):
        # Theta applied per timestep via a block-diagonal weight, then the
        # adjacency mix as ONE lane-dense (N,N) @ (N, T*16) matmul.
        z = jnp.dot(h_f32.astype(jnp.bfloat16), th_ref[...],
                    preferred_element_type=jnp.float32)     # (N, T*16)
        g = jnp.dot(a_ref[...], z.astype(jnp.bfloat16),
                    preferred_element_type=jnp.float32)
        return jnp.maximum(g, 0.0)

    x = x_ref[0]                                            # (N, T*F) bf16

    # ---- STGCN block 1 ----
    h = timeblock(x, w1_ref, b1_ref)                        # (N, (T-2)*64)
    h = graph_conv(h, th1_ref)                              # (N, (T-2)*16)
    h = timeblock(h.astype(jnp.bfloat16), w2_ref, b2_ref)   # (N, (T-4)*64)
    h = h * bn1s_ref[...] + bn1b_ref[...]                   # eval-mode BN (per node row)

    # ---- STGCN block 2 ----
    h = timeblock(h.astype(jnp.bfloat16), w3_ref, b3_ref)   # (N, (T-6)*64)
    h = graph_conv(h, th2_ref)                              # (N, (T-6)*16)
    h = timeblock(h.astype(jnp.bfloat16), w4_ref, b4_ref)   # (N, (T-8)*64)
    h = h * bn2s_ref[...] + bn2b_ref[...]

    # ---- last TimeBlock + fully-connected head (single matmul) ----
    h = timeblock(h.astype(jnp.bfloat16), w5_ref, b5_ref)   # (N, (T-10)*64)
    out = jnp.dot(h.astype(jnp.bfloat16), wf_ref[...],
                  preferred_element_type=jnp.float32) + bf_ref[...]
    out_ref[0] = out                                        # (N, T_out) f32


# ----------------------------------------------------------------------------
# Host-side wrapper
# ----------------------------------------------------------------------------
def stgcn_forward(a_bf16, x_lp, kp):
    """a_bf16: (N, N) bf16 adjacency.  x_lp: (B, N, T*F) bf16 lane-packed input.
    kp: packed kernel params (pack_params).  Returns (B, N, T_out) float32."""
    B, N, TF = x_lp.shape
    T_out = kp['bf'].shape[-1]

    weights = [kp['w1'], kp['b1'], kp['th1'], kp['w2'], kp['b2'],
               kp['bn1s'], kp['bn1b'],
               kp['w3'], kp['b3'], kp['th2'], kp['w4'], kp['b4'],
               kp['bn2s'], kp['bn2b'],
               kp['w5'], kp['b5'], kp['wf'], kp['bf']]

    def const_spec(a):  # grid-invariant: fetched once, reused every grid step
        return pl.BlockSpec(a.shape, lambda b, _nd=a.ndim: (0,) * _nd)

    in_specs = ([pl.BlockSpec((1, N, TF), lambda b: (b, 0, 0)),
                 const_spec(a_bf16)]
                + [const_spec(w) for w in weights])
    out_specs = pl.BlockSpec((1, N, T_out), lambda b: (b, 0, 0))

    # Advisory cost estimate so XLA can schedule surrounding ops.
    def nbytes(a):
        return int(np.prod(a.shape)) * a.dtype.itemsize
    tb_ws = [kp['w1'], kp['w2'], kp['w3'], kp['w4'], kp['w5']]
    mm_ws = tb_ws + [kp['th1'], kp['th2'], kp['wf']]
    flops = int(2 * B * N * (sum(w.shape[0] * w.shape[1] for w in mm_ws)
                             + N * (kp['th1'].shape[1] + kp['th2'].shape[1])))
    transcendentals = int(B * N * sum(w.shape[1] // 3 for w in tb_ws))
    bytes_accessed = int(nbytes(x_lp) + nbytes(a_bf16)
                         + sum(nbytes(w) for w in weights) + B * N * T_out * 4)

    out = pl.pallas_call(
        stgcn_kernel,
        out_shape=jax.ShapeDtypeStruct((B, N, T_out), jnp.float32),
        grid=(B,),
        in_specs=in_specs,
        out_specs=out_specs,
        compiler_params=pltpu.CompilerParams(
            dimension_semantics=("parallel",),
            vmem_limit_bytes=32 * 1024 * 1024),
        cost_estimate=pl.CostEstimate(flops=flops,
                                      transcendentals=transcendentals,
                                      bytes_accessed=bytes_accessed),
    )(x_lp, a_bf16, *weights)
    return out


# ----------------------------------------------------------------------------
# Parameter init (torch-like) and host-side packing for the kernel layout
# ----------------------------------------------------------------------------
def _init_timeblock(key, cin, cout=64, ksize=3):
    bound = 1.0 / math.sqrt(cin * ksize)        # torch Conv2d default U(-k, k)
    keys = jax.random.split(key, 6)
    ws = [jax.random.uniform(keys[i], (cout, cin, ksize), jnp.float32, -bound, bound)
          for i in range(3)]
    bs = [jax.random.uniform(keys[3 + i], (cout,), jnp.float32, -bound, bound)
          for i in range(3)]
    return ws, bs


def _bn_init(n):
    return dict(gamma=jnp.ones((n,), jnp.float32), beta=jnp.zeros((n,), jnp.float32),
                mean=jnp.zeros((n,), jnp.float32), var=jnp.ones((n,), jnp.float32))


def init_raw_params(key, num_nodes, num_features, t_in, t_out):
    ks = jax.random.split(key, 9)
    stdv = 1.0 / math.sqrt(16)                  # Theta1 reset_parameters
    raw = {}
    raw['b1_tb1'] = _init_timeblock(ks[0], num_features)
    raw['b1_theta'] = jax.random.uniform(ks[1], (64, 16), jnp.float32, -stdv, stdv)
    raw['b1_tb2'] = _init_timeblock(ks[2], 16)
    raw['b1_bn'] = _bn_init(num_nodes)
    raw['b2_tb1'] = _init_timeblock(ks[3], 64)
    raw['b2_theta'] = jax.random.uniform(ks[4], (64, 16), jnp.float32, -stdv, stdv)
    raw['b2_tb2'] = _init_timeblock(ks[5], 16)
    raw['b2_bn'] = _bn_init(num_nodes)
    raw['lt_tb'] = _init_timeblock(ks[6], 64)
    fin = (t_in - 10) * 64
    kf = 1.0 / math.sqrt(fin)
    raw['fc_w'] = jax.random.uniform(ks[7], (t_out, fin), jnp.float32, -kf, kf)
    raw['fc_b'] = jax.random.uniform(ks[8], (t_out,), jnp.float32, -kf, kf)
    return raw


def _banded_timeblock(ws, bs, t_in):
    """Fold 3 x Conv2d(cin, 64, (1,3)) over the whole sequence into one banded
    matmul weight for the lane-packed layout: (t_in*cin, 3*t_out*64),
    output lanes grouped as [conv1 | conv2 | conv3]."""
    cout, cin, k = ws[0].shape
    t_out = t_in - k + 1
    W = np.zeros((t_in * cin, 3 * t_out * cout), np.float32)
    for c, w in enumerate(ws):
        w = np.asarray(w)
        for t in range(t_out):
            col0 = c * t_out * cout + t * cout
            for kk in range(k):
                row0 = (t + kk) * cin
                W[row0:row0 + cin, col0:col0 + cout] = w[:, :, kk].T
    bias = np.concatenate([np.tile(np.asarray(b), t_out) for b in bs])[None, :]
    return jnp.asarray(W, jnp.bfloat16), jnp.asarray(bias, jnp.float32)


def _blockdiag_theta(theta, reps):
    theta = np.asarray(theta)
    ci, co = theta.shape
    W = np.zeros((reps * ci, reps * co), np.float32)
    for t in range(reps):
        W[t * ci:(t + 1) * ci, t * co:(t + 1) * co] = theta
    return jnp.asarray(W, jnp.bfloat16)


def _bn_rowvecs(bn):
    g, b = np.asarray(bn['gamma']), np.asarray(bn['beta'])
    m, v = np.asarray(bn['mean']), np.asarray(bn['var'])
    scale = g / np.sqrt(v + BN_EPS)
    shift = b - m * scale
    return (jnp.asarray(scale[:, None], jnp.float32),
            jnp.asarray(shift[:, None], jnp.float32))


def pack_params(raw, t_in):
    kp = {}
    kp['w1'], kp['b1'] = _banded_timeblock(*raw['b1_tb1'], t_in)
    kp['th1'] = _blockdiag_theta(raw['b1_theta'], t_in - 2)
    kp['w2'], kp['b2'] = _banded_timeblock(*raw['b1_tb2'], t_in - 2)
    kp['bn1s'], kp['bn1b'] = _bn_rowvecs(raw['b1_bn'])
    kp['w3'], kp['b3'] = _banded_timeblock(*raw['b2_tb1'], t_in - 4)
    kp['th2'] = _blockdiag_theta(raw['b2_theta'], t_in - 6)
    kp['w4'], kp['b4'] = _banded_timeblock(*raw['b2_tb2'], t_in - 6)
    kp['bn2s'], kp['bn2b'] = _bn_rowvecs(raw['b2_bn'])
    kp['w5'], kp['b5'] = _banded_timeblock(*raw['lt_tb'], t_in - 8)
    kp['wf'] = jnp.asarray(np.asarray(raw['fc_w']).T, jnp.bfloat16)
    kp['bf'] = jnp.asarray(np.asarray(raw['fc_b'])[None, :], jnp.float32)
    return kp


# ----------------------------------------------------------------------------
# Pure-JAX float32 reference (mirrors the torch module, BN in eval mode)
# ----------------------------------------------------------------------------
def _timeblock_ref(X, ws, bs):
    t_out = X.shape[2] - 2

    def conv(w, b):
        out = sum(jnp.einsum('bntc,oc->bnto', X[:, :, k:k + t_out, :], w[:, :, k])
                  for k in range(3))
        return out + b

    c1, c2, c3 = conv(ws[0], bs[0]), conv(ws[1], bs[1]), conv(ws[2], bs[2])
    return jnp.maximum(c1 + jax.nn.sigmoid(c2) + c3, 0.0)


def stgcn_reference(A_hat, X, raw):
    def bn_eval(x, bn):
        scale = bn['gamma'] / jnp.sqrt(bn['var'] + BN_EPS)
        shift = bn['beta'] - bn['mean'] * scale
        return x * scale[None, :, None, None] + shift[None, :, None, None]

    def block(x, tb1, theta, tb2, bn):
        t = _timeblock_ref(x, *tb1)
        lfs = jnp.einsum('ij,bjtc->bitc', A_hat, t)
        t2 = jnp.maximum(jnp.einsum('bitc,cs->bits', lfs, theta), 0.0)
        return bn_eval(_timeblock_ref(t2, *tb2), bn)

    o1 = block(X, raw['b1_tb1'], raw['b1_theta'], raw['b1_tb2'], raw['b1_bn'])
    o2 = block(o1, raw['b2_tb1'], raw['b2_theta'], raw['b2_tb2'], raw['b2_bn'])
    o3 = _timeblock_ref(o2, *raw['lt_tb'])
    flat = o3.reshape(o3.shape[0], o3.shape[1], -1)
    return flat @ raw['fc_w'].T + raw['fc_b']


# ----------------------------------------------------------------------------
if __name__ == "__main__":
    key = jax.random.PRNGKey(0)
    B, N, T, F = 2, 16, 12, 4            # batch, num_nodes, timesteps_in, features
    T_out = 3                            # num_timesteps_output

    kx, ka, kp_key = jax.random.split(key, 3)
    X = jax.random.normal(kx, (B, N, T, F), jnp.float32)

    # Symmetric, degree-normalized adjacency A_hat.
    A = jax.random.uniform(ka, (N, N), jnp.float32)
    A = 0.5 * (A + A.T) + jnp.eye(N, dtype=jnp.float32)
    d = 1.0 / jnp.sqrt(jnp.sum(A, axis=1))
    A_hat = d[:, None] * A * d[None, :]

    raw = init_raw_params(kp_key, N, F, T, T_out)
    packed = pack_params(raw, T)

    # Lane-packed input (B, N, T*F); bf16 MXU operands.
    x_lp = X.reshape(B, N, T * F).astype(jnp.bfloat16)
    a_bf = A_hat.astype(jnp.bfloat16)

    fwd = jax.jit(stgcn_forward)
    out = jax.block_until_ready(fwd(a_bf, x_lp, packed))

    assert out.shape == (B, N, T_out)
    assert bool(jnp.all(jnp.isfinite(out)))

    # Validate against the float32 reference (loose tolerance for bf16 MXU ops).
    ref = stgcn_reference(A_hat, X, raw)
    rel_err = float(jnp.max(jnp.abs(out - ref)) / (jnp.max(jnp.abs(ref)) + 1e-6))
    assert rel_err < 0.1, f"kernel deviates from reference: rel_err={rel_err:.4f}"
    print("KERNEL_OK")
</pallas_src>

<mosaic_0001>
module attributes {stable_mosaic.version = 11 : i64} {
  func.func @stgcn_kernel(%arg0: i32, %arg1: memref<1x16x48xbf16, #tpu.memory_space<vmem>>, %arg2: memref<16x16xbf16, #tpu.memory_space<vmem>>, %arg3: memref<48x1920xbf16, #tpu.memory_space<vmem>>, %arg4: memref<1x1920xf32, #tpu.memory_space<vmem>>, %arg5: memref<640x160xbf16, #tpu.memory_space<vmem>>, %arg6: memref<160x1536xbf16, #tpu.memory_space<vmem>>, %arg7: memref<1x1536xf32, #tpu.memory_space<vmem>>, %arg8: memref<16x1xf32, #tpu.memory_space<vmem>>, %arg9: memref<16x1xf32, #tpu.memory_space<vmem>>, %arg10: memref<512x1152xbf16, #tpu.memory_space<vmem>>, %arg11: memref<1x1152xf32, #tpu.memory_space<vmem>>, %arg12: memref<384x96xbf16, #tpu.memory_space<vmem>>, %arg13: memref<96x768xbf16, #tpu.memory_space<vmem>>, %arg14: memref<1x768xf32, #tpu.memory_space<vmem>>, %arg15: memref<16x1xf32, #tpu.memory_space<vmem>>, %arg16: memref<16x1xf32, #tpu.memory_space<vmem>>, %arg17: memref<256x384xbf16, #tpu.memory_space<vmem>>, %arg18: memref<1x384xf32, #tpu.memory_space<vmem>>, %arg19: memref<128x3xbf16, #tpu.memory_space<vmem>>, %arg20: memref<1x3xf32, #tpu.memory_space<vmem>>, %arg21: memref<1x16x3xf32, #tpu.memory_space<vmem>>) attributes {dimension_semantics = [#tpu.dimension_semantics<parallel>], iteration_bounds = array<i64: 2>, scalar_prefetch = 0 : i64, scratch_operands = 0 : i64, tpu.core_type = #tpu.core_type<tc>, window_params = [{transform_indices = @transform_0, window_bounds = array<i64: 1, 16, 48>}, {pipeline_mode = #tpu.pipeline_mode<synchronous>, transform_indices = @transform_1, window_bounds = array<i64: 16, 16>}, {pipeline_mode = #tpu.pipeline_mode<synchronous>, transform_indices = @transform_2, window_bounds = array<i64: 48, 1920>}, {pipeline_mode = #tpu.pipeline_mode<synchronous>, transform_indices = @transform_3, window_bounds = array<i64: 1, 1920>}, {pipeline_mode = #tpu.pipeline_mode<synchronous>, transform_indices = @transform_4, window_bounds = array<i64: 640, 160>}, {pipeline_mode = #tpu.pipeline_mode<synchronous>, transform_indices = @transform_5, window_bounds = array<i64: 160, 1536>}, {pipeline_mode = #tpu.pipeline_mode<synchronous>, transform_indices = @transform_6, window_bounds = array<i64: 1, 1536>}, {pipeline_mode = #tpu.pipeline_mode<synchronous>, transform_indices = @transform_7, window_bounds = array<i64: 16, 1>}, {pipeline_mode = #tpu.pipeline_mode<synchronous>, transform_indices = @transform_8, window_bounds = array<i64: 16, 1>}, {pipeline_mode = #tpu.pipeline_mode<synchronous>, transform_indices = @transform_9, window_bounds = array<i64: 512, 1152>}, {pipeline_mode = #tpu.pipeline_mode<synchronous>, transform_indices = @transform_10, window_bounds = array<i64: 1, 1152>}, {pipeline_mode = #tpu.pipeline_mode<synchronous>, transform_indices = @transform_11, window_bounds = array<i64: 384, 96>}, {pipeline_mode = #tpu.pipeline_mode<synchronous>, transform_indices = @transform_12, window_bounds = array<i64: 96, 768>}, {pipeline_mode = #tpu.pipeline_mode<synchronous>, transform_indices = @transform_13, window_bounds = array<i64: 1, 768>}, {pipeline_mode = #tpu.pipeline_mode<synchronous>, transform_indices = @transform_14, window_bounds = array<i64: 16, 1>}, {pipeline_mode = #tpu.pipeline_mode<synchronous>, transform_indices = @transform_15, window_bounds = array<i64: 16, 1>}, {pipeline_mode = #tpu.pipeline_mode<synchronous>, transform_indices = @transform_16, window_bounds = array<i64: 256, 384>}, {pipeline_mode = #tpu.pipeline_mode<synchronous>, transform_indices = @transform_17, window_bounds = array<i64: 1, 384>}, {pipeline_mode = #tpu.pipeline_mode<synchronous>, transform_indices = @transform_18, window_bounds = array<i64: 128, 3>}, {pipeline_mode = #tpu.pipeline_mode<synchronous>, transform_indices = @transform_19, window_bounds = array<i64: 1, 3>}, {transform_indices = @transform_20, window_bounds = array<i64: 1, 16, 3>}]} {
    %c0 = arith.constant 0 : index
    %c0_0 = arith.constant 0 : index
    %c0_1 = arith.constant 0 : index
    %0 = vector.load %arg1[%c0, %c0_0, %c0_1] : memref<1x16x48xbf16, #tpu.memory_space<vmem>>, vector<1x16x48xbf16>
    %1 = vector.shape_cast %0 : vector<1x16x48xbf16> to vector<16x48xbf16>
    %c0_2 = arith.constant 0 : index
    %c0_3 = arith.constant 0 : index
    %2 = vector.load %arg3[%c0_2, %c0_3] : memref<48x1920xbf16, #tpu.memory_space<vmem>>, vector<48x1920xbf16>
    %cst = arith.constant dense<0.000000e+00> : vector<16x1920xf32>
    %3 = tpu.matmul %1, %2, %cst {dimension_numbers = #tpu.dot_dimension_numbers<[1], [0], [0], [1], [0, 0, 1, 1], [], []>} : vector<16x48xbf16>, vector<48x1920xbf16>, vector<16x1920xf32> -> vector<16x1920xf32>
    %c0_4 = arith.constant 0 : index
    %c0_5 = arith.constant 0 : index
    %4 = vector.load %arg4[%c0_4, %c0_5] : memref<1x1920xf32, #tpu.memory_space<vmem>>, vector<1x1920xf32>
    %5 = vector.broadcast %4 : vector<1x1920xf32> to vector<16x1920xf32>
    %6 = arith.addf %3, %5 : vector<16x1920xf32>
    %7 = vector.extract_strided_slice %6 {offsets = [0, 0], sizes = [16, 640], strides = [1, 1]} : vector<16x1920xf32> to vector<16x640xf32>
    %8 = vector.extract_strided_slice %6 {offsets = [0, 640], sizes = [16, 640], strides = [1, 1]} : vector<16x1920xf32> to vector<16x640xf32>
    %9 = arith.negf %8 : vector<16x640xf32>
    %10 = math.exp %9 : vector<16x640xf32>
    %cst_6 = arith.constant 1.000000e+00 : f32
    %11 = vector.broadcast %cst_6 : f32 to vector<16x640xf32>
    %12 = arith.addf %11, %10 : vector<16x640xf32>
    %13 = arith.divf %11, %12 : vector<16x640xf32>
    %14 = arith.addf %7, %13 : vector<16x640xf32>
    %15 = vector.extract_strided_slice %6 {offsets = [0, 1280], sizes = [16, 640], strides = [1, 1]} : vector<16x1920xf32> to vector<16x640xf32>
    %16 = arith.addf %14, %15 : vector<16x640xf32>
    %cst_7 = arith.constant 0.000000e+00 : f32
    %17 = vector.broadcast %cst_7 : f32 to vector<16x640xf32>
    %18 = arith.maximumf %16, %17 : vector<16x640xf32>
    %19 = arith.truncf %18 : vector<16x640xf32> to vector<16x640xbf16>
    %c0_8 = arith.constant 0 : index
    %c0_9 = arith.constant 0 : index
    %20 = vector.load %arg5[%c0_8, %c0_9] : memref<640x160xbf16, #tpu.memory_space<vmem>>, vector<640x160xbf16>
    %cst_10 = arith.constant dense<0.000000e+00> : vector<16x160xf32>
    %21 = tpu.matmul %19, %20, %cst_10 {dimension_numbers = #tpu.dot_dimension_numbers<[1], [0], [0], [1], [0, 0, 1, 1], [], []>} : vector<16x640xbf16>, vector<640x160xbf16>, vector<16x160xf32> -> vector<16x160xf32>
    %c0_11 = arith.constant 0 : index
    %c0_12 = arith.constant 0 : index
    %22 = vector.load %arg2[%c0_11, %c0_12] : memref<16x16xbf16, #tpu.memory_space<vmem>>, vector<16x16xbf16>
    %23 = arith.truncf %21 : vector<16x160xf32> to vector<16x160xbf16>
    %cst_13 = arith.constant dense<0.000000e+00> : vector<16x160xf32>
    %24 = tpu.matmul %22, %23, %cst_13 {dimension_numbers = #tpu.dot_dimension_numbers<[1], [0], [0], [1], [0, 0, 1, 1], [], []>} : vector<16x16xbf16>, vector<16x160xbf16>, vector<16x160xf32> -> vector<16x160xf32>
    %cst_14 = arith.constant 0.000000e+00 : f32
    %25 = vector.broadcast %cst_14 : f32 to vector<16x160xf32>
    %26 = arith.maximumf %24, %25 : vector<16x160xf32>
    %27 = arith.truncf %26 : vector<16x160xf32> to vector<16x160xbf16>
    %c0_15 = arith.constant 0 : index
    %c0_16 = arith.constant 0 : index
    %28 = vector.load %arg6[%c0_15, %c0_16] : memref<160x1536xbf16, #tpu.memory_space<vmem>>, vector<160x1536xbf16>
    %cst_17 = arith.constant dense<0.000000e+00> : vector<16x1536xf32>
    %29 = tpu.matmul %27, %28, %cst_17 {dimension_numbers = #tpu.dot_dimension_numbers<[1], [0], [0], [1], [0, 0, 1, 1], [], []>} : vector<16x160xbf16>, vector<160x1536xbf16>, vector<16x1536xf32> -> vector<16x1536xf32>
    %c0_18 = arith.constant 0 : index
    %c0_19 = arith.constant 0 : index
    %30 = vector.load %arg7[%c0_18, %c0_19] : memref<1x1536xf32, #tpu.memory_space<vmem>>, vector<1x1536xf32>
    %31 = vector.broadcast %30 : vector<1x1536xf32> to vector<16x1536xf32>
    %32 = arith.addf %29, %31 : vector<16x1536xf32>
    %33 = vector.extract_strided_slice %32 {offsets = [0, 0], sizes = [16, 512], strides = [1, 1]} : vector<16x1536xf32> to vector<16x512xf32>
    %34 = vector.extract_strided_slice %32 {offsets = [0, 512], sizes = [16, 512], strides = [1, 1]} : vector<16x1536xf32> to vector<16x512xf32>
    %35 = arith.negf %34 : vector<16x512xf32>
    %36 = math.exp %35 : vector<16x512xf32>
    %cst_20 = arith.constant 1.000000e+00 : f32
    %37 = vector.broadcast %cst_20 : f32 to vector<16x512xf32>
    %38 = arith.addf %37, %36 : vector<16x512xf32>
    %39 = arith.divf %37, %38 : vector<16x512xf32>
    %40 = arith.addf %33, %39 : vector<16x512xf32>
    %41 = vector.extract_strided_slice %32 {offsets = [0, 1024], sizes = [16, 512], strides = [1, 1]} : vector<16x1536xf32> to vector<16x512xf32>
    %42 = arith.addf %40, %41 : vector<16x512xf32>
    %cst_21 = arith.constant 0.000000e+00 : f32
    %43 = vector.broadcast %cst_21 : f32 to vector<16x512xf32>
    %44 = arith.maximumf %42, %43 : vector<16x512xf32>
    %c0_22 = arith.constant 0 : index
    %c0_23 = arith.constant 0 : index
    %45 = vector.load %arg8[%c0_22, %c0_23] : memref<16x1xf32, #tpu.memory_space<vmem>>, vector<16x1xf32>
    %46 = vector.broadcast %45 : vector<16x1xf32> to vector<16x512xf32>
    %47 = arith.mulf %44, %46 : vector<16x512xf32>
    %c0_24 = arith.constant 0 : index
    %c0_25 = arith.constant 0 : index
    %48 = vector.load %arg9[%c0_24, %c0_25] : memref<16x1xf32, #tpu.memory_space<vmem>>, vector<16x1xf32>
    %49 = vector.broadcast %48 : vector<16x1xf32> to vector<16x512xf32>
    %50 = arith.addf %47, %49 : vector<16x512xf32>
    %51 = arith.truncf %50 : vector<16x512xf32> to vector<16x512xbf16>
    %c0_26 = arith.constant 0 : index
    %c0_27 = arith.constant 0 : index
    %52 = vector.load %arg10[%c0_26, %c0_27] : memref<512x1152xbf16, #tpu.memory_space<vmem>>, vector<512x1152xbf16>
    %cst_28 = arith.constant dense<0.000000e+00> : vector<16x1152xf32>
    %53 = tpu.matmul %51, %52, %cst_28 {dimension_numbers = #tpu.dot_dimension_numbers<[1], [0], [0], [1], [0, 0, 1, 1], [], []>} : vector<16x512xbf16>, vector<512x1152xbf16>, vector<16x1152xf32> -> vector<16x1152xf32>
    %c0_29 = arith.constant 0 : index
    %c0_30 = arith.constant 0 : index
    %54 = vector.load %arg11[%c0_29, %c0_30] : memref<1x1152xf32, #tpu.memory_space<vmem>>, vector<1x1152xf32>
    %55 = vector.broadcast %54 : vector<1x1152xf32> to vector<16x1152xf32>
    %56 = arith.addf %53, %55 : vector<16x1152xf32>
    %57 = vector.extract_strided_slice %56 {offsets = [0, 0], sizes = [16, 384], strides = [1, 1]} : vector<16x1152xf32> to vector<16x384xf32>
    %58 = vector.extract_strided_slice %56 {offsets = [0, 384], sizes = [16, 384], strides = [1, 1]} : vector<16x1152xf32> to vector<16x384xf32>
    %59 = arith.negf %58 : vector<16x384xf32>
    %60 = math.exp %59 : vector<16x384xf32>
    %cst_31 = arith.constant 1.000000e+00 : f32
    %61 = vector.broadcast %cst_31 : f32 to vector<16x384xf32>
    %62 = arith.addf %61, %60 : vector<16x384xf32>
    %63 = arith.divf %61, %62 : vector<16x384xf32>
    %64 = arith.addf %57, %63 : vector<16x384xf32>
    %65 = vector.extract_strided_slice %56 {offsets = [0, 768], sizes = [16, 384], strides = [1, 1]} : vector<16x1152xf32> to vector<16x384xf32>
    %66 = arith.addf %64, %65 : vector<16x384xf32>
    %cst_32 = arith.constant 0.000000e+00 : f32
    %67 = vector.broadcast %cst_32 : f32 to vector<16x384xf32>
    %68 = arith.maximumf %66, %67 : vector<16x384xf32>
    %69 = arith.truncf %68 : vector<16x384xf32> to vector<16x384xbf16>
    %c0_33 = arith.constant 0 : index
    %c0_34 = arith.constant 0 : index
    %70 = vector.load %arg12[%c0_33, %c0_34] : memref<384x96xbf16, #tpu.memory_space<vmem>>, vector<384x96xbf16>
    %cst_35 = arith.constant dense<0.000000e+00> : vector<16x96xf32>
    %71 = tpu.matmul %69, %70, %cst_35 {dimension_numbers = #tpu.dot_dimension_numbers<[1], [0], [0], [1], [0, 0, 1, 1], [], []>} : vector<16x384xbf16>, vector<384x96xbf16>, vector<16x96xf32> -> vector<16x96xf32>
    %c0_36 = arith.constant 0 : index
    %c0_37 = arith.constant 0 : index
    %72 = vector.load %arg2[%c0_36, %c0_37] : memref<16x16xbf16, #tpu.memory_space<vmem>>, vector<16x16xbf16>
    %73 = arith.truncf %71 : vector<16x96xf32> to vector<16x96xbf16>
    %cst_38 = arith.constant dense<0.000000e+00> : vector<16x96xf32>
    %74 = tpu.matmul %72, %73, %cst_38 {dimension_numbers = #tpu.dot_dimension_numbers<[1], [0], [0], [1], [0, 0, 1, 1], [], []>} : vector<16x16xbf16>, vector<16x96xbf16>, vector<16x96xf32> -> vector<16x96xf32>
    %cst_39 = arith.constant 0.000000e+00 : f32
    %75 = vector.broadcast %cst_39 : f32 to vector<16x96xf32>
    %76 = arith.maximumf %74, %75 : vector<16x96xf32>
    %77 = arith.truncf %76 : vector<16x96xf32> to vector<16x96xbf16>
    %c0_40 = arith.constant 0 : index
    %c0_41 = arith.constant 0 : index
    %78 = vector.load %arg13[%c0_40, %c0_41] : memref<96x768xbf16, #tpu.memory_space<vmem>>, vector<96x768xbf16>
    %cst_42 = arith.constant dense<0.000000e+00> : vector<16x768xf32>
    %79 = tpu.matmul %77, %78, %cst_42 {dimension_numbers = #tpu.dot_dimension_numbers<[1], [0], [0], [1], [0, 0, 1, 1], [], []>} : vector<16x96xbf16>, vector<96x768xbf16>, vector<16x768xf32> -> vector<16x768xf32>
    %c0_43 = arith.constant 0 : index
    %c0_44 = arith.constant 0 : index
    %80 = vector.load %arg14[%c0_43, %c0_44] : memref<1x768xf32, #tpu.memory_space<vmem>>, vector<1x768xf32>
    %81 = vector.broadcast %80 : vector<1x768xf32> to vector<16x768xf32>
    %82 = arith.addf %79, %81 : vector<16x768xf32>
    %83 = vector.extract_strided_slice %82 {offsets = [0, 0], sizes = [16, 256], strides = [1, 1]} : vector<16x768xf32> to vector<16x256xf32>
    %84 = vector.extract_strided_slice %82 {offsets = [0, 256], sizes = [16, 256], strides = [1, 1]} : vector<16x768xf32> to vector<16x256xf32>
    %85 = arith.negf %84 : vector<16x256xf32>
    %86 = math.exp %85 : vector<16x256xf32>
    %cst_45 = arith.constant 1.000000e+00 : f32
    %87 = vector.broadcast %cst_45 : f32 to vector<16x256xf32>
    %88 = arith.addf %87, %86 : vector<16x256xf32>
    %89 = arith.divf %87, %88 : vector<16x256xf32>
    %90 = arith.addf %83, %89 : vector<16x256xf32>
    %91 = vector.extract_strided_slice %82 {offsets = [0, 512], sizes = [16, 256], strides = [1, 1]} : vector<16x768xf32> to vector<16x256xf32>
    %92 = arith.addf %90, %91 : vector<16x256xf32>
    %cst_46 = arith.constant 0.000000e+00 : f32
    %93 = vector.broadcast %cst_46 : f32 to vector<16x256xf32>
    %94 = arith.maximumf %92, %93 : vector<16x256xf32>
    %c0_47 = arith.constant 0 : index
    %c0_48 = arith.constant 0 : index
    %95 = vector.load %arg15[%c0_47, %c0_48] : memref<16x1xf32, #tpu.memory_space<vmem>>, vector<16x1xf32>
    %96 = vector.broadcast %95 : vector<16x1xf32> to vector<16x256xf32>
    %97 = arith.mulf %94, %96 : vector<16x256xf32>
    %c0_49 = arith.constant 0 : index
    %c0_50 = arith.constant 0 : index
    %98 = vector.load %arg16[%c0_49, %c0_50] : memref<16x1xf32, #tpu.memory_space<vmem>>, vector<16x1xf32>
    %99 = vector.broadcast %98 : vector<16x1xf32> to vector<16x256xf32>
    %100 = arith.addf %97, %99 : vector<16x256xf32>
    %101 = arith.truncf %100 : vector<16x256xf32> to vector<16x256xbf16>
    %c0_51 = arith.constant 0 : index
    %c0_52 = arith.constant 0 : index
    %102 = vector.load %arg17[%c0_51, %c0_52] : memref<256x384xbf16, #tpu.memory_space<vmem>>, vector<256x384xbf16>
    %cst_53 = arith.constant dense<0.000000e+00> : vector<16x384xf32>
    %103 = tpu.matmul %101, %102, %cst_53 {dimension_numbers = #tpu.dot_dimension_numbers<[1], [0], [0], [1], [0, 0, 1, 1], [], []>} : vector<16x256xbf16>, vector<256x384xbf16>, vector<16x384xf32> -> vector<16x384xf32>
    %c0_54 = arith.constant 0 : index
    %c0_55 = arith.constant 0 : index
    %104 = vector.load %arg18[%c0_54, %c0_55] : memref<1x384xf32, #tpu.memory_space<vmem>>, vector<1x384xf32>
    %105 = vector.broadcast %104 : vector<1x384xf32> to vector<16x384xf32>
    %106 = arith.addf %103, %105 : vector<16x384xf32>
    %107 = vector.extract_strided_slice %106 {offsets = [0, 0], sizes = [16, 128], strides = [1, 1]} : vector<16x384xf32> to vector<16x128xf32>
    %108 = vector.extract_strided_slice %106 {offsets = [0, 128], sizes = [16, 128], strides = [1, 1]} : vector<16x384xf32> to vector<16x128xf32>
    %109 = arith.negf %108 : vector<16x128xf32>
    %110 = math.exp %109 : vector<16x128xf32>
    %cst_56 = arith.constant 1.000000e+00 : f32
    %111 = vector.broadcast %cst_56 : f32 to vector<16x128xf32>
    %112 = arith.addf %111, %110 : vector<16x128xf32>
    %113 = arith.divf %111, %112 : vector<16x128xf32>
    %114 = arith.addf %107, %113 : vector<16x128xf32>
    %115 = vector.extract_strided_slice %106 {offsets = [0, 256], sizes = [16, 128], strides = [1, 1]} : vector<16x384xf32> to vector<16x128xf32>
    %116 = arith.addf %114, %115 : vector<16x128xf32>
    %cst_57 = arith.constant 0.000000e+00 : f32
    %117 = vector.broadcast %cst_57 : f32 to vector<16x128xf32>
    %118 = arith.maximumf %116, %117 : vector<16x128xf32>
    %119 = arith.truncf %118 : vector<16x128xf32> to vector<16x128xbf16>
    %c0_58 = arith.constant 0 : index
    %c0_59 = arith.constant 0 : index
    %120 = vector.load %arg19[%c0_58, %c0_59] : memref<128x3xbf16, #tpu.memory_space<vmem>>, vector<128x3xbf16>
    %cst_60 = arith.constant dense<0.000000e+00> : vector<16x3xf32>
    %121 = tpu.matmul %119, %120, %cst_60 {dimension_numbers = #tpu.dot_dimension_numbers<[1], [0], [0], [1], [0, 0, 1, 1], [], []>} : vector<16x128xbf16>, vector<128x3xbf16>, vector<16x3xf32> -> vector<16x3xf32>
    %c0_61 = arith.constant 0 : index
    %c0_62 = arith.constant 0 : index
    %122 = vector.load %arg20[%c0_61, %c0_62] : memref<1x3xf32, #tpu.memory_space<vmem>>, vector<1x3xf32>
    %123 = vector.broadcast %122 : vector<1x3xf32> to vector<16x3xf32>
    %124 = arith.addf %121, %123 : vector<16x3xf32>
    %c0_63 = arith.constant 0 : index
    %c0_64 = arith.constant 0 : index
    %c0_65 = arith.constant 0 : index
    %125 = vector.load %arg21[%c0_63, %c0_64, %c0_65] : memref<1x16x3xf32, #tpu.memory_space<vmem>>, vector<1x16x3xf32>
    %126 = vector.shape_cast %125 : vector<1x16x3xf32> to vector<16x3xf32>
    %127 = vector.shape_cast %124 : vector<16x3xf32> to vector<1x16x3xf32>
    tpu.vector_store %arg21[%c0_63, %c0_64, %c0_65], %127 {strides = array<i32>} : memref<1x16x3xf32, #tpu.memory_space<vmem>>, vector<1x16x3xf32>,
    return
  }
  func.func @transform_0(%arg0: i32) -> (i32, i32, i32) {
    %c0_i32 = arith.constant 0 : i32
    %c0_i32_0 = arith.constant 0 : i32
    %c0_i32_1 = arith.constant 0 : i32
    return %arg0, %c0_i32, %c0_i32_0 : i32, i32, i32
  }
  func.func @transform_1(%arg0: i32) -> (i32, i32) {
    %c0_i32 = arith.constant 0 : i32
    %c0_i32_0 = arith.constant 0 : i32
    %c0_i32_1 = arith.constant 0 : i32
    return %c0_i32, %c0_i32_0 : i32, i32
  }
  func.func @transform_2(%arg0: i32) -> (i32, i32) {
    %c0_i32 = arith.constant 0 : i32
    %c0_i32_0 = arith.constant 0 : i32
    %c0_i32_1 = arith.constant 0 : i32
    return %c0_i32, %c0_i32_0 : i32, i32
  }
  func.func @transform_3(%arg0: i32) -> (i32, i32) {
    %c0_i32 = arith.constant 0 : i32
    %c0_i32_0 = arith.constant 0 : i32
    %c0_i32_1 = arith.constant 0 : i32
    return %c0_i32, %c0_i32_0 : i32, i32
  }
  func.func @transform_4(%arg0: i32) -> (i32, i32) {
    %c0_i32 = arith.constant 0 : i32
    %c0_i32_0 = arith.constant 0 : i32
    %c0_i32_1 = arith.constant 0 : i32
    return %c0_i32, %c0_i32_0 : i32, i32
  }
  func.func @transform_5(%arg0: i32) -> (i32, i32) {
    %c0_i32 = arith.constant 0 : i32
    %c0_i32_0 = arith.constant 0 : i32
    %c0_i32_1 = arith.constant 0 : i32
    return %c0_i32, %c0_i32_0 : i32, i32
  }
  func.func @transform_6(%arg0: i32) -> (i32, i32) {
    %c0_i32 = arith.constant 0 : i32
    %c0_i32_0 = arith.constant 0 : i32
    %c0_i32_1 = arith.constant 0 : i32
    return %c0_i32, %c0_i32_0 : i32, i32
  }
  func.func @transform_7(%arg0: i32) -> (i32, i32) {
    %c0_i32 = arith.constant 0 : i32
    %c0_i32_0 = arith.constant 0 : i32
    %c0_i32_1 = arith.constant 0 : i32
    return %c0_i32, %c0_i32_0 : i32, i32
  }
  func.func @transform_8(%arg0: i32) -> (i32, i32) {
    %c0_i32 = arith.constant 0 : i32
    %c0_i32_0 = arith.constant 0 : i32
    %c0_i32_1 = arith.constant 0 : i32
    return %c0_i32, %c0_i32_0 : i32, i32
  }
  func.func @transform_9(%arg0: i32) -> (i32, i32) {
    %c0_i32 = arith.constant 0 : i32
    %c0_i32_0 = arith.constant 0 : i32
    %c0_i32_1 = arith.constant 0 : i32
    return %c0_i32, %c0_i32_0 : i32, i32
  }
  func.func @transform_10(%arg0: i32) -> (i32, i32) {
    %c0_i32 = arith.constant 0 : i32
    %c0_i32_0 = arith.constant 0 : i32
    %c0_i32_1 = arith.constant 0 : i32
    return %c0_i32, %c0_i32_0 : i32, i32
  }
  func.func @transform_11(%arg0: i32) -> (i32, i32) {
    %c0_i32 = arith.constant 0 : i32
    %c0_i32_0 = arith.constant 0 : i32
    %c0_i32_1 = arith.constant 0 : i32
    return %c0_i32, %c0_i32_0 : i32, i32
  }
  func.func @transform_12(%arg0: i32) -> (i32, i32) {
    %c0_i32 = arith.constant 0 : i32
    %c0_i32_0 = arith.constant 0 : i32
    %c0_i32_1 = arith.constant 0 : i32
    return %c0_i32, %c0_i32_0 : i32, i32
  }
  func.func @transform_13(%arg0: i32) -> (i32, i32) {
    %c0_i32 = arith.constant 0 : i32
    %c0_i32_0 = arith.constant 0 : i32
    %c0_i32_1 = arith.constant 0 : i32
    return %c0_i32, %c0_i32_0 : i32, i32
  }
  func.func @transform_14(%arg0: i32) -> (i32, i32) {
    %c0_i32 = arith.constant 0 : i32
    %c0_i32_0 = arith.constant 0 : i32
    %c0_i32_1 = arith.constant 0 : i32
    return %c0_i32, %c0_i32_0 : i32, i32
  }
  func.func @transform_15(%arg0: i32) -> (i32, i32) {
    %c0_i32 = arith.constant 0 : i32
    %c0_i32_0 = arith.constant 0 : i32
    %c0_i32_1 = arith.constant 0 : i32
    return %c0_i32, %c0_i32_0 : i32, i32
  }
  func.func @transform_16(%arg0: i32) -> (i32, i32) {
    %c0_i32 = arith.constant 0 : i32
    %c0_i32_0 = arith.constant 0 : i32
    %c0_i32_1 = arith.constant 0 : i32
    return %c0_i32, %c0_i32_0 : i32, i32
  }
  func.func @transform_17(%arg0: i32) -> (i32, i32) {
    %c0_i32 = arith.constant 0 : i32
    %c0_i32_0 = arith.constant 0 : i32
    %c0_i32_1 = arith.constant 0 : i32
    return %c0_i32, %c0_i32_0 : i32, i32
  }
  func.func @transform_18(%arg0: i32) -> (i32, i32) {
    %c0_i32 = arith.constant 0 : i32
    %c0_i32_0 = arith.constant 0 : i32
    %c0_i32_1 = arith.constant 0 : i32
    return %c0_i32, %c0_i32_0 : i32, i32
  }
  func.func @transform_19(%arg0: i32) -> (i32, i32) {
    %c0_i32 = arith.constant 0 : i32
    %c0_i32_0 = arith.constant 0 : i32
    %c0_i32_1 = arith.constant 0 : i32
    return %c0_i32, %c0_i32_0 : i32, i32
  }
  func.func @transform_20(%arg0: i32) -> (i32, i32, i32) {
    %c0_i32 = arith.constant 0 : i32
    %c0_i32_0 = arith.constant 0 : i32
    %c0_i32_1 = arith.constant 0 : i32
    return %arg0, %c0_i32, %c0_i32_0 : i32, i32, i32
  }
}

</mosaic_0001>

<bundles_post_ra>
// kernel: stgcn_forward.1
= control target key start
LH: loop header
LB: loop body
LE: loop exit
PB: predicated region body
PF: predicated region fallthrough
CT: control target
= control target key end

     0   :  { %s11156_s0 = inlined_call_operand.hbm [shape: bf16[2,16,48], index: 0, kind: input, shape index: {}]   ;;  %s11157_s1 = inlined_call_operand.hbm [shape: bf16[16,16], index: 1, kind: input, shape index: {}]   ;;  %s11158_s2 = inlined_call_operand.hbm [shape: bf16[48,1920], index: 2, kind: input, shape index: {}]   ;;  %s11159_s3 = inlined_call_operand.hbm [shape: f32[1,1920], index: 3, kind: input, shape index: {}]   ;;  %s11160_s4 = inlined_call_operand.vmem [shape: bf16[640,160], index: 4, kind: input, shape index: {}]   ;;  %s11161_s5 = inlined_call_operand.vmem [shape: bf16[160,1536], index: 5, kind: input, shape index: {}]   ;;  %s11162_s6 = inlined_call_operand.hbm [shape: f32[1,1536], index: 6, kind: input, shape index: {}]   ;;  %s11163_s7 = inlined_call_operand.vmem [shape: f32[16,1], index: 7, kind: input, shape index: {}]   ;;  %s11164_s8 = inlined_call_operand.vmem [shape: f32[16,1], index: 8, kind: input, shape index: {}]   ;;  %s11165_s9 = inlined_call_operand.hbm [shape: bf16[512,1152], index: 9, kind: input, shape index: {}]   ;;  %s11166_s10 = inlined_call_operand.hbm [shape: f32[1,1152], index: 10, kind: input, shape index: {}]   ;;  %s11167_s11 = inlined_call_operand.vmem [shape: bf16[384,96], index: 11, kind: input, shape index: {}]   ;;  %s11168_s12 = inlined_call_operand.hbm [shape: bf16[96,768], index: 12, kind: input, shape index: {}]   ;;  %s11169_s13 = inlined_call_operand.hbm [shape: f32[1,768], index: 13, kind: input, shape index: {}]   ;;  %s11170_s14 = inlined_call_operand.vmem [shape: f32[16,1], index: 14, kind: input, shape index: {}]   ;;  %s11171_s15 = inlined_call_operand.vmem [shape: f32[16,1], index: 15, kind: input, shape index: {}]   ;;  %s11172_s16 = inlined_call_operand.hbm [shape: bf16[256,384], index: 16, kind: input, shape index: {}]   ;;  %s11173_s17 = inlined_call_operand.hbm [shape: f32[1,384], index: 17, kind: input, shape index: {}]   ;;  %s11174_s18 = inlined_call_operand.vmem [shape: bf16[128,3], index: 18, kind: input, shape index: {}]   ;;  %s11175_s19 = inlined_call_operand.hbm [shape: f32[1,3], index: 19, kind: input, shape index: {}]   ;;  %s11176_s20 = inlined_call_operand.vmem [shape: f32[2,16,3], index: 20, kind: output, shape index: {}]  }
   0x1   :  { %11189 = sst [smem:[#allocation28_spill]] %s11156_s0 }
   0x2   :  { %11190 = sst [smem:[#allocation29_spill]] %s11157_s1 }
   0x3   :  { %11191 = sst [smem:[#allocation30_spill]] %s11158_s2 }
   0x4   :  { %11192 = sst [smem:[#allocation31_spill]] %s11159_s3 }
   0x5   :  { %11193 = sst [smem:[#allocation32_spill]] %s11160_s4 }
   0x6   :  { %11194 = sst [smem:[#allocation33_spill]] %s11164_s8 }
   0x7   :  { %11195 = sst [smem:[#allocation34_spill]] %s11167_s11 }
   0x8   :  { %11196 = sst [smem:[#allocation35_spill]] %s11170_s14 }
   0x9   :  { %11197 = sst [smem:[#allocation36_spill]] %s11171_s15 }
   0xa   :  { %11198 = sst [smem:[#allocation37_spill]] %s11174_s18 }
   0xb   :  { %11199 = sst [smem:[#allocation38_spill]] %s11176_s20 }
   0xc   :  { %25 = vsyncpa [#allocation3], 0 }
   0xd   :  { %27 = vsyncpa [#allocation3 + $0x1], 0 }
   0xe   :  { %28 = vsyncpa [#allocation5], 0 }
   0xf   :  { %29 = vsyncpa [#allocation8], 0 }
  0x10   :  { %30 = vsyncpa [#allocation11], 0 }
  0x11   :  { %31 = vsyncpa [#allocation14], 0 }
  0x12   :  { %32 = vsyncpa [#allocation17], 0 }
  0x13   :  { %33 = vsyncpa [#allocation20], 0  ;;  %s9886_s1 = smov 0   ;;  %s9888_s22 = smov 0  }
  0x14   :  { %s9890_s23 = smov 0   ;;  %s9892_s24 = smov 0  }
  0x15 LB: > { %s9756_s2 = smov [#allocation4]   ;;  %s9907_s3 = sadd.s32 4294967295, %s9754_s24   ;;  %s9754_s24 = sphi %s9892_s24, %s11237_s24   ;;  %s9750_s23 = sphi %s9890_s23, %s11236_s23   ;;  %s9746_s22 = sphi %s9888_s22, %s11235_s22   ;;  %s9742_s1 = sphi %s9886_s1, %s11234_s1  }
  0x16   : > { %s507_s25 = sshll.u32 %s9756_s2, 4  ;;  %p7257_p0 = scmp.ge.s32.totalorder %s9754_s24, 1  ;;  %s508_s25 = int_to_ptr.vmem [resolvable:$true] %s507_s25 }
  0x17   : > { %p11185_p1 = scmp.eq.s32.totalorder %s9907_s3, 0  ;;  %p495_p2 = scmp.lt.s32.totalorder %s9754_s24, 3 }
  0x18   : > { %s9757_s27 = smov [#allocation7]   ;;  %s9758_s29 = smov [#allocation10]  }
  0x19   : > { %p9912_p3 = pnand %p7257_p0, %p495_p2  ;;  %s534_s28 = sshll.u32 %s9757_s27, 4  ;;  %s535_s28 = int_to_ptr.vmem [resolvable:$true] %s534_s28 }
  0x1a   : > { %s567_s30 = sshll.u32 %s9758_s29, 4  ;;  %s9393_s21 = scalar_lea.vmem %s508_s25, 128  ;;  %s9924_s30 = int_to_ptr.vmem [resolvable:$true] %s567_s30 }
  0x1b   : > { %s11200_s26 = scalar_select %p9912_p3, 1, 0 }
  0x1c   : > { %p8208_p4 = pneg %p9912_p3  ;;  %p9394_p7 = scmp.ne.s32.totalorder %s508_s25, %s9393_s21 }
  0x1d   : > { %p9401_p10 = scmp.lt.s32.totalorder %s508_s25, %s508_s25  ;;  %p9402_p11 = scmp.lt.s32.totalorder %s9393_s21, %s9393_s21 }
  0x1e   : > { %p9920_p5 = pnand %p8208_p4, %p11185_p1 }
  0x1f   : > { %p9403_p12 = por %p9402_p11, %p9401_p10 }
  0x20   : > { %p9928_p6 = pneg %p9920_p5 }
  0x22   : > { %p9396_p8 = pnand %p9394_p7, %p9928_p6 }
  0x24   : > { %p9397_p9 = pneg %p9396_p8 }
  0x26   : > { %p9404_p13 = pnand %p9403_p12, %p9397_p9 }
  0x28   : > { %9407 = shalt.err (!%p9404_p13)
}
  0x29   : > { %s11184_s2 = smov 64   ;;  %s11187_s27 = smov 4  }
  0x2a   : > { %s11203_s18 = sld [smem:[#allocation29_spill]]  ;;  %s9419_s11 = scalar_lea.vmem %s535_s28, 240 }
  0x2b   : > { %p9420_p0 = scmp.ne.s32.totalorder %s535_s28, %s9419_s11  ;;  %s9426_s21 = scalar_lea.vmem %s535_s28, 256 }
  0x2c   : > { %p9427_p7 = scmp.lt.s32.totalorder %s535_s28, %s535_s28  ;;  %p9428_p8 = scmp.lt.s32.totalorder %s9426_s21, %s9419_s11 }
  0x2d   : > { %p9422_p2 = pnand %p9420_p0, %p9928_p6 }
  0x2e   : > { %p9429_p9 = por %p9428_p8, %p9427_p7 }
  0x2f   : > { %p9423_p4 = pneg %p9422_p2 }
  0x30   : > { %8211 = dma.hbm_to_vmem [thread:$0]  (!%p9920_p5), %s11203_s18, 128, %s508_s25, [#allocation5], %s11184_s2, %s11184_s2, %s11187_s27  }
  0x31   : > { %p9430_p10 = pnand %p9429_p9, %p9423_p4 }
  0x33   : > { %9433 = shalt.err (!%p9430_p10)
}
  0x34   : > { %s11204_s8 = sld [smem:[#allocation31_spill]]  ;;  %s9445_s18 = scalar_lea.vmem %s9924_s30, 36864 }
  0x35   : > { %p9446_p11 = scmp.ne.s32.totalorder %s9924_s30, %s9445_s18  ;;  %p9453_p0 = scmp.lt.s32.totalorder %s9924_s30, %s9924_s30 }
  0x36   : > { %p9454_p2 = scmp.lt.s32.totalorder %s9445_s18, %s9445_s18 }
  0x37   : > { %p9448_p12 = pnand %p9446_p11, %p9928_p6 }
  0x38   : > { %p9455_p4 = por %p9454_p2, %p9453_p0 }
  0x39   : > { %p9449_p13 = pneg %p9448_p12 }
  0x3a   : > { %8217 = dma.hbm_to_vmem [thread:$0]  (!%p9920_p5), %s11204_s8, 240, %s535_s28, [#allocation8]  }
  0x3b   : > { %p9456_p7 = pnand %p9455_p4, %p9449_p13 }
  0x3d   : > { %9459 = shalt.err (!%p9456_p7)
}
  0x3e   : > { %s9761_s11 = smov 576   ;;  %s9762_s14 = smov 36  }
  0x3f   : > { %8223 = dma.hbm_to_vmem [thread:$0]  (!%p9920_p5), %s11165_s9, 36864, %s9924_s30, [#allocation11], %s9761_s11, %s9761_s11, %s9762_s14  }
  0x40   : > { %s9763_s8 = smov [#allocation13]  }
  0x41   : > { %s594_s25 = sshll.u32 %s9763_s8, 4  ;;  %s595_s25 = int_to_ptr.vmem [resolvable:$true] %s594_s25 }
  0x42   : > { %s9471_s28 = scalar_lea.vmem %s595_s25, 4608  ;;  %p9479_p11 = scmp.lt.s32.totalorder %s595_s25, %s595_s25 }
  0x43   : > { %p9472_p8 = scmp.ne.s32.totalorder %s595_s25, %s9471_s28  ;;  %p9480_p12 = scmp.lt.s32.totalorder %s9471_s28, %s9471_s28 }
  0x45   : > { %p9474_p9 = pnand %p9472_p8, %p9928_p6  ;;  %p9481_p13 = por %p9480_p12, %p9479_p11 }
  0x47   : > { %p9475_p10 = pneg %p9474_p9 }
  0x49   : > { %p9482_p0 = pnand %p9481_p13, %p9475_p10 }
  0x4b   : > { %9485 = shalt.err (!%p9482_p0)
}
  0x4c   : > { %s9764_s29 = smov 384   ;;  %s9765_s21 = smov 24  }
  0x4d   : > { %8229 = dma.hbm_to_vmem [thread:$0]  (!%p9920_p5), %s11168_s12, 4608, %s595_s25, [#allocation14], %s9764_s29, %s9764_s29, %s9765_s21  }
  0x4e   : > { %s9766_s11 = smov [#allocation16]  }
  0x4f   : > { %s624_s14 = sshll.u32 %s9766_s11, 4  ;;  %s625_s14 = int_to_ptr.vmem [resolvable:$true] %s624_s14 }
  0x50   : > { %s9497_s15 = scalar_lea.vmem %s625_s14, 6144  ;;  %p9505_p8 = scmp.lt.s32.totalorder %s625_s14, %s625_s14 }
  0x51   : > { %p9498_p2 = scmp.ne.s32.totalorder %s625_s14, %s9497_s15  ;;  %p9506_p9 = scmp.lt.s32.totalorder %s9497_s15, %s9497_s15 }
  0x53   : > { %p9500_p4 = pnand %p9498_p2, %p9928_p6  ;;  %p9507_p10 = por %p9506_p9, %p9505_p8 }
  0x55   : > { %p9501_p7 = pneg %p9500_p4 }
  0x57   : > { %p9508_p11 = pnand %p9507_p10, %p9501_p7 }
  0x59   : > { %9511 = shalt.err (!%p9508_p11)
}
  0x5a   : > { %s9767_s20 = smov 192   ;;  %s9768_s8 = smov 12  }
  0x5b   : > { %8235 = dma.hbm_to_vmem [thread:$0]  (!%p9920_p5), %s11172_s16, 6144, %s625_s14, [#allocation17], %s9767_s20, %s9767_s20, %s9768_s8  }
  0x5c   : > { %s9769_s29 = smov [#allocation6]  }
  0x5d   : > { %s520_s21 = sshll.u32 %s9769_s29, 4  ;;  %s521_s21 = int_to_ptr.vmem [resolvable:$true] %s520_s21 }
  0x5e   : > { %s9523_s18 = scalar_lea.vmem %s521_s21, 5760  ;;  %p9531_p2 = scmp.lt.s32.totalorder %s521_s21, %s521_s21 }
  0x5f   : > { %p9524_p12 = scmp.ne.s32.totalorder %s521_s21, %s9523_s18  ;;  %p9532_p4 = scmp.lt.s32.totalorder %s9523_s18, %s9523_s18 }
  0x61   : > { %p9526_p13 = pnand %p9524_p12, %p9928_p6  ;;  %p9533_p7 = por %p9532_p4, %p9531_p2 }
  0x63   : > { %p9527_p0 = pneg %p9526_p13 }
  0x65   : > { %p9534_p8 = pnand %p9533_p7, %p9527_p0 }
  0x67   : > { %9537 = shalt.err (!%p9534_p8)
}
  0x68   : > { %s9770_s30 = smov 960   ;;  %s9771_s11 = smov 60  }
  0x69   : > { %s11205_s20 = sld [smem:[#allocation30_spill]]  ;;  %s9772_s8 = smov [#allocation9]  }
  0x6a   : > { %s551_s28 = sshll.u32 %s9772_s8, 4  ;;  %s9773_s25 = smov [#allocation12]   ;;  %s552_s28 = int_to_ptr.vmem [resolvable:$true] %s551_s28 }
  0x6b   : > { %s581_s29 = sshll.u32 %s9773_s25, 4  ;;  %s9549_s2 = scalar_lea.vmem %s552_s28, 192  ;;  %s582_s29 = int_to_ptr.vmem [resolvable:$true] %s581_s29 }
  0x6c   : > { %p9550_p9 = scmp.ne.s32.totalorder %s552_s28, %s9549_s2  ;;  %p9557_p12 = scmp.lt.s32.totalorder %s552_s28, %s552_s28 }
  0x6d   : > { %p9558_p13 = scmp.lt.s32.totalorder %s9549_s2, %s9549_s2 }
  0x6e   : > { %p9552_p10 = pnand %p9550_p9, %p9928_p6 }
  0x6f   : > { %8214 = dma.hbm_to_vmem [thread:$0]  (!%p9920_p5), %s11205_s20, 5760, %s521_s21, [#allocation5], %s9770_s30, %s9770_s30, %s9771_s11  }
  0x70   : > { %p9553_p11 = pneg %p9552_p10  ;;  %p9559_p0 = por %p9558_p13, %p9557_p12 }
  0x72   : > { %p9560_p2 = pnand %p9559_p0, %p9553_p11 }
  0x74   : > { %9563 = shalt.err (!%p9560_p2)
}
  0x75   : > { %8220 = dma.hbm_to_vmem [thread:$0]  (!%p9920_p5), %s11162_s6, 192, %s552_s28, [#allocation8]  }
  0x76   : > { %s9575_s30 = scalar_lea.vmem %s582_s29, 144  ;;  %s9582_s11 = scalar_lea.vmem %s582_s29, 160 }
  0x77   : > { %p9576_p4 = scmp.ne.s32.totalorder %s582_s29, %s9575_s30  ;;  %p9583_p9 = scmp.lt.s32.totalorder %s582_s29, %s582_s29 }
  0x78   : > { %p9584_p10 = scmp.lt.s32.totalorder %s9582_s11, %s9575_s30 }
  0x79   : > { %p9578_p7 = pnand %p9576_p4, %p9928_p6 }
  0x7a   : > { %p9585_p1 = por %p9584_p10, %p9583_p9 }
  0x7b   : > { %p9579_p8 = pneg %p9578_p7 }
  0x7d   : > { %p9586_p3 = pnand %p9585_p1, %p9579_p8 }
  0x7f   : > { %9589 = shalt.err (!%p9586_p3)
}
  0x80   : > { %8226 = dma.hbm_to_vmem [thread:$0]  (!%p9920_p5), %s11166_s10, 144, %s582_s29, [#allocation11]  }
  0x81   : > { %s9774_s14 = smov [#allocation15]   ;;  %s9775_s8 = smov [#allocation18]  }
  0x82   : > { %s608_s20 = sshll.u32 %s9774_s14, 4  ;;  %s638_s28 = sshll.u32 %s9775_s8, 4  ;;  %s609_s20 = int_to_ptr.vmem [resolvable:$true] %s608_s20  ;;  %s639_s28 = int_to_ptr.vmem [resolvable:$true] %s638_s28 }
  0x83   : > { %s9601_s25 = scalar_lea.vmem %s609_s20, 96  ;;  %p9609_p1 = scmp.lt.s32.totalorder %s609_s20, %s609_s20 }
  0x84   : > { %p9602_p11 = scmp.ne.s32.totalorder %s609_s20, %s9601_s25  ;;  %p9610_p3 = scmp.lt.s32.totalorder %s9601_s25, %s9601_s25 }
  0x86   : > { %p9604_p12 = pnand %p9602_p11, %p9928_p6  ;;  %p9611_p0 = por %p9610_p3, %p9609_p1 }
  0x88   : > { %p9605_p13 = pneg %p9604_p12 }
  0x8a   : > { %p9612_p2 = pnand %p9611_p0, %p9605_p13 }
  0x8c   : > { %9615 = shalt.err (!%p9612_p2)
}
  0x8d   : > { %8232 = dma.hbm_to_vmem [thread:$0]  (!%p9920_p5), %s11169_s13, 96, %s609_s20, [#allocation14]  }
  0x8e   : > { %s9627_s21 = scalar_lea.vmem %s639_s28, 48  ;;  %s9634_s30 = scalar_lea.vmem %s639_s28, 64 }
  0x8f   : > { %p9628_p4 = scmp.ne.s32.totalorder %s639_s28, %s9627_s21  ;;  %p9635_p9 = scmp.lt.s32.totalorder %s639_s28, %s639_s28 }
  0x90   : > { %p9636_p10 = scmp.lt.s32.totalorder %s9634_s30, %s9627_s21 }
  0x91   : > { %p9630_p7 = pnand %p9628_p4, %p9928_p6 }
  0x92   : > { %p9637_p11 = por %p9636_p10, %p9635_p9 }
  0x93   : > { %p9631_p8 = pneg %p9630_p7 }
  0x95   : > { %p9638_p12 = pnand %p9637_p11, %p9631_p8 }
  0x97   : > { %9641 = shalt.err (!%p9638_p12)
}
  0x98   : > { %8238 = dma.hbm_to_vmem [thread:$0]  (!%p9920_p5), %s11173_s17, 48, %s639_s28, [#allocation17]  }
  0x99   : > { %s9776_s15 = smov [#allocation19]  }
  0x9a   : > { %s652_s14 = sshll.u32 %s9776_s15, 4  ;;  %s653_s14 = int_to_ptr.vmem [resolvable:$true] %s652_s14 }
  0x9b   : > { %s9653_s20 = scalar_lea.vmem %s653_s14, 16  ;;  %s9660_s8 = scalar_lea.vmem %s653_s14, 32 }
  0x9c   : > { %p9654_p13 = scmp.ne.s32.totalorder %s653_s14, %s9653_s20  ;;  %p9661_p0 = scmp.lt.s32.totalorder %s653_s14, %s653_s14 }
  0x9d   : > { %p9662_p2 = scmp.lt.s32.totalorder %s9660_s8, %s9653_s20 }
  0x9e   : > { %p9656_p1 = pnand %p9654_p13, %p9928_p6 }
  0x9f   : > { %p9663_p4 = por %p9662_p2, %p9661_p0 }
  0xa0   : > { %p9657_p3 = pneg %p9656_p1 }
  0xa2   : > { %p9664_p7 = pnand %p9663_p4, %p9657_p3 }
  0xa4   : > { %9667 = shalt.err (!%p9664_p7)
}
  0xa5   : > { %8241 = dma.hbm_to_vmem [thread:$0]  (!%p9920_p5), %s11175_s19, 16, %s653_s14, [#allocation20]  }
  0xa6   : > { %s10018_s0 = sadd.s32 1, %s9754_s24   ;;  %s46_s28 = sadd.s32 1, %s9750_s23 }
  0xa7   : > { %s43_s4 = ssub.s32 %s9754_s24, %s10018_s0  ;;  %p53_p8 = scmp.ne.s32.totalorder %s9750_s23, %s9746_s22 }
  0xa8   : > { %p44_p6 = scmp.eq.s32.totalorder %s43_s4, 0  ;;  %p54_p9 = scmp.eq.s32.totalorder %s9754_s24, 0 }
  0xa9   : > { %p59_p10 = scmp.ne.s32.totalorder %s9746_s22, %s9742_s1  ;;  %p11206_p12 = scmp.eq.s32.totalorder %s9907_s3, 0 }
  0xaa   : > { %s10029_s29 = scalar_select %p44_p6, %s9750_s23, %s46_s28  }
  0xab   : > { %p55_p11 = por %p54_p9, %p53_p8  ;;  %p10033_p13 = por %p11206_p12, %p59_p10 }
  0xac   : > { %p8257_p1 = scmp.lt.s32.totalorder %s9754_s24, 2  ;;  %s663_s30 = sand.u32 1, %s9750_s23  }
  0xad   : > { %s11207_s21 = scalar_select %p10033_p13, 1, 0 }
  0xae   : > { %s7270_s11 = sshll.u32 %s663_s30, 3  ;;  %s7992_s2 = sshll.u32 %s9754_s24, 7 }
  0xaf   : > { %s11208_s20 = sld [smem:[#allocation28_spill]]  ;;  %s667_s1 = scalar_lea.vmem [#allocation2], %s7270_s11 }
  0xb0   : > { %s674_s25 = sshll.u32 %s667_s1, 4  ;;  %p10047_p5 = pnand %p8257_p1, %p55_p11  ;;  %s10045_s25 = int_to_ptr.vmem [resolvable:$true] %s674_s25 }
  0xb1   : > { %s10051_s4 = scalar_lea.sflag [#allocation3], %s663_s30 }
  0xb2   : > { %p9670_p0 = pneg %p10047_p5 }
  0xb5   : > { %s10043_s8 = scalar_lea.hbm %s11208_s20, %s7992_s2  ;;  %s9673_s11 = scalar_lea.hbm %s11208_s20, 256 }
  0xb6   : > { %s9668_s24 = scalar_lea.hbm %s10043_s8, 128  ;;  %p9674_p7 = scmp.lt.s32.totalorder %s10043_s8, %s11208_s20 }
  0xb7   : > { %p9669_p3 = scmp.ne.s32.totalorder %s10043_s8, %s9668_s24  ;;  %p9675_p6 = scmp.lt.s32.totalorder %s9673_s11, %s9668_s24 }
  0xb9   : > { %p9671_p2 = pnand %p9670_p0, %p9669_p3  ;;  %p9676_p8 = por %p9675_p6, %p9674_p7 }
  0xbb   : > { %p9672_p4 = pneg %p9671_p2 }
  0xbd   : > { %p9677_p9 = pnand %p9676_p8, %p9672_p4 }
  0xbf   : > { %9680 = shalt.err (!%p9677_p9)
}
  0xc0   : > { %s9681_s30 = scalar_lea.vmem %s10045_s25, 128  ;;  %s9777_s1 = smov [#allocation2]  }
  0xc1   : > { %p9682_p10 = scmp.ne.s32.totalorder %s10045_s25, %s9681_s30  ;;  %s9686_s27 = sshll.u32 %s9777_s1, 4  ;;  %s9687_s27 = int_to_ptr.vmem [resolvable:$false] %s9686_s27 }
  0xc2   : > { %s9688_s28 = scalar_lea.vmem %s9687_s27, 256  ;;  %p9689_p1 = scmp.lt.s32.totalorder %s10045_s25, %s9687_s27 }
  0xc3   : > { %p9684_p11 = pnand %p9682_p10, %p9670_p0  ;;  %p9690_p3 = scmp.lt.s32.totalorder %s9688_s28, %s9681_s30 }
  0xc5   : > { %p9685_p12 = pneg %p9684_p11  ;;  %p9691_p2 = por %p9690_p3, %p9689_p1 }
  0xc7   : > { %p9692_p13 = pnand %p9691_p2, %p9685_p12 }
  0xc9   : > { %9695 = shalt.err (!%p9692_p13)
}
  0xca   : > { %s11210_s24 = smov 4   ;;  %s11211_s2 = smov 64  }
  0xcb   : > { %8245 = dma.hbm_to_vmem [thread:$0]  (!%p10047_p5), %s10043_s8, 128, %s10045_s25, %s10051_s4, %s11211_s2, %s11211_s2, %s11210_s24  }
  0xcc   : > { %p11212_p0 = scmp.ne.s32.totalorder %s11200_s26, 0 }
  0xcd   : > { %s688_s11 = sand.u32 (!%p11212_p0), 1, %s9746_s22   ;;  %p11213_p13 = scmp.ne.s32.totalorder (!%p11212_p0), %s11207_s21, 0 }
  0xce   : > { %686 = sbr.rel (%p11212_p0) target bundleno = 2761 (0xac9), region = 100  ;;  %s10078_s27 = sshll.u32 (!%p11212_p0), %s688_s11, 3 }
  0xcf   : > { %s689_s15 = scalar_lea.sflag (!%p11212_p0), [#allocation3], %s688_s11  ;;  %s692_s14 = scalar_lea.vmem (!%p11212_p0), [#allocation2], %s10078_s27 }
  0xd3   : > { %9713 = dma.done.wait (%p11213_p13), %s689_s15, 128  }
  0xd4   : > { %9715 = vsyncadd (%p11213_p13), %s689_s15, 4294967168  ;;  %p11214_p4 = scmp.eq.s32.totalorder %s9907_s3, 0 }
  0xd6   : > { %9717 = dma.done.wait (%p11214_p4), [#allocation5], 5888   ;;  %p11215_p5 = pmov %p11214_p4 }
  0xd7   : > { %p11216_p7 = pmov %p11214_p4 }
  0xd8   : > { %9719 = vsyncadd (%p11215_p5), [#allocation5], 4294961408 }
  0xd9   : > { %9721 = dma.done.wait (%p11216_p7), [#allocation8], 432   ;;  %p11217_p6 = pmov %p11214_p4 }
  0xda   : > { %p11218_p8 = pmov %p11214_p4 }
  0xdb   : > { %9723 = vsyncadd (%p11217_p6), [#allocation8], 4294966864 }
  0xdc   : > { %9725 = dma.done.wait (%p11218_p8), [#allocation11], 37008   ;;  %p11219_p9 = pmov %p11214_p4 }
  0xdd   : > { %p11220_p10 = pmov %p11214_p4 }
  0xde   : > { %9727 = vsyncadd (%p11219_p9), [#allocation11], 4294930288 }
  0xdf   : > { %9729 = dma.done.wait (%p11220_p10), [#allocation14], 4704   ;;  %p11221_p11 = pmov %p11214_p4 }
  0xe0   : > { %p11222_p12 = pmov %p11214_p4 }
  0xe1   : > { %9731 = vsyncadd (%p11221_p11), [#allocation14], 4294962592 }
  0xe2   : > { %9733 = dma.done.wait (%p11222_p12), [#allocation17], 6192   ;;  %p11223_p1 = pmov %p11214_p4 }
  0xe4   : > { %9735 = vsyncadd (%p11223_p1), [#allocation17], 4294961104  ;;  %p11224_p3 = pmov %p11223_p1 }
  0xe5   : > { %p11225_p2 = pmov %p11223_p1 }
  0xe6   : > { %9737 = dma.done.wait (%p11224_p3), [#allocation20], 16  }
  0xe7   : > { %9739 = vsyncadd (%p11225_p2), [#allocation20], 4294967280  ;;  %v9778_v0 = vmov 0   ;;  %v8327_v1 = vld [vmem:[#allocation6 + $0xf4] ss:$60 sps:$4 sm:$0xff]   ;;  %vm1161_vm0 = vcmask 392192  }
  0xe8   : > { %1197 = vmatprep.mubr.bf16.mxu0 %v9778_v0  ;;  %1240 = vmatprep.mubr.bf16.mxu1 %v9778_v0  ;;  %v8329_v2 = vld [vmem:[#allocation6 + $0xfc] ss:$60 sps:$4 sm:$0xff]   ;;  %v8331_v3 = vld [vmem:[#allocation6 + $0xf0] ss:$60 sps:$4 sm:$0xff]   ;;  %v8335_v6 = vld [vmem:[#allocation6 + $0x84] ss:$60 sps:$4 sm:$0xff]  }
  0xe9   : > { %8325 = vset.pattern.permute.xlu0 %v9778_v0  ;;  %8326 = vset.pattern.permute.xlu1 %v9778_v0  ;;  %v8332_v4 = vld [vmem:[#allocation6 + $0xf8] ss:$60 sps:$4 sm:$0xff]   ;;  %v8338_v8 = vld [vmem:[#allocation6 + $0x80] ss:$60 sps:$4 sm:$0xff]   ;;  %v8341_v10 = vld [vmem:[#allocation6 + $0xc] ss:$60 sps:$4 sm:$0xff]  }
  0xea   : > { %1175 = vmatprep.subr.bf16.mxu0 %v8327_v1  ;;  %1218 = vmatprep.subr.bf16.mxu1 %v8329_v2  ;;  %v8333_v5 = vld [vmem:[#allocation6 + $0x7c] ss:$60 sps:$4 sm:$0xff]   ;;  %v8339_v9 = vld [vmem:[#allocation6 + $0x4] ss:$60 sps:$4 sm:$0xff]   ;;  %v10115_v14 = vld [vmem:[%s692_s14] sm:$0xff]   ;;  %v9779_v43 = vmov 0.0  }
  0xeb   : > { %1176 = vmatpush1.bf16.msra.mxu0 %v8331_v3  ;;  %1219 = vmatpush1.bf16.msra.mxu1 %v8332_v4  ;;  %v8337_v7 = vld [vmem:[#allocation6 + $0x78] ss:$60 sps:$4 sm:$0xff]   ;;  %v8343_v11 = vld [vmem:[#allocation6] ss:$60 sps:$4 sm:$0xff]   ;;  %v8344_v12 = vld [vmem:[#allocation6 + $0x8] ss:$60 sps:$4 sm:$0xff]  }
  0xec   : > { %1177 = vmatprep.subr.bf16.mxu0 %v8333_v5  ;;  %1220 = vmatprep.subr.bf16.mxu1 %v8335_v6  ;;  %v8348_v13 = vld [vmem:[#allocation6 + $0x104] ss:$60 sps:$4 sm:$0xff]   ;;  %v8351_v15 = vld [vmem:[#allocation6 + $0x10c] ss:$60 sps:$4 sm:$0xff]   ;;  %v8357_v19 = vld [vmem:[#allocation6 + $0x94] ss:$60 sps:$4 sm:$0xff]  }
  0xed   : > { %v8346_v16 = vld [vmem:[#allocation6 + $0x100] ss:$60 sps:$4 sm:$0xff]   ;;  %v8349_v17 = vld [vmem:[#allocation6 + $0x108] ss:$60 sps:$4 sm:$0xff]   ;;  %v8355_v21 = vld [vmem:[#allocation6 + $0x90] ss:$60 sps:$4 sm:$0xff]  }
  0xee   : > { %v8354_v18 = vld [vmem:[#allocation6 + $0x8c] ss:$60 sps:$4 sm:$0xff]   ;;  %v8360_v22 = vld [vmem:[#allocation6 + $0x14] ss:$60 sps:$4 sm:$0xff]   ;;  %v8363_v23 = vld [vmem:[#allocation6 + $0x1c] ss:$60 sps:$4 sm:$0xff]  }
  0xef   : > { %1178 = vmatpush1.bf16.msra.mxu0 %v8337_v7  ;;  %1221 = vmatpush1.bf16.msra.mxu1 %v8338_v8  ;;  %v8352_v20 = vld [vmem:[#allocation6 + $0x88] ss:$60 sps:$4 sm:$0xff]   ;;  %v8358_v24 = vld [vmem:[#allocation6 + $0x10] ss:$60 sps:$4 sm:$0xff]   ;;  %v8361_v25 = vld [vmem:[#allocation6 + $0x18] ss:$60 sps:$4 sm:$0xff]  }
  0xf0   : > { %1179 = vmatprep.subr.bf16.mxu0 %v8339_v9  ;;  %1222 = vmatprep.subr.bf16.mxu1 %v8341_v10  ;;  %v8366_v26 = vld [vmem:[#allocation6 + $0x114] ss:$60 sps:$4 sm:$0xff]   ;;  %v8375_v27 = vld [vmem:[#allocation6 + $0x11c] ss:$60 sps:$4 sm:$0xff]   ;;  %v8378_v31 = vld [vmem:[#allocation6 + $0xa4] ss:$60 sps:$4 sm:$0xff]  }
  0xf1   : > { %v8364_v28 = vld [vmem:[#allocation6 + $0x110] ss:$60 sps:$4 sm:$0xff]   ;;  %v8369_v29 = vld [vmem:[#allocation6 + $0x9c] ss:$60 sps:$4 sm:$0xff]   ;;  %v8372_v33 = vld [vmem:[#allocation6 + $0x24] ss:$60 sps:$4 sm:$0xff]  }
  0xf2   : > { %v8373_v30 = vld [vmem:[#allocation6 + $0x118] ss:$60 sps:$4 sm:$0xff]   ;;  %v8376_v34 = vld [vmem:[#allocation6 + $0xa0] ss:$60 sps:$4 sm:$0xff]   ;;  %v8381_v35 = vld [vmem:[#allocation6 + $0x2c] ss:$60 sps:$4 sm:$0xff]  }
  0xf3   : > { %1180 = vmatpush1.bf16.msra.mxu0 %v8343_v11  ;;  %1223 = vmatpush1.bf16.msra.mxu1 %v8344_v12  ;;  %v8367_v32 = vld [vmem:[#allocation6 + $0x98] ss:$60 sps:$4 sm:$0xff]   ;;  %v8370_v36 = vld [vmem:[#allocation6 + $0x20] ss:$60 sps:$4 sm:$0xff]   ;;  %v8379_v37 = vld [vmem:[#allocation6 + $0x28] ss:$60 sps:$4 sm:$0xff]  }
  0xf4   : > { %1261 = vmatprep.subr.bf16.mxu0 %v8348_v13  ;;  %1304 = vmatprep.subr.bf16.mxu1 %v8351_v15  ;;  %v8384_v38 = vld [vmem:[#allocation6 + $0x124] ss:$60 sps:$4 sm:$0xff]   ;;  %v8387_v40 = vld [vmem:[#allocation6 + $0xac] ss:$60 sps:$4 sm:$0xff]   ;;  %v8390_v44 = vld [vmem:[#allocation6 + $0x34] ss:$60 sps:$4 sm:$0xff]  }
  0xf5   : > { %v8382_v39 = vld [vmem:[#allocation6 + $0x120] ss:$60 sps:$4 sm:$0xff]   ;;  %v8391_v41 = vld [vmem:[#allocation6 + $0x128] ss:$60 sps:$4 sm:$0xff]   ;;  %v8392_v45 = vld [vmem:[#allocation6 + $0xb0] ss:$60 sps:$4 sm:$0xff]  }
  0xf6   : > { %7334 = vmatmul.mubr.msk.bf16.vlgmr.msra.gmra.mxu0 %vm1161_vm0, %v10115_v14  ;;  %7335 = vmatmul.mubr.msk.bf16.vlgmr.msra.gmra.mxu1 %vm1161_vm0, %v10115_v14  ;;  %v8385_v42 = vld [vmem:[#allocation6 + $0xa8] ss:$60 sps:$4 sm:$0xff]   ;;  %v8388_v46 = vld [vmem:[#allocation6 + $0x30] ss:$60 sps:$4 sm:$0xff]   ;;  %vm9780_vm1 = vmmov 0   ;;  %s11226_s8 = sld [smem:[#allocation32_spill]] }
  0xf7   : > { %1262 = vmatpush1.bf16.msra.mxu0 %v8346_v16  ;;  %1305 = vmatpush1.bf16.msra.mxu1 %v8349_v17  ;;  %v8393_v48 = vld [vmem:[#allocation6 + $0x38] ss:$60 sps:$4 sm:$0xff]   ;;  %vm2220_vm2 = vcmask 130048   ;;  %s11227_s11 = sld [smem:[#allocation33_spill]]  ;;  %vm3057_vm3 = vcmask 261120   ;;  %vm6326_vm4 = vcmask 785408  }
  0xf8   : > { %1263 = vmatprep.subr.bf16.mxu0 %v8354_v18  ;;  %1306 = vmatprep.subr.bf16.mxu1 %v8357_v19  ;;  %s11228_s18 = sld [smem:[#allocation35_spill]]  ;;  %p793_p0 = scmp.lt.s32.totalorder %s9907_s3, 1  ;;  %vm7081_vm5 = vcmask 23552  }
  0xf9   : > { %1283 = vmatprep.mubr.bf16.mxu0 %v9778_v0  ;;  %1326 = vmatprep.mubr.bf16.mxu1 %v9778_v0  ;;  %s11229_s24 = sld [smem:[#allocation36_spill]] }
  0xfa   : > { %s11231_s4 = sld [smem:[#allocation34_spill]]  ;;  %s11239_s3 = smov (!%p793_p0, %s9907_s3), 1 }
  0xfb   : > { %1264 = vmatpush1.bf16.msra.mxu0 %v8352_v20  ;;  %1307 = vmatpush1.bf16.msra.mxu1 %v8355_v21  ;;  %s11232_s21 = sld [smem:[#allocation37_spill]]  ;;  %s7993_s27 = sshll.u32 %s11239_s3, 4 }
  0xfc   : > { %1265 = vmatprep.subr.bf16.mxu0 %v8360_v22  ;;  %1308 = vmatprep.subr.bf16.mxu1 %v8363_v23  ;;  %v8396_v47 = vld [vmem:[%s11226_s8 + $0x74] ss:$8 sps:$4 sm:$0xff]   ;;  %v8394_v49 = vld [vmem:[%s11226_s8 + $0x70] ss:$8 sps:$4 sm:$0xff]   ;;  %v8399_v50 = vld [vmem:[%s11226_s8 + $0x64] ss:$8 sps:$4 sm:$0xff]  }
  0xfd   : > { %v8397_v51 = vld [vmem:[%s11226_s8 + $0x60] ss:$8 sps:$4 sm:$0xff]   ;;  %v8402_v52 = vld [vmem:[%s11226_s8 + $0x54] ss:$8 sps:$4 sm:$0xff]   ;;  %v8400_v53 = vld [vmem:[%s11226_s8 + $0x50] ss:$8 sps:$4 sm:$0xff]  }
  0xfe   : > { %v8405_v54 = vld [vmem:[%s11226_s8 + $0x44] ss:$8 sps:$4 sm:$0xff]   ;;  %v8408_v55 = vld [vmem:[%s11226_s8 + $0x174] ss:$8 sps:$4 sm:$0xff]   ;;  %v8403_v56 = vld [vmem:[%s11226_s8 + $0x40] ss:$8 sps:$4 sm:$0xff]  }
  0xff   : > { %1266 = vmatpush1.bf16.msra.mxu0 %v8358_v24  ;;  %1309 = vmatpush1.bf16.msra.mxu1 %v8361_v25  ;;  %v8406_v57 = vld [vmem:[%s11226_s8 + $0x170] ss:$8 sps:$4 sm:$0xff]   ;;  %v8411_v58 = vld [vmem:[%s11226_s8 + $0x34] ss:$8 sps:$4 sm:$0xff]   ;;  %v8414_v59 = vld [vmem:[%s11226_s8 + $0x164] ss:$8 sps:$4 sm:$0xff]   ;;  %s11230_s2 = smov %s11229_s24 }
 0x100   : > { %1347 = vmatprep.subr.bf16.mxu0 %v8366_v26  ;;  %1390 = vmatprep.subr.bf16.mxu1 %v8375_v27  ;;  %v8409_v60 = vld [vmem:[%s11226_s8 + $0x30] ss:$8 sps:$4 sm:$0xff]   ;;  %v8412_v61 = vld [vmem:[%s11226_s8 + $0x160] ss:$8 sps:$4 sm:$0xff]   ;;  %v8417_v62 = vld [vmem:[%s11226_s8 + $0x24] ss:$8 sps:$4 sm:$0xff]  }
 0x101   : > { %v8420_v63 = vld [vmem:[%s11226_s8 + $0x154] ss:$8 sps:$4 sm:$0xff]   ;;  %v8415_v1 = vld [vmem:[%s11226_s8 + $0x20] ss:$8 sps:$4 sm:$0xff]   ;;  %v8418_v2 = vld [vmem:[%s11226_s8 + $0x150] ss:$8 sps:$4 sm:$0xff]  }
 0x102   : > { %7336 = vmatmul.mubr.msk.bf16.vlgmr.msra.gmra.mxu0 %vm1161_vm0, %v10115_v14  ;;  %7337 = vmatmul.mubr.msk.bf16.vlgmr.msra.gmra.mxu1 %vm1161_vm0, %v10115_v14  ;;  %v8423_v3 = vld [vmem:[%s11226_s8 + $0x14] ss:$8 sps:$4 sm:$0xff]   ;;  %v8426_v4 = vld [vmem:[%s11226_s8 + $0x144] ss:$8 sps:$4 sm:$0xff]   ;;  %v8421_v5 = vld [vmem:[%s11226_s8 + $0x10] ss:$8 sps:$4 sm:$0xff]  }
 0x103   : > { %1348 = vmatpush1.bf16.msra.mxu0 %v8364_v28  ;;  %1369 = vmatprep.mubr.bf16.mxu0 %v9778_v0  ;;  %v8424_v6 = vld [vmem:[%s11226_s8 + $0x140] ss:$8 sps:$4 sm:$0xff]   ;;  %v8429_v7 = vld [vmem:[%s11226_s8 + $0x4] ss:$8 sps:$4 sm:$0xff]   ;;  %v8432_v8 = vld [vmem:[%s11226_s8 + $0x134] ss:$8 sps:$4 sm:$0xff]  }
 0x104   : > { %1349 = vmatprep.subr.bf16.mxu0 %v8369_v29  ;;  %1391 = vmatpush1.bf16.msra.mxu1 %v8373_v30  ;;  %v8427_v9 = vld [vmem:[%s11226_s8] ss:$8 sps:$4 sm:$0xff]   ;;  %v8430_v10 = vld [vmem:[%s11226_s8 + $0x130] ss:$8 sps:$4 sm:$0xff]   ;;  %v8435_v11 = vld [vmem:[%s11226_s8 + $0xf4] ss:$8 sps:$4 sm:$0xff]  }
 0x105   : > { %1392 = vmatprep.subr.bf16.mxu1 %v8378_v31  ;;  %1412 = vmatprep.mubr.bf16.mxu1 %v9778_v0  ;;  %v8438_v12 = vld [vmem:[%s11226_s8 + $0x124] ss:$8 sps:$4 sm:$0xff]   ;;  %v8433_v13 = vld [vmem:[%s11226_s8 + $0xf0] ss:$8 sps:$4 sm:$0xff]   ;;  %v8444_v16 = vld [vmem:[%s11226_s8 + $0x114] ss:$8 sps:$4 sm:$0xff]  }
 0x106   : > { %v8441_v15 = vld [vmem:[%s11226_s8 + $0xe4] ss:$8 sps:$4 sm:$0xff]   ;;  %v8439_v17 = vld [vmem:[%s11226_s8 + $0xe0] ss:$8 sps:$4 sm:$0xff]   ;;  %v8442_v18 = vld [vmem:[%s11226_s8 + $0x110] ss:$8 sps:$4 sm:$0xff]  }
 0x107   : > { %1350 = vmatpush1.bf16.msra.mxu0 %v8367_v32  ;;  %v8447_v19 = vld [vmem:[%s11226_s8 + $0xd4] ss:$8 sps:$4 sm:$0xff]   ;;  %v8450_v20 = vld [vmem:[%s11226_s8 + $0x104] ss:$8 sps:$4 sm:$0xff]   ;;  %v8445_v21 = vld [vmem:[%s11226_s8 + $0xd0] ss:$8 sps:$4 sm:$0xff]  }
 0x108   : > { %1351 = vmatprep.subr.bf16.mxu0 %v8372_v33  ;;  %1393 = vmatpush1.bf16.msra.mxu1 %v8376_v34  ;;  %v8448_v22 = vld [vmem:[%s11226_s8 + $0x100] ss:$8 sps:$4 sm:$0xff]   ;;  %v8453_v23 = vld [vmem:[%s11226_s8 + $0xc4] ss:$8 sps:$4 sm:$0xff]   ;;  %v8456_v24 = vld [vmem:[%s11226_s8 + $0x1f4] ss:$8 sps:$4 sm:$0xff]  }
 0x109   : > { %1394 = vmatprep.subr.bf16.mxu1 %v8381_v35  ;;  %v8451_v25 = vld [vmem:[%s11226_s8 + $0xc0] ss:$8 sps:$4 sm:$0xff]   ;;  %v8454_v26 = vld [vmem:[%s11226_s8 + $0x1f0] ss:$8 sps:$4 sm:$0xff]   ;;  %v8459_v27 = vld [vmem:[%s11226_s8 + $0xb4] ss:$8 sps:$4 sm:$0xff]  }
 0x10a   : > { %v8462_v28 = vld [vmem:[%s11226_s8 + $0x1e4] ss:$8 sps:$4 sm:$0xff]   ;;  %v8457_v29 = vld [vmem:[%s11226_s8 + $0xb0] ss:$8 sps:$4 sm:$0xff]   ;;  %v8460_v30 = vld [vmem:[%s11226_s8 + $0x1e0] ss:$8 sps:$4 sm:$0xff]  }
 0x10b   : > { %1352 = vmatpush1.bf16.msra.mxu0 %v8370_v36  ;;  %v8465_v31 = vld [vmem:[%s11226_s8 + $0xa4] ss:$8 sps:$4 sm:$0xff]   ;;  %v8468_v32 = vld [vmem:[%s11226_s8 + $0x1d4] ss:$8 sps:$4 sm:$0xff]   ;;  %v8463_v33 = vld [vmem:[%s11226_s8 + $0xa0] ss:$8 sps:$4 sm:$0xff]  }
 0x10c   : > { %1395 = vmatpush1.bf16.msra.mxu1 %v8379_v37  ;;  %1433 = vmatprep.subr.bf16.mxu0 %v8384_v38  ;;  %v8466_v34 = vld [vmem:[%s11226_s8 + $0x1d0] ss:$8 sps:$4 sm:$0xff]   ;;  %v8471_v35 = vld [vmem:[%s11226_s8 + $0x94] ss:$8 sps:$4 sm:$0xff]   ;;  %v8474_v36 = vld [vmem:[%s11226_s8 + $0x1c4] ss:$8 sps:$4 sm:$0xff]  }
 0x10d   : > { %8106 = vmatprep.subr.bf16.mxu1 %v9779_v43  ;;  %v8469_v37 = vld [vmem:[%s11226_s8 + $0x90] ss:$8 sps:$4 sm:$0xff]   ;;  %v8472_v38 = vld [vmem:[%s11226_s8 + $0x1c0] ss:$8 sps:$4 sm:$0xff]   ;;  %s11233_s26 = sld [smem:[#allocation38_spill]] }
 0x10e   : > { %7338 = vmatmul.mubr.msk.bf16.vlgmr.msra.gmra.mxu0 %vm1161_vm0, %v10115_v14 }
 0x10f   : > { %1434 = vmatpush1.bf16.msra.mxu0 %v8382_v39  ;;  %7339 = vmatmul.mubr.msk.bf16.vlgmr.msra.gmra.mxu1 %vm1161_vm0, %v10115_v14  ;;  %v8477_v39 = vld [vmem:[%s11226_s8 + $0x84] ss:$8 sps:$4 sm:$0xff]  }
 0x110   : > { %1435 = vmatprep.subr.bf16.mxu0 %v8387_v40  ;;  %1455 = vmatprep.mubr.bf16.mxu0 %v9778_v0  ;;  %v8480_v40 = vld [vmem:[%s11226_s8 + $0x1b4] ss:$8 sps:$4 sm:$0xff]  }
 0x111   : > { %8107 = vmatpush3.bf16.msra.mxu1 %v8391_v41  ;;  %8112 = vmatprep.mubr.msk.bf16.mxu1 %vm9780_vm1, %v9779_v43  ;;  %v8475_v41 = vld [vmem:[%s11226_s8 + $0x80] ss:$8 sps:$4 sm:$0xff]  }
 0x112   : > { %8108 = vmatprep.subr.bf16.mxu1 %v9779_v43 }
 0x113   : > { %1436 = vmatpush1.bf16.msra.mxu0 %v8385_v42  ;;  %v8478_v42 = vld [vmem:[%s11226_s8 + $0x1b0] ss:$8 sps:$4 sm:$0xff]   ;;  %s797_s25 = scalar_lea.vmem %s11233_s26, %s7993_s27 }
 0x114   : > { %1437 = vmatprep.subr.bf16.mxu0 %v8390_v44  ;;  %v8483_v44 = vld [vmem:[%s11226_s8 + $0x1a4] ss:$8 sps:$4 sm:$0xff]  }
 0x115   : > { %8109 = vmatpush3.bf16.msra.mxu1 %v8392_v45  ;;  %v8486_v45 = vld [vmem:[%s11226_s8 + $0x274] ss:$8 sps:$4 sm:$0xff]  }
 0x116   : > { %8110 = vmatprep.subr.bf16.mxu1 %v9779_v43 }
 0x117   : > { %1438 = vmatpush1.bf16.msra.mxu0 %v8388_v46  ;;  %v8481_v46 = vld [vmem:[%s11226_s8 + $0x1a0] ss:$8 sps:$4 sm:$0xff]  }
 0x118   : > { %2082 = vmatprep.subr.bf16.mxu0 %v8396_v47  ;;  %v8489_v47 = vld [vmem:[%s11226_s8 + $0x194] ss:$8 sps:$4 sm:$0xff]  }
 0x119   : > { %8111 = vmatpush3.bf16.msra.mxu1 %v8393_v48  ;;  %v8487_v48 = vld [vmem:[%s11226_s8 + $0x190] ss:$8 sps:$4 sm:$0xff]  }
 0x11a   : > { %7340 = vmatmul.mubr.msk.bf16.vlgmr.msra.gmra.mxu0 %vm1161_vm0, %v10115_v14  ;;  %2125 = vmatprep.subr.bf16.mxu1 %v8408_v55 }
 0x11b   : > { %2083 = vmatpush1.bf16.msra.mxu0 %v8394_v49  ;;  %v8495_v49 = vld [vmem:[%s11226_s8 + $0x184] ss:$8 sps:$4 sm:$0xff]  }
 0x11c   : > { %8113 = vmatmul.mubr.msk.bf16.vlgmr.msra.gmra.mxu1 %vm1161_vm0, %v10115_v14  ;;  %2084 = vmatprep.subr.bf16.mxu0 %v8399_v50  ;;  %v8436_v14 = vld [vmem:[%s11226_s8 + $0x120] ss:$8 sps:$4 sm:$0xff]  }
 0x11d   : > { %2126 = vmatpush1.bf16.msra.mxu1 %v8406_v57  ;;  %v8493_v50 = vld [vmem:[%s11226_s8 + $0x180] ss:$8 sps:$4 sm:$0xff]  }
 0x11e   : > { %2127 = vmatprep.subr.bf16.mxu1 %v8414_v59 }
 0x11f   : > { %2085 = vmatpush1.bf16.msra.mxu0 %v8397_v51  ;;  %v853_v51 = vlaneseq }
 0x120   : > { %2086 = vmatprep.subr.bf16.mxu0 %v8402_v52 }
 0x121   : > { %2128 = vmatpush1.bf16.msra.mxu1 %v8412_v61  ;;  %v854_v52 = vshrl.u32 %v853_v51, 7 }
 0x122   : > { %2129 = vmatprep.subr.bf16.mxu1 %v8420_v63 }
 0x123   : > { %2087 = vmatpush1.bf16.msra.mxu0 %v8400_v53  ;;  %v10346_v57 = vsub.s32 0, %v854_v52  ;;  %v10350_v59 = vsub.s32 1, %v854_v52  ;;  %v10354_v61 = vsub.s32 4, %v854_v52  ;;  %v10358_v63 = vsub.s32 5, %v854_v52 }
 0x124   : > { %2088 = vmatprep.subr.bf16.mxu0 %v8405_v54 }
 0x125   : > { %2130 = vmatpush1.bf16.msra.mxu1 %v8418_v2  ;;  %v10362_v2 = vld [vmem:[#allocation7] sm:$0xff] }
 0x126   : > { %2131 = vmatprep.subr.bf16.mxu1 %v8426_v4 }
 0x127   : > { %2089 = vmatpush1.bf16.msra.mxu0 %v8403_v56 }
 0x128   : > { %2090 = vmatprep.subr.bf16.mxu0 %v8411_v58  ;;  %v10348_v58 = vsub.s32 2, %v854_v52 }
 0x129   : > { %2132 = vmatpush1.bf16.msra.mxu1 %v8424_v6 }
 0x12a   : > { %2133 = vmatprep.subr.bf16.mxu1 %v8432_v8 }
 0x12b   : > { %2091 = vmatpush1.bf16.msra.mxu0 %v8409_v60  ;;  %v10352_v60 = vsub.s32 3, %v854_v52 }
 0x12c   : > { %2092 = vmatprep.subr.bf16.mxu0 %v8417_v62  ;;  %v10356_v62 = vsub.s32 6, %v854_v52 }
 0x12d   : > { %2134 = vmatpush1.bf16.msra.mxu1 %v8430_v10 }
 0x12e   : > { %2135 = vmatprep.subr.bf16.mxu1 %v8438_v12  ;;  %v880_v6 = vrot.slane %v10362_v2, %v10356_v62 }
 0x12f   : > { %2093 = vmatpush1.bf16.msra.mxu0 %v8415_v1  ;;  %v10360_v1 = vsub.s32 7, %v854_v52 }
 0x130   : > { %2094 = vmatprep.subr.bf16.mxu0 %v8423_v3 }
 0x131   : > { %2136 = vmatpush1.bf16.msra.mxu1 %v8436_v14  ;;  %v884_v10 = vrot.slane %v10362_v2, %v10360_v1 }
 0x132   : > { %2137 = vmatprep.subr.bf16.mxu1 %v8444_v16 }
 0x133   : > { %2095 = vmatpush1.bf16.msra.mxu0 %v8421_v5  ;;  %v872_v5 = vrot.slane %v10362_v2, %v10354_v61 }
 0x134   : > { %2096 = vmatprep.subr.bf16.mxu0 %v8429_v7 }
 0x135   : > { %2138 = vmatpush1.bf16.msra.mxu1 %v8442_v18 }
 0x136   : > { %2139 = vmatprep.subr.bf16.mxu1 %v8450_v20 }
 0x137   : > { %2097 = vmatpush1.bf16.msra.mxu0 %v8427_v9  ;;  %v876_v9 = vrot.slane %v10362_v2, %v10358_v63 }
 0x138   : > { %2098 = vmatprep.subr.bf16.mxu0 %v8435_v11 }
 0x139   : > { %2140 = vmatpush1.bf16.msra.mxu1 %v8448_v22  ;;  %v10382_v22 = vld [vmem:[#allocation7 + $0x8] sm:$0xff] }
 0x13a   : > { %2141 = vmatprep.subr.bf16.mxu1 %v8456_v24 }
 0x13b   : > { %2099 = vmatpush2.bf16.msra.mxu0 %v8433_v13 }
 0x13c   : > { %2100 = vmatprep.subr.bf16.mxu0 %v8441_v15 }
 0x13d   : > { %2142 = vmatpush2.bf16.msra.mxu1 %v8454_v26 }
 0x13e   : > { %2143 = vmatprep.subr.bf16.mxu1 %v8462_v28 }
 0x13f   : > { %2101 = vmatpush2.bf16.msra.mxu0 %v8439_v17 }
 0x140   : > { %2102 = vmatprep.subr.bf16.mxu0 %v8447_v19 }
 0x141   : > { %2144 = vmatpush2.bf16.msra.mxu1 %v8460_v30 }
 0x142   : > { %2145 = vmatprep.subr.bf16.mxu1 %v8468_v32 }
 0x143   : > { %2103 = vmatpush2.bf16.msra.mxu0 %v8445_v21 }
 0x144   : > { %2104 = vmatprep.subr.bf16.mxu0 %v8453_v23 }
 0x145   : > { %2146 = vmatpush2.bf16.msra.mxu1 %v8466_v34  ;;  %v888_v34 = vrot.slane %v10382_v22, %v10346_v57 }
 0x146   : > { %2147 = vmatprep.subr.bf16.mxu1 %v8474_v36 }
 0x147   : > { %2105 = vmatpush2.bf16.msra.mxu0 %v8451_v25 }
 0x148   : > { %2106 = vmatprep.subr.bf16.mxu0 %v8459_v27 }
 0x149   : > { %2148 = vmatpush2.bf16.msra.mxu1 %v8472_v38 }
 0x14a   : > { %2149 = vmatprep.subr.bf16.mxu1 %v8480_v40 }
 0x14b   : > { %2107 = vmatpush2.bf16.msra.mxu0 %v8457_v29 }
 0x14c   : > { %2108 = vmatprep.subr.bf16.mxu0 %v8465_v31 }
 0x14d   : > { %2150 = vmatpush2.bf16.msra.mxu1 %v8478_v42 }
 0x14e   : > { %2151 = vmatprep.subr.bf16.mxu1 %v8483_v44 }
 0x14f   : > { %2109 = vmatpush2.bf16.msra.mxu0 %v8463_v33 }
 0x150   : > { %2110 = vmatprep.subr.bf16.mxu0 %v8471_v35  ;;  %v892_v35 = vrot.slane %v10382_v22, %v10350_v59 }
 0x151   : > { %2152 = vmatpush2.bf16.msra.mxu1 %v8481_v46 }
 0x152   : > { %2153 = vmatprep.subr.bf16.mxu1 %v8489_v47 }
 0x153   : > { %2111 = vmatpush2.bf16.msra.mxu0 %v8469_v37 }
 0x154   : > { %2112 = vmatprep.subr.bf16.mxu0 %v8477_v39 }
 0x155   : > { %2154 = vmatpush2.bf16.msra.mxu1 %v8487_v48 }
 0x156   : > { %2155 = vmatprep.subr.bf16.mxu1 %v8495_v49 }
 0x157   : > { %2113 = vmatpush2.bf16.msra.mxu0 %v8475_v41 }
 0x158   : > { %2168 = vmatprep.subr.bf16.mxu0 %v8486_v45 }
 0x159   : > { %2156 = vmatpush2.bf16.msra.mxu1 %v8493_v50 }
 0x1b6   : > { %v10338_v53 = vpop.f32.mrf.mxu0  ;;  %v10340_v54 = vpop.f32.mrf.mxu1 }
 0x1b8   : > { %v10342_v55 = vpop.f32.mrf.mxu0  ;;  %v10344_v56 = vpop.f32.mrf.mxu1 }
 0x1ba   : > { %v10364_v3 = vpop.f32.mrf.mxu0  ;;  %v10366_v4 = vpop.f32.mrf.mxu1 }
 0x1bc   : > { %v10372_v7 = vpop.f32.mrf.mxu0  ;;  %v10374_v8 = vpop.f32.mrf.mxu1 }
 0x1c2   : > { %v1285_v11 = vpop.f32.mrf.mxu0  ;;  %v1328_v12 = vpop.f32.mrf.mxu1 }
 0x1c3   : > { %v10380_v13 = vadd.f32 %v1285_v11, %v872_v5  ;;  %v1329_v14 = vadd.f32 %v1328_v12, %v880_v6 }
 0x1c4   : > { %v1287_v15 = vpop.f32.mrf.mxu0  ;;  %v1330_v16 = vpop.f32.mrf.mxu1 }
 0x1c5   : > { %v7343_v17 = vmul.f32 -1.442695, %v1329_v14  ;;  %v1288_v18 = vadd.f32 %v1287_v15, %v876_v9  ;;  %v1331_v19 = vadd.f32 %v1330_v16, %v884_v10 }
 0x1c6   : > { %v1289_v20 = vpop.f32.mrf.mxu0  ;;  %v1332_v21 = vpop.f32.mrf.mxu1 }
 0x1c7   : > { %9261 = vpow2.f32 %v7343_v17  ;;  %v7342_v23 = vmul.f32 -1.442695, %v1288_v18  ;;  %v7344_v24 = vmul.f32 -1.442695, %v1331_v19  ;;  %v10384_v25 = vadd.f32 %v1289_v20, %v872_v5 }
 0x1c8   : > { %v1333_v26 = vadd.f32 %v1332_v21, %v880_v6  ;;  %v1291_v27 = vpop.f32.mrf.mxu0  ;;  %v1334_v28 = vpop.f32.mrf.mxu1 }
 0x1c9   : > { %9263 = vpow2.f32 %v7342_v23  ;;  %v1292_v29 = vadd.f32 %v1291_v27, %v876_v9  ;;  %v1335_v30 = vadd.f32 %v1334_v28, %v884_v10  ;;  %v856_v27 = vrot.slane %v10362_v2, %v10346_v57 }
 0x1ca   : > { %9265 = vpow2.f32 %v7344_v24  ;;  %v7348_v31 = vmul.f32 -1.442695, %v1333_v26  ;;  %v860_v24 = vrot.slane %v10362_v2, %v10350_v59 }
 0x1cb   : > { %v7347_v32 = vmul.f32 -1.442695, %v1292_v29  ;;  %v7349_v33 = vmul.f32 -1.442695, %v1335_v30  ;;  %v900_v30 = vrot.slane %v10382_v22, %v10352_v60 }
 0x1cc   : > { %9267 = vpow2.f32 %v7348_v31 }
 0x1cd   : > { %9269 = vpow2.f32 %v7347_v32 }
 0x1ce   : > { %9271 = vpow2.f32 %v7349_v33  ;;  %v1371_v36 = vpop.f32.mrf.mxu0 }
 0x1cf   : > { %v1372_v37 = vadd.f32 %v1371_v36, %v888_v34  ;;  %v10390_v38 = vpop.f32.mrf.mxu1  ;;  %v1200_v36 = vadd.f32 %v10338_v53, %v856_v27 }
 0x1d0   : > { %v1373_v39 = vpop.f32.mrf.mxu0 }
 0x1d1   : > { %v7345_v40 = vmul.f32 -1.442695, %v1372_v37  ;;  %v1374_v41 = vadd.f32 %v1373_v39, %v892_v35  ;;  %v1416_v44 = vpop.f32.mrf.mxu1  ;;  %v896_v37 = vrot.slane %v10382_v22, %v10348_v58 }
 0x1d2   : > { %v1375_v42 = vpop.f32.mrf.mxu0 }
 0x1d3   : > { %9273 = vpow2.f32 %v7345_v40  ;;  %v7346_v45 = vmul.f32 -1.442695, %v1374_v41  ;;  %v1376_v46 = vadd.f32 %v1375_v42, %v888_v34  ;;  %v1418_v5 = vpop.f32.mrf.mxu1  ;;  %v1202_v34 = vadd.f32 %v10342_v55, %v860_v24 }
 0x1d4   : > { %v9262_v47 = vpop.eup %9261  ;;  %v1377_v48 = vpop.f32.mrf.mxu0  ;;  %v1417_v42 = vadd.f32 %v1416_v44, %v900_v30  ;;  %v1204_v55 = vadd.f32 %v10364_v3, %v856_v27  ;;  %v1415_v53 = vadd.f32 %v10390_v38, %v896_v37  ;;  %v908_v38 = vrot.slane %v10382_v22, %v10358_v63 }
 0x1d5   : > { %v1538_v49 = vadd.f32 1.0, %v9262_v47  ;;  %9275 = vpow2.f32 %v7346_v45  ;;  %v7350_v50 = vmul.f32 -1.442695, %v1376_v46  ;;  %v1378_v51 = vadd.f32 %v1377_v48, %v892_v35  ;;  %v1420_v16 = vpop.f32.mrf.mxu1 }
 0x1d6   : > { %v9264_v52 = vpop.eup %9263  ;;  %v1206_v48 = vadd.f32 %v10372_v7, %v860_v24  ;;  %v864_v7 = vrot.slane %v10362_v2, %v10348_v58 }
 0x1d7   : > { %v9266_v6 = vpop.eup %9265  ;;  %9277 = vrcp.f32 %v1538_v49  ;;  %v1537_v9 = vadd.f32 1.0, %v9264_v52  ;;  %v7351_v10 = vmul.f32 -1.442695, %v1378_v51 }
 0x1d8   : > { %v1539_v11 = vadd.f32 1.0, %v9266_v6  ;;  %9279 = vpow2.f32 %v7350_v50  ;;  %v868_v6 = vrot.slane %v10362_v2, %v10352_v60 }
 0x1d9   : > { %v9268_v12 = vpop.eup %9267  ;;  %9281 = vrcp.f32 %v1537_v9 }
 0x1da   : > { %v9270_v14 = vpop.eup %9269  ;;  %v1543_v15 = vadd.f32 1.0, %v9268_v12  ;;  %9283 = vpow2.f32 %v7351_v10  ;;  %v1457_v39 = vpop.f32.mrf.mxu0  ;;  %v1421_v10 = vadd.f32 %v1420_v16, %v900_v30  ;;  %v1419_v12 = vadd.f32 %v1418_v5, %v896_v37  ;;  %v8484_v5 = vld [vmem:[%s11226_s8 + $0x270] ss:$8 sps:$4 sm:$0xff]  }
 0x1db   : > { %v9272_v17 = vpop.eup %9271  ;;  %v1542_v18 = vadd.f32 1.0, %v9270_v14  ;;  %v904_v16 = vrot.slane %v10382_v22, %v10354_v61  ;;  %v1245_v2 = vadd.f32 %v10344_v56, %v868_v6 }
 0x1dc   : > { %9285 = vrcp.f32 %v1543_v15  ;;  %v1544_v19 = vadd.f32 1.0, %v9272_v17  ;;  %v10392_v20 = vpop.f32.mrf.mxu1  ;;  %v1459_v51 = vpop.f32.mrf.mxu0 }
 0x1dd   : > { %9287 = vrcp.f32 %v1542_v18 }
 0x1de   : > { %v8114_v21 = vpop.f32.mrf.mxu1  ;;  %9289 = vrcp.f32 %v1544_v19  ;;  %v1461_v18 = vpop.f32.mrf.mxu0  ;;  %v1247_v19 = vadd.f32 %v10366_v4, %v864_v7  ;;  %v8492_v4 = vld [vmem:[%s11226_s8 + $0x264] ss:$8 sps:$4 sm:$0xff]  }
 0x1df   : > { %9291 = vrcp.f32 %v1539_v11 }
 0x1e0   : > { %v9274_v23 = vpop.eup %9273  ;;  %v10396_v26 = vpop.f32.mrf.mxu1 }
 0x1e1   : > { %v1540_v28 = vadd.f32 1.0, %v9274_v23 }
 0x1e2   : > { %v9276_v29 = vpop.eup %9275  ;;  %v8115_v31 = vpop.f32.mrf.mxu1 }
 0x1e3   : > { %9293 = vrcp.f32 %v1540_v28  ;;  %v1541_v32 = vadd.f32 1.0, %v9276_v29  ;;  %v912_v29 = vrot.slane %v10382_v22, %v10356_v62  ;;  %v1462_v31 = vadd.f32 %v1461_v18, %v904_v16  ;;  %v8490_v22 = vld [vmem:[%s11226_s8 + $0x260] ss:$8 sps:$4 sm:$0xff]  }
 0x1e4   : > { %v9278_v33 = vpop.eup %9277 }
 0x1e5   : > { %v9280_v35 = vpop.eup %9279  ;;  %9295 = vrcp.f32 %v1541_v32  ;;  %v1568_v45 = vadd.f32 %v9278_v33, %v1202_v34  ;;  %v1243_v34 = vadd.f32 %v10340_v54, %v864_v7  ;;  %v8498_v54 = vld [vmem:[%s11226_s8 + $0x254] ss:$8 sps:$4 sm:$0xff]  }
 0x1e6   : > { %v9282_v40 = vpop.eup %9281  ;;  %v1545_v41 = vadd.f32 1.0, %v9280_v35  ;;  %v8504_v7 = vld [vmem:[%s11226_s8 + $0x234] ss:$8 sps:$4 sm:$0xff]  }
 0x1e7   : > { %v1567_v46 = vadd.f32 %v9282_v40, %v1200_v36  ;;  %v9284_v47 = vpop.eup %9283  ;;  %v1578_v9 = vadd.f32 %v1568_v45, %v1417_v42  ;;  %v1460_v36 = vadd.f32 %v1459_v51, %v908_v38  ;;  %v1463_v40 = vpop.f32.mrf.mxu0  ;;  %v1458_v42 = vadd.f32 %v1457_v39, %v904_v16  ;;  %v8501_v51 = vld [vmem:[%s11226_s8 + $0x244] ss:$8 sps:$4 sm:$0xff]   ;;  %v8508_v16 = vld [vmem:[%s11226_s8 + $0x210] ss:$8 sps:$4 sm:$0xff]  }
 0x1e8   : > { %9297 = vrcp.f32 %v1545_v41  ;;  %v1546_v50 = vadd.f32 1.0, %v9284_v47  ;;  %v1249_v41 = vadd.f32 %v10374_v8, %v868_v6 }
 0x1e9   : > { %v9286_v49 = vpop.eup %9285  ;;  %v1577_v11 = vadd.f32 %v1567_v46, %v1415_v53  ;;  %v1588_v21 = vmax.f32 %v1578_v9, 0.0  ;;  %v1501_v46 = vadd.f32 %v10392_v20, %v912_v29  ;;  %v8496_v20 = vld [vmem:[%s11226_s8 + $0x250] ss:$8 sps:$4 sm:$0xff]   ;;  %v1504_v53 = vadd.f32 %v10396_v26, %v912_v29 }
 0x1ea   : > { %v9288_v52 = vpop.eup %9287  ;;  %v1573_v44 = vadd.f32 %v9286_v49, %v1206_v48  ;;  %9299 = vrcp.f32 %v1546_v50  ;;  %v1464_v49 = vadd.f32 %v1463_v40, %v908_v38  ;;  %v8524_v29 = vld [vmem:[%s11161_s5 + $0x248] ss:$48 sps:$4 sm:$0xff]  }
 0x1eb   : > { %v1572_v14 = vadd.f32 %v9288_v52, %v1204_v55  ;;  %v9290_v3 = vpop.eup %9289  ;;  %v1587_v27 = vmax.f32 %v1577_v11, 0.0  ;;  %v8554_v40 = vld [vmem:[%s11161_s5 + $0x68] ss:$48 sps:$4 sm:$0xff]  }
 0x1ec   : > { %v1583_v15 = vadd.f32 %v1573_v44, %v1421_v10  ;;  %v9292_v24 = vpop.eup %9291  ;;  %v1574_v32 = vadd.f32 %v9290_v3, %v1247_v19  ;;  %v8507_v19 = vld [vmem:[%s11226_s8 + $0x224] ss:$8 sps:$4 sm:$0xff]  }
 0x1ed   : > { %v1582_v17 = vadd.f32 %v1572_v14, %v1419_v12  ;;  %v1569_v45 = vadd.f32 %v9292_v24, %v1243_v34  ;;  %v8499_v12 = vld [vmem:[%s11226_s8 + $0x240] ss:$8 sps:$4 sm:$0xff]  }
 0x1ee   : > { %v1593_v23 = vmax.f32 %v1583_v15, 0.0  ;;  %v1584_v47 = vadd.f32 %v1574_v32, %v1462_v31  ;;  %v8511_v24 = vld [vmem:[%s11226_s8 + $0x200] ss:$8 sps:$4 sm:$0xff]   ;;  %v8538_v31 = vld [vmem:[%s11161_s5 + $0x18c] ss:$48 sps:$4 sm:$0xff]  }
 0x1ef   : > { %v1592_v28 = vmax.f32 %v1582_v17, 0.0  ;;  %v1579_v39 = vadd.f32 %v1569_v45, %v1458_v42  ;;  %v8536_v32 = vld [vmem:[%s11161_s5 + $0x188] ss:$48 sps:$4 sm:$0xff]  }
 0x1f0   : > { %v9294_v30 = vpop.eup %9293  ;;  %v1598_v33 = vpack.c.bf16 %v1593_v23, %v1588_v21  ;;  %v1594_v52 = vmax.f32 %v1584_v47, 0.0  ;;  %v8505_v21 = vld [vmem:[%s11226_s8 + $0x220] ss:$8 sps:$4 sm:$0xff]   ;;  %v8510_v23 = vld [vmem:[%s11226_s8 + $0x214] ss:$8 sps:$4 sm:$0xff]  }
 0x1f1   : > { %v1597_v35 = vpack.c.bf16 %v1592_v28, %v1587_v27  ;;  %v1570_v37 = vadd.f32 %v9294_v30, %v1245_v2  ;;  %v1589_v14 = vmax.f32 %v1579_v39, 0.0  ;;  %v8518_v2 = vld [vmem:[%s11161_s5 + $0x2a8] ss:$48 sps:$4 sm:$0xff]   ;;  %v8520_v27 = vld [vmem:[%s11161_s5 + $0x2ac] ss:$48 sps:$4 sm:$0xff]  }
 0x1f2   : > { %v9296_v56 = vpop.eup %9295  ;;  %2114 = vmatprep.mubr.bf16.mxu0 %v1598_v33  ;;  %v8526_v28 = vld [vmem:[%s11161_s5 + $0x24c] ss:$48 sps:$4 sm:$0xff]   ;;  %v8530_v30 = vld [vmem:[%s11161_s5 + $0x1e8] ss:$48 sps:$4 sm:$0xff]  }
 0x1f3   : > { %2115 = vmatmul.mubr.bf16.vlgmr.msra.gmra.mxu0 %v1597_v35  ;;  %v1571_v48 = vadd.f32 %v9296_v56, %v10380_v13  ;;  %v1580_v50 = vadd.f32 %v1570_v37, %v1460_v36  ;;  %v1599_v17 = vpack.c.bf16 %v1594_v52, %v1589_v14  ;;  %v8544_v33 = vld [vmem:[%s11161_s5 + $0x12c] ss:$48 sps:$4 sm:$0xff]   ;;  %v8542_v34 = vld [vmem:[%s11161_s5 + $0x128] ss:$48 sps:$4 sm:$0xff]   ;;  %v8514_v14 = vld [vmem:[#allocation4] sm:$0xff]  }
 0x1f4   : > { %2169 = vmatpush1.bf16.msra.mxu0 %v8484_v5  ;;  %2200 = vmatprep.mubr.bf16.mxu0 %v9778_v0  ;;  %v8513_v5 = vld [vmem:[%s11226_s8 + $0x204] ss:$8 sps:$4 sm:$0xff]   ;;  %v8548_v36 = vld [vmem:[%s11161_s5 + $0xc8] ss:$48 sps:$4 sm:$0xff]  }
 0x1f5   : > { %v9298_v55 = vpop.eup %9297  ;;  %2170 = vmatprep.subr.bf16.mxu0 %v8492_v4  ;;  %v1581_v6 = vadd.f32 %v1571_v48, %v1501_v46  ;;  %v1590_v10 = vmax.f32 %v1580_v50, 0.0  ;;  %v8532_v4 = vld [vmem:[%s11161_s5 + $0x1ec] ss:$48 sps:$4 sm:$0xff]  }
 0x1f6   : > { %v1575_v8 = vadd.f32 %v9298_v55, %v1249_v41  ;;  %v8550_v35 = vld [vmem:[%s11161_s5 + $0xcc] ss:$48 sps:$4 sm:$0xff]  }
 0x1f7   : > { %v9300_v13 = vpop.eup %9299  ;;  %v1591_v15 = vmax.f32 %v1581_v6, 0.0  ;;  %v8556_v37 = vld [vmem:[%s11161_s5 + $0x6c] ss:$48 sps:$4 sm:$0xff]  }
 0x1f8   : > { %v1585_v9 = vadd.f32 %v1575_v8, %v1464_v49  ;;  %2171 = vmatpush1.bf16.msra.mxu0 %v8490_v22  ;;  %v1576_v44 = vadd.f32 %v9300_v13, %v10384_v25  ;;  %v8502_v25 = vld [vmem:[%s11226_s8 + $0x230] ss:$8 sps:$4 sm:$0xff]   ;;  %v8562_v56 = vld [vmem:[%s11161_s5 + $0xc] ss:$48 sps:$4 sm:$0xff]  }
 0x1f9   : > { %2172 = vmatprep.subr.bf16.mxu0 %v8498_v54  ;;  %v8560_v22 = vld [vmem:[%s11161_s5 + $0x8] ss:$48 sps:$4 sm:$0xff]  }
 0x1fa   : > { %v1595_v11 = vmax.f32 %v1585_v9, 0.0  ;;  %v1586_v26 = vadd.f32 %v1576_v44, %v1504_v53 }
 0x1fc   : > { %2173 = vmatpush1.bf16.msra.mxu0 %v8496_v20  ;;  %v1600_v3 = vpack.c.bf16 %v1595_v11, %v1590_v10  ;;  %v1596_v38 = vmax.f32 %v1586_v26, 0.0  ;;  %v8517_v11 = vld [vmem:[%s11161_s5 + $0x2a4] ss:$48 sps:$4 sm:$0xff]   ;;  %v8515_v26 = vld [vmem:[%s11161_s5 + $0x2a0] ss:$48 sps:$4 sm:$0xff]  }
 0x1fd   : > { %2174 = vmatprep.subr.bf16.mxu0 %v8501_v51 }
 0x1fe   : > { %2157 = vmatprep.mubr.bf16.mxu1 %v1600_v3  ;;  %v1601_v18 = vpack.c.bf16 %v1596_v38, %v1591_v15  ;;  %v8521_v15 = vld [vmem:[%s11161_s5 + $0x240] ss:$48 sps:$4 sm:$0xff]   ;;  %v8529_v3 = vld [vmem:[%s11161_s5 + $0x1e4] ss:$48 sps:$4 sm:$0xff]  }
 0x1ff   : > { %2158 = vmatmul.mubr.bf16.vlgmr.msra.gmra.mxu1 %v1599_v17  ;;  %v8527_v17 = vld [vmem:[%s11161_s5 + $0x1e0] ss:$48 sps:$4 sm:$0xff]   ;;  %v8535_v38 = vld [vmem:[%s11161_s5 + $0x184] ss:$48 sps:$4 sm:$0xff]  }
 0x200   : > { %2175 = vmatpush1.bf16.msra.mxu0 %v8499_v12  ;;  %2256 = vmatprep.mubr.bf16.mxu1 %v9778_v0 }
 0x201   : > { %2176 = vmatprep.subr.bf16.mxu0 %v8504_v7  ;;  %v8523_v7 = vld [vmem:[%s11161_s5 + $0x244] ss:$48 sps:$4 sm:$0xff]  }
 0x204   : > { %2177 = vmatpush1.bf16.msra.mxu0 %v8502_v25  ;;  %v8533_v25 = vld [vmem:[%s11161_s5 + $0x180] ss:$48 sps:$4 sm:$0xff]  }
 0x205   : > { %2178 = vmatprep.subr.bf16.mxu0 %v8507_v19  ;;  %v8539_v19 = vld [vmem:[%s11161_s5 + $0x120] ss:$48 sps:$4 sm:$0xff]  }
 0x208   : > { %2179 = vmatpush1.bf16.msra.mxu0 %v8505_v21  ;;  %v8547_v21 = vld [vmem:[%s11161_s5 + $0xc4] ss:$48 sps:$4 sm:$0xff]  }
 0x209   : > { %2180 = vmatprep.subr.bf16.mxu0 %v8510_v23  ;;  %v8545_v23 = vld [vmem:[%s11161_s5 + $0xc0] ss:$48 sps:$4 sm:$0xff]  }
 0x20c   : > { %2181 = vmatpush1.bf16.msra.mxu0 %v8508_v16  ;;  %v8553_v16 = vld [vmem:[%s11161_s5 + $0x64] ss:$48 sps:$4 sm:$0xff]  }
 0x20d   : > { %2182 = vmatprep.subr.bf16.mxu0 %v8513_v5  ;;  %v8551_v5 = vld [vmem:[%s11161_s5 + $0x60] ss:$48 sps:$4 sm:$0xff]  }
 0x210   : > { %2183 = vmatpush1.bf16.msra.mxu0 %v8511_v24  ;;  %v8559_v24 = vld [vmem:[%s11161_s5 + $0x4] ss:$48 sps:$4 sm:$0xff]  }
 0x211   : > { %3104 = vmatprep.subr.bf16.mxu0 %v8520_v27  ;;  %v8565_v27 = vld [vmem:[%s11161_s5 + $0x364] ss:$48 sps:$4 sm:$0xff]  }
 0x213   : > { %2201 = vmatmul.mubr.bf16.vlgmr.msra.gmra.mxu0 %v1601_v18  ;;  %v8541_v18 = vld [vmem:[%s11161_s5 + $0x124] ss:$48 sps:$4 sm:$0xff]  }
 0x214   : > { %3105 = vmatpush1.bf16.msra.mxu0 %v8518_v2  ;;  %v8557_v2 = vld [vmem:[%s11161_s5] ss:$48 sps:$4 sm:$0xff]  }
 0x215   : > { %3106 = vmatprep.subr.bf16.mxu0 %v8526_v28  ;;  %v8568_v28 = vld [vmem:[%s11161_s5 + $0x36c] ss:$48 sps:$4 sm:$0xff]  }
 0x218   : > { %3107 = vmatpush1.bf16.msra.mxu0 %v8524_v29  ;;  %v8563_v29 = vld [vmem:[%s11161_s5 + $0x360] ss:$48 sps:$4 sm:$0xff]  }
 0x219   : > { %3108 = vmatprep.subr.bf16.mxu0 %v8532_v4  ;;  %v8566_v4 = vld [vmem:[%s11161_s5 + $0x368] ss:$48 sps:$4 sm:$0xff]  }
 0x21c   : > { %3109 = vmatpush1.bf16.msra.mxu0 %v8530_v30  ;;  %v8571_v30 = vld [vmem:[%s11161_s5 + $0x304] ss:$48 sps:$4 sm:$0xff]  }
 0x21d   : > { %3110 = vmatprep.subr.bf16.mxu0 %v8538_v31  ;;  %v8574_v31 = vld [vmem:[%s11161_s5 + $0x30c] ss:$48 sps:$4 sm:$0xff]  }
 0x220   : > { %3111 = vmatpush1.bf16.msra.mxu0 %v8536_v32  ;;  %v8569_v32 = vld [vmem:[%s11161_s5 + $0x300] ss:$48 sps:$4 sm:$0xff]  }
 0x221   : > { %3112 = vmatprep.subr.bf16.mxu0 %v8544_v33  ;;  %v8572_v33 = vld [vmem:[%s11161_s5 + $0x308] ss:$48 sps:$4 sm:$0xff]  }
 0x224   : > { %3113 = vmatpush1.bf16.msra.mxu0 %v8542_v34  ;;  %v8577_v34 = vld [vmem:[%s11161_s5 + $0x2b4] ss:$48 sps:$4 sm:$0xff]  }
 0x225   : > { %3114 = vmatprep.subr.bf16.mxu0 %v8550_v35  ;;  %v8580_v35 = vld [vmem:[%s11161_s5 + $0x2bc] ss:$48 sps:$4 sm:$0xff]  }
 0x228   : > { %3115 = vmatpush1.bf16.msra.mxu0 %v8548_v36  ;;  %v3391_v36 = vld [vmem:[%s11163_s7] sm:$0xff] }
 0x229   : > { %3116 = vmatprep.subr.bf16.mxu0 %v8556_v37  ;;  %v3411_v37 = vld [vmem:[%s11227_s11] sm:$0xff]  ;;  %3395 = vperm.xlu0 %8325, %v3391_v36  }
 0x22a   : > { %3415 = vperm.xlu1 %8326, %v3411_v37   ;;  %v8629_v36 = vld [vmem:[%s11161_s5 + $0x310] ss:$48 sps:$4 sm:$0xff]   ;;  %v8632_v37 = vld [vmem:[%s11161_s5 + $0x318] ss:$48 sps:$4 sm:$0xff]  }
 0x22c   : > { %3117 = vmatpush1.bf16.msra.mxu0 %v8554_v40  ;;  %v3392_v40 = vld [vmem:[%s11163_s7 + $0x8] sm:$0xff] }
 0x22d   : > { %3118 = vmatprep.subr.bf16.mxu0 %v8562_v56  ;;  %v3412_v56 = vld [vmem:[%s11227_s11 + $0x8] sm:$0xff]  ;;  %3400 = vperm.xlu0 %8325, %v3392_v40   ;;  %v8637_v40 = vld [vmem:[%s11161_s5 + $0x2c4] ss:$48 sps:$4 sm:$0xff]  }
 0x22e   : > { %3420 = vperm.xlu1 %8326, %v3412_v56   ;;  %v8640_v56 = vld [vmem:[%s11161_s5 + $0x2cc] ss:$48 sps:$4 sm:$0xff]  }
 0x230   : > { %3119 = vmatpush1.bf16.msra.mxu0 %v8560_v22  ;;  %v6495_v22 = vld [vmem:[%s11228_s18] sm:$0xff] }
 0x231   : > { %3132 = vmatprep.subr.bf16.mxu0 %v8568_v28  ;;  %6499 = vperm.xlu0 %8325, %v6495_v22   ;;  %v8622_v28 = vld [vmem:[%s11161_s5 + $0x1c] ss:$48 sps:$4 sm:$0xff]   ;;  %v8635_v22 = vld [vmem:[%s11161_s5 + $0x2c0] ss:$48 sps:$4 sm:$0xff]  }
 0x234   : > { %3133 = vmatpush2.bf16.msra.mxu0 %v8566_v4  ;;  %v8620_v4 = vld [vmem:[%s11161_s5 + $0x18] ss:$48 sps:$4 sm:$0xff]  }
 0x235   : > { %3134 = vmatprep.subr.bf16.mxu0 %v8574_v31  ;;  %v8628_v31 = vld [vmem:[%s11161_s5 + $0x37c] ss:$48 sps:$4 sm:$0xff]  }
 0x238   : > { %3135 = vmatpush2.bf16.msra.mxu0 %v8572_v33  ;;  %v8626_v33 = vld [vmem:[%s11161_s5 + $0x378] ss:$48 sps:$4 sm:$0xff]  }
 0x239   : > { %3190 = vmatprep.subr.bf16.mxu0 %v8580_v35  ;;  %v8634_v35 = vld [vmem:[%s11161_s5 + $0x31c] ss:$48 sps:$4 sm:$0xff]  }
 0x2b3   : > { %v2116_v41 = vpop.f32.mrf.mxu0 }
 0x2b5   : > { %v2118_v42 = vpop.f32.mrf.mxu0 }
 0x2b7   : > { %v2120_v46 = vpop.f32.mrf.mxu0 }
 0x2b9   : > { %v2122_v47 = vpop.f32.mrf.mxu0 }
 0x2bf   : > { %v2159_v45 = vpop.f32.mrf.mxu1 }
 0x2c0   : > { %v2160_v51 = vadd.f32 %v2159_v45, %v2116_v41  ;;  %v6496_v41 = vld [vmem:[%s11228_s18 + $0x8] sm:$0xff] }
 0x2c1   : > { %v2161_v54 = vpop.f32.mrf.mxu1  ;;  %6504 = vperm.xlu1 %8326, %v6496_v41   ;;  %v6512_v45 = vld [vmem:[%s11230_s2 + $0x8] sm:$0xff] }
 0x2c2   : > { %v2162_v39 = vadd.f32 %v2161_v54, %v2118_v42  ;;  %v6511_v42 = vld [vmem:[%s11229_s24] sm:$0xff]  ;;  %v8638_v41 = vld [vmem:[%s11161_s5 + $0x2c8] ss:$48 sps:$4 sm:$0xff]  }
 0x2c3   : > { %v2163_v48 = vpop.f32.mrf.mxu1  ;;  %6515 = vperm.xlu0 %8325, %v6511_v42   ;;  %v8643_v42 = vld [vmem:[%s11161_s5 + $0x264] ss:$48 sps:$4 sm:$0xff]  }
 0x2c4   : > { %v2164_v8 = vadd.f32 %v2163_v48, %v2120_v46 }
 0x2c5   : > { %v2165_v55 = vpop.f32.mrf.mxu1  ;;  %6520 = vperm.xlu1 %8326, %v6512_v45   ;;  %v8646_v45 = vld [vmem:[%s11161_s5 + $0x26c] ss:$48 sps:$4 sm:$0xff]  }
 0x2c6   : > { %v2166_v53 = vadd.f32 %v2165_v55, %v2122_v47 }
 0x2d3   : > { %v2202_v49 = vpop.f32.mrf.mxu0 }
 0x2d4   : > { %v2203_v10 = vadd.f32 %v2202_v49, %v2160_v51 }
 0x2d5   : > { %v2204_v50 = vpop.f32.mrf.mxu0 }
 0x2d6   : > { %v2205_v6 = vadd.f32 %v2204_v50, %v2162_v39  ;;  %v8575_v39 = vld [vmem:[%s11161_s5 + $0x2b0] ss:$48 sps:$4 sm:$0xff]  }
 0x2d7   : > { %v2206_v20 = vpop.f32.mrf.mxu0 }
 0x2d8   : > { %v2207_v13 = vadd.f32 %v2206_v20, %v2164_v8 }
 0x2d9   : > { %v2208_v52 = vpop.f32.mrf.mxu0 }
 0x2da   : > { %v2209_v9 = vadd.f32 %v2208_v52, %v2166_v53  ;;  %v2213_v12 = vpack.c.bf16 %v2207_v13, %v2203_v10  ;;  %v8578_v53 = vld [vmem:[%s11161_s5 + $0x2b8] ss:$48 sps:$4 sm:$0xff]   ;;  %v8583_v13 = vld [vmem:[%s11161_s5 + $0x254] ss:$48 sps:$4 sm:$0xff]   ;;  %v8586_v52 = vld [vmem:[%s11161_s5 + $0x25c] ss:$48 sps:$4 sm:$0xff]  }
 0x2db   : > { %v8589_v10 = vld [vmem:[%s11161_s5 + $0x1f4] ss:$48 sps:$4 sm:$0xff]  }
 0x2dc   : > { %v2214_v44 = vpack.c.bf16 %v2209_v9, %v2205_v6  ;;  %v8581_v6 = vld [vmem:[%s11161_s5 + $0x250] ss:$48 sps:$4 sm:$0xff]   ;;  %v8584_v9 = vld [vmem:[%s11161_s5 + $0x258] ss:$48 sps:$4 sm:$0xff]  }
 0x2de   : > { %2238 = vmatprep.subr.bf16.mxu1 %v2214_v44  ;;  %v8592_v44 = vld [vmem:[%s11161_s5 + $0x1fc] ss:$48 sps:$4 sm:$0xff]  }
 0x2df   : > { %2239 = vmatpush1.bf16.msra.mxu1 %v2213_v12  ;;  %v8590_v12 = vld [vmem:[%s11161_s5 + $0x1f8] ss:$48 sps:$4 sm:$0xff]  }
 0x2e0   : > { %3061 = vmatprep.subr.bf16.mxu1 %v8517_v11  ;;  %v8587_v11 = vld [vmem:[%s11161_s5 + $0x1f0] ss:$48 sps:$4 sm:$0xff]  }
 0x2e2   : > { %7433 = vmatmul.mubr.msk.bf16.vlgmr.msra.gmra.mxu1 %vm2220_vm2, %v8514_v14  ;;  %v8595_v14 = vld [vmem:[%s11161_s5 + $0x194] ss:$48 sps:$4 sm:$0xff]  }
 0x2e3   : > { %3062 = vmatpush1.bf16.msra.mxu1 %v8515_v26  ;;  %v8598_v26 = vld [vmem:[%s11161_s5 + $0x19c] ss:$48 sps:$4 sm:$0xff]  }
 0x2e4   : > { %3063 = vmatprep.subr.bf16.mxu1 %v8523_v7  ;;  %v8593_v7 = vld [vmem:[%s11161_s5 + $0x190] ss:$48 sps:$4 sm:$0xff]  }
 0x2e7   : > { %3064 = vmatpush1.bf16.msra.mxu1 %v8521_v15  ;;  %v8596_v15 = vld [vmem:[%s11161_s5 + $0x198] ss:$48 sps:$4 sm:$0xff]  }
 0x2e8   : > { %3065 = vmatprep.subr.bf16.mxu1 %v8529_v3  ;;  %v8601_v3 = vld [vmem:[%s11161_s5 + $0x134] ss:$48 sps:$4 sm:$0xff]  }
 0x2eb   : > { %3066 = vmatpush1.bf16.msra.mxu1 %v8527_v17  ;;  %v8604_v17 = vld [vmem:[%s11161_s5 + $0x13c] ss:$48 sps:$4 sm:$0xff]  }
 0x2ec   : > { %3067 = vmatprep.subr.bf16.mxu1 %v8535_v38  ;;  %v8599_v38 = vld [vmem:[%s11161_s5 + $0x130] ss:$48 sps:$4 sm:$0xff]  }
 0x2ef   : > { %3068 = vmatpush1.bf16.msra.mxu1 %v8533_v25  ;;  %v8602_v25 = vld [vmem:[%s11161_s5 + $0x138] ss:$48 sps:$4 sm:$0xff]  }
 0x2f0   : > { %3069 = vmatprep.subr.bf16.mxu1 %v8541_v18  ;;  %v8607_v18 = vld [vmem:[%s11161_s5 + $0xd4] ss:$48 sps:$4 sm:$0xff]  }
 0x2f3   : > { %3070 = vmatpush1.bf16.msra.mxu1 %v8539_v19  ;;  %v8610_v19 = vld [vmem:[%s11161_s5 + $0xdc] ss:$48 sps:$4 sm:$0xff]  }
 0x2f4   : > { %3071 = vmatprep.subr.bf16.mxu1 %v8547_v21  ;;  %v8605_v21 = vld [vmem:[%s11161_s5 + $0xd0] ss:$48 sps:$4 sm:$0xff]  }
 0x2f7   : > { %3072 = vmatpush1.bf16.msra.mxu1 %v8545_v23  ;;  %v8608_v23 = vld [vmem:[%s11161_s5 + $0xd8] ss:$48 sps:$4 sm:$0xff]  }
 0x2f8   : > { %3073 = vmatprep.subr.bf16.mxu1 %v8553_v16  ;;  %v8613_v16 = vld [vmem:[%s11161_s5 + $0x74] ss:$48 sps:$4 sm:$0xff]  }
 0x2fb   : > { %3074 = vmatpush1.bf16.msra.mxu1 %v8551_v5  ;;  %v8616_v5 = vld [vmem:[%s11161_s5 + $0x7c] ss:$48 sps:$4 sm:$0xff]  }
 0x2fc   : > { %3075 = vmatprep.subr.bf16.mxu1 %v8559_v24  ;;  %v8611_v24 = vld [vmem:[%s11161_s5 + $0x70] ss:$48 sps:$4 sm:$0xff]  }
 0x2ff   : > { %3076 = vmatpush1.bf16.msra.mxu1 %v8557_v2  ;;  %v8614_v2 = vld [vmem:[%s11161_s5 + $0x78] ss:$48 sps:$4 sm:$0xff]  }
 0x300   : > { %3089 = vmatprep.subr.bf16.mxu1 %v8565_v27  ;;  %v8619_v27 = vld [vmem:[%s11161_s5 + $0x14] ss:$48 sps:$4 sm:$0xff]  }
 0x303   : > { %3090 = vmatpush2.bf16.msra.mxu1 %v8563_v29  ;;  %v8617_v29 = vld [vmem:[%s11161_s5 + $0x10] ss:$48 sps:$4 sm:$0xff]  }
 0x304   : > { %3091 = vmatprep.subr.bf16.mxu1 %v8571_v30  ;;  %v8625_v30 = vld [vmem:[%s11161_s5 + $0x374] ss:$48 sps:$4 sm:$0xff]  }
 0x307   : > { %3092 = vmatpush2.bf16.msra.mxu1 %v8569_v32  ;;  %v8623_v32 = vld [vmem:[%s11161_s5 + $0x370] ss:$48 sps:$4 sm:$0xff]  }
 0x308   : > { %3147 = vmatprep.subr.bf16.mxu1 %v8577_v34  ;;  %v8631_v34 = vld [vmem:[%s11161_s5 + $0x314] ss:$48 sps:$4 sm:$0xff]  }
 0x3a2   : > { %v2258_v46 = vpop.f32.mrf.mxu1 }
 0x3a3   : > { %v2267_v8 = vmax.f32 %v2258_v46, 0.0  ;;  %v8641_v46 = vld [vmem:[%s11161_s5 + $0x260] ss:$48 sps:$4 sm:$0xff]  }
 0x3a4   : > { %v2260_v54 = vpop.f32.mrf.mxu1 }
 0x3a5   : > { %v2268_v55 = vmax.f32 %v2260_v54, 0.0  ;;  %v8644_v54 = vld [vmem:[%s11161_s5 + $0x268] ss:$48 sps:$4 sm:$0xff]  }
 0x3a6   : > { %v2262_v47 = vpop.f32.mrf.mxu1 }
 0x3a7   : > { %v2269_v48 = vmax.f32 %v2262_v47, 0.0  ;;  %v8649_v47 = vld [vmem:[%s11161_s5 + $0x204] ss:$48 sps:$4 sm:$0xff]  }
 0x3a8   : > { %v2264_v49 = vpop.f32.mrf.mxu1 }
 0x3a9   : > { %v2270_v50 = vmax.f32 %v2264_v49, 0.0  ;;  %v10633_v51 = vpack.c.bf16 %v2269_v48, %v2267_v8  ;;  %v8652_v48 = vld [vmem:[%s11161_s5 + $0x20c] ss:$48 sps:$4 sm:$0xff]   ;;  %v8647_v49 = vld [vmem:[%s11161_s5 + $0x200] ss:$48 sps:$4 sm:$0xff]  }
 0x3aa   : > { %v8658_v8 = vld [vmem:[%s11161_s5 + $0x1ac] ss:$48 sps:$4 sm:$0xff]  }
 0x3ab   : > { %v10625_v20 = vpack.c.bf16 %v2270_v50, %v2268_v55  ;;  %v8650_v55 = vld [vmem:[%s11161_s5 + $0x208] ss:$48 sps:$4 sm:$0xff]   ;;  %v8655_v50 = vld [vmem:[%s11161_s5 + $0x1a4] ss:$48 sps:$4 sm:$0xff]  }
 0x3ad   : > { %7554 = vmatprep.mubr.msk.bf16.mxu1 %vm3057_vm3, %v10625_v20  ;;  %7555 = vmatprep.mubr.msk.bf16.mxu0 %vm3057_vm3, %v10625_v20 }
 0x3ae   : > { %3094 = vmatmul.mubr.bf16.vlgmr.msra.gmra.mxu1 %v10633_v51  ;;  %3137 = vmatmul.mubr.bf16.vlgmr.msra.gmra.mxu0 %v10633_v51 }
 0x3af   : > { %3148 = vmatpush1.bf16.msra.mxu1 %v8575_v39  ;;  %3191 = vmatpush1.bf16.msra.mxu0 %v8578_v53  ;;  %v8656_v39 = vld [vmem:[%s11161_s5 + $0x1a8] ss:$48 sps:$4 sm:$0xff]   ;;  %v8661_v53 = vld [vmem:[%s11161_s5 + $0x144] ss:$48 sps:$4 sm:$0xff]  }
 0x3b0   : > { %7556 = vmatprep.mubr.msk.bf16.mxu1 %vm3057_vm3, %v10625_v20  ;;  %7557 = vmatprep.mubr.msk.bf16.mxu0 %vm3057_vm3, %v10625_v20 }
 0x3b1   : > { %3149 = vmatprep.subr.bf16.mxu1 %v8583_v13  ;;  %3192 = vmatprep.subr.bf16.mxu0 %v8586_v52  ;;  %v8664_v13 = vld [vmem:[%s11161_s5 + $0x14c] ss:$48 sps:$4 sm:$0xff]   ;;  %v8659_v52 = vld [vmem:[%s11161_s5 + $0x140] ss:$48 sps:$4 sm:$0xff]  }
 0x3b3   : > { %3150 = vmatpush1.bf16.msra.mxu1 %v8581_v6  ;;  %3193 = vmatpush1.bf16.msra.mxu0 %v8584_v9  ;;  %v8662_v6 = vld [vmem:[%s11161_s5 + $0x148] ss:$48 sps:$4 sm:$0xff]   ;;  %v8667_v9 = vld [vmem:[%s11161_s5 + $0xe4] ss:$48 sps:$4 sm:$0xff]  }
 0x3b4   : > { %3151 = vmatprep.subr.bf16.mxu1 %v8589_v10  ;;  %3194 = vmatprep.subr.bf16.mxu0 %v8592_v44  ;;  %v8670_v10 = vld [vmem:[%s11161_s5 + $0xec] ss:$48 sps:$4 sm:$0xff]   ;;  %v8665_v44 = vld [vmem:[%s11161_s5 + $0xe0] ss:$48 sps:$4 sm:$0xff]  }
 0x3b7   : > { %3152 = vmatpush1.bf16.msra.mxu1 %v8587_v11  ;;  %3195 = vmatpush1.bf16.msra.mxu0 %v8590_v12  ;;  %v8668_v11 = vld [vmem:[%s11161_s5 + $0xe8] ss:$48 sps:$4 sm:$0xff]   ;;  %v8673_v12 = vld [vmem:[%s11161_s5 + $0x84] ss:$48 sps:$4 sm:$0xff]  }
 0x3b8   : > { %3153 = vmatprep.subr.bf16.mxu1 %v8595_v14  ;;  %3196 = vmatprep.subr.bf16.mxu0 %v8598_v26  ;;  %v8676_v14 = vld [vmem:[%s11161_s5 + $0x8c] ss:$48 sps:$4 sm:$0xff]   ;;  %v8671_v26 = vld [vmem:[%s11161_s5 + $0x80] ss:$48 sps:$4 sm:$0xff]  }
 0x3bb   : > { %3154 = vmatpush1.bf16.msra.mxu1 %v8593_v7  ;;  %3197 = vmatpush1.bf16.msra.mxu0 %v8596_v15  ;;  %v8674_v7 = vld [vmem:[%s11161_s5 + $0x88] ss:$48 sps:$4 sm:$0xff]   ;;  %v8679_v15 = vld [vmem:[%s11161_s5 + $0x24] ss:$48 sps:$4 sm:$0xff]  }
 0x3bc   : > { %3155 = vmatprep.subr.bf16.mxu1 %v8601_v3  ;;  %3198 = vmatprep.subr.bf16.mxu0 %v8604_v17  ;;  %v8682_v3 = vld [vmem:[%s11161_s5 + $0x2c] ss:$48 sps:$4 sm:$0xff]   ;;  %v8677_v17 = vld [vmem:[%s11161_s5 + $0x20] ss:$48 sps:$4 sm:$0xff]  }
 0x3bf   : > { %3156 = vmatpush1.bf16.msra.mxu1 %v8599_v38  ;;  %3199 = vmatpush1.bf16.msra.mxu0 %v8602_v25  ;;  %v8680_v38 = vld [vmem:[%s11161_s5 + $0x28] ss:$48 sps:$4 sm:$0xff]   ;;  %v8685_v25 = vld [vmem:[%s11161_s5 + $0x384] ss:$48 sps:$4 sm:$0xff]  }
 0x3c0   : > { %3157 = vmatprep.subr.bf16.mxu1 %v8607_v18  ;;  %3200 = vmatprep.subr.bf16.mxu0 %v8610_v19  ;;  %v8688_v18 = vld [vmem:[%s11161_s5 + $0x38c] ss:$48 sps:$4 sm:$0xff]   ;;  %v8683_v19 = vld [vmem:[%s11161_s5 + $0x380] ss:$48 sps:$4 sm:$0xff]  }
 0x3c3   : > { %3158 = vmatpush1.bf16.msra.mxu1 %v8605_v21  ;;  %3201 = vmatpush1.bf16.msra.mxu0 %v8608_v23  ;;  %v8686_v21 = vld [vmem:[%s11161_s5 + $0x388] ss:$48 sps:$4 sm:$0xff]   ;;  %v8691_v23 = vld [vmem:[%s11161_s5 + $0x324] ss:$48 sps:$4 sm:$0xff]  }
 0x3c4   : > { %3159 = vmatprep.subr.bf16.mxu1 %v8613_v16  ;;  %3202 = vmatprep.subr.bf16.mxu0 %v8616_v5  ;;  %v8694_v16 = vld [vmem:[%s11161_s5 + $0x32c] ss:$48 sps:$4 sm:$0xff]   ;;  %v8689_v5 = vld [vmem:[%s11161_s5 + $0x320] ss:$48 sps:$4 sm:$0xff]  }
 0x3c7   : > { %3160 = vmatpush1.bf16.msra.mxu1 %v8611_v24  ;;  %3203 = vmatpush1.bf16.msra.mxu0 %v8614_v2  ;;  %v8692_v24 = vld [vmem:[%s11161_s5 + $0x328] ss:$48 sps:$4 sm:$0xff]  }
 0x3c8   : > { %3161 = vmatprep.subr.bf16.mxu1 %v8619_v27  ;;  %3204 = vmatprep.subr.bf16.mxu0 %v8622_v28  ;;  %v8697_v2 = vld [vmem:[#allocation10 + $0x1fc] ss:$36 sps:$4 sm:$0xff]  }
 0x3c9   : > { %v8700_v27 = vld [vmem:[#allocation10 + $0x67c] ss:$36 sps:$4 sm:$0xff]  }
 0x3ca   : > { %v8695_v28 = vld [vmem:[#allocation10 + $0x1f8] ss:$36 sps:$4 sm:$0xff]  }
 0x3cb   : > { %3162 = vmatpush1.bf16.msra.mxu1 %v8617_v29  ;;  %3205 = vmatpush1.bf16.msra.mxu0 %v8620_v4  ;;  %v8698_v29 = vld [vmem:[#allocation10 + $0x678] ss:$36 sps:$4 sm:$0xff]  }
 0x3cc   : > { %3175 = vmatprep.subr.bf16.mxu1 %v8625_v30  ;;  %3218 = vmatprep.subr.bf16.mxu0 %v8628_v31  ;;  %v8703_v4 = vld [vmem:[#allocation10 + $0x1b4] ss:$36 sps:$4 sm:$0xff]  }
 0x3cd   : > { %v8706_v30 = vld [vmem:[#allocation10 + $0x634] ss:$36 sps:$4 sm:$0xff]  }
 0x3ce   : > { %v8701_v31 = vld [vmem:[#allocation10 + $0x1b0] ss:$36 sps:$4 sm:$0xff]  }
 0x3cf   : > { %3176 = vmatpush2.bf16.msra.mxu1 %v8623_v32  ;;  %3219 = vmatpush2.bf16.msra.mxu0 %v8626_v33  ;;  %v8704_v32 = vld [vmem:[#allocation10 + $0x630] ss:$36 sps:$4 sm:$0xff]  }
 0x3d0   : > { %3177 = vmatprep.subr.bf16.mxu1 %v8631_v34  ;;  %3220 = vmatprep.subr.bf16.mxu0 %v8634_v35  ;;  %v8709_v33 = vld [vmem:[#allocation10 + $0x16c] ss:$36 sps:$4 sm:$0xff]  }
 0x3d1   : > { %v8712_v34 = vld [vmem:[#allocation10 + $0x5ec] ss:$36 sps:$4 sm:$0xff]  }
 0x3d2   : > { %v8707_v35 = vld [vmem:[#allocation10 + $0x168] ss:$36 sps:$4 sm:$0xff]  }
 0x3d3   : > { %3178 = vmatpush2.bf16.msra.mxu1 %v8629_v36  ;;  %3221 = vmatpush2.bf16.msra.mxu0 %v8632_v37  ;;  %v8710_v36 = vld [vmem:[#allocation10 + $0x5e8] ss:$36 sps:$4 sm:$0xff]  }
 0x3d4   : > { %3233 = vmatprep.subr.bf16.mxu1 %v8637_v40  ;;  %3276 = vmatprep.subr.bf16.mxu0 %v8640_v56  ;;  %v8715_v37 = vld [vmem:[#allocation10 + $0x124] ss:$36 sps:$4 sm:$0xff]  }
 0x3d5   : > { %v8718_v40 = vld [vmem:[#allocation10 + $0x5a4] ss:$36 sps:$4 sm:$0xff]  }
 0x3d6   : > { %3180 = vmatmul.mubr.bf16.vlgmr.msra.gmra.mxu1 %v10633_v51  ;;  %3223 = vmatmul.mubr.bf16.vlgmr.msra.gmra.mxu0 %v10633_v51  ;;  %v8713_v56 = vld [vmem:[#allocation10 + $0x120] ss:$36 sps:$4 sm:$0xff]  }
 0x3d7   : > { %3234 = vmatpush1.bf16.msra.mxu1 %v8635_v22  ;;  %7558 = vmatprep.mubr.msk.bf16.mxu1 %vm3057_vm3, %v10625_v20  ;;  %v8721_v22 = vld [vmem:[#allocation10 + $0xdc] ss:$36 sps:$4 sm:$0xff]  }
 0x3d8   : > { %3277 = vmatpush1.bf16.msra.mxu0 %v8638_v41  ;;  %7559 = vmatprep.mubr.msk.bf16.mxu0 %vm3057_vm3, %v10625_v20  ;;  %v8653_v20 = vld [vmem:[%s11161_s5 + $0x1a0] ss:$48 sps:$4 sm:$0xff]   ;;  %v8724_v41 = vld [vmem:[#allocation10 + $0x55c] ss:$36 sps:$4 sm:$0xff]  }
 0x3d9   : > { %3235 = vmatprep.subr.bf16.mxu1 %v8643_v42  ;;  %3278 = vmatprep.subr.bf16.mxu0 %v8646_v45  ;;  %v8719_v42 = vld [vmem:[#allocation10 + $0xd8] ss:$36 sps:$4 sm:$0xff]  }
 0x3da   : > { %v8722_v45 = vld [vmem:[#allocation10 + $0x558] ss:$36 sps:$4 sm:$0xff]  }
 0x3db   : > { %3236 = vmatpush1.bf16.msra.mxu1 %v8641_v46  ;;  %v8727_v46 = vld [vmem:[#allocation10 + $0x94] ss:$36 sps:$4 sm:$0xff]  }
 0x3dc   : > { %3279 = vmatpush1.bf16.msra.mxu0 %v8644_v54  ;;  %3237 = vmatprep.subr.bf16.mxu1 %v8649_v47  ;;  %v8730_v54 = vld [vmem:[#allocation10 + $0x514] ss:$36 sps:$4 sm:$0xff]  }
 0x3dd   : > { %3280 = vmatprep.subr.bf16.mxu0 %v8652_v48  ;;  %v8725_v47 = vld [vmem:[#allocation10 + $0x90] ss:$36 sps:$4 sm:$0xff]  }
 0x3de   : > { %v8728_v48 = vld [vmem:[#allocation10 + $0x510] ss:$36 sps:$4 sm:$0xff]  }
 0x3df   : > { %3238 = vmatpush1.bf16.msra.mxu1 %v8647_v49  ;;  %v8733_v49 = vld [vmem:[#allocation10 + $0x4c] ss:$36 sps:$4 sm:$0xff]  }
 0x3e0   : > { %3281 = vmatpush1.bf16.msra.mxu0 %v8650_v55  ;;  %3239 = vmatprep.subr.bf16.mxu1 %v8655_v50  ;;  %v8736_v55 = vld [vmem:[#allocation10 + $0x4cc] ss:$36 sps:$4 sm:$0xff]  }
 0x3e1   : > { %3282 = vmatprep.subr.bf16.mxu0 %v8658_v8  ;;  %v8731_v50 = vld [vmem:[#allocation10 + $0x48] ss:$36 sps:$4 sm:$0xff]  }
 0x3e2   : > { %v8734_v8 = vld [vmem:[#allocation10 + $0x4c8] ss:$36 sps:$4 sm:$0xff]  }
 0x3e3   : > { %3240 = vmatpush1.bf16.msra.mxu1 %v8653_v20  ;;  %v8739_v20 = vld [vmem:[#allocation10 + $0x4] ss:$36 sps:$4 sm:$0xff]  }
 0x3e4   : > { %3283 = vmatpush1.bf16.msra.mxu0 %v8656_v39  ;;  %3241 = vmatprep.subr.bf16.mxu1 %v8661_v53  ;;  %v8742_v39 = vld [vmem:[#allocation10 + $0x484] ss:$36 sps:$4 sm:$0xff]  }
 0x3e5   : > { %3284 = vmatprep.subr.bf16.mxu0 %v8664_v13  ;;  %v8737_v53 = vld [vmem:[#allocation10] ss:$36 sps:$4 sm:$0xff]  }
 0x3e6   : > { %v8740_v13 = vld [vmem:[#allocation10 + $0x480] ss:$36 sps:$4 sm:$0xff]  }
 0x3e7   : > { %3242 = vmatpush1.bf16.msra.mxu1 %v8659_v52  ;;  %v8745_v52 = vld [vmem:[#allocation10 + $0x43c] ss:$36 sps:$4 sm:$0xff]  }
 0x3e8   : > { %3285 = vmatpush1.bf16.msra.mxu0 %v8662_v6  ;;  %3243 = vmatprep.subr.bf16.mxu1 %v8667_v9  ;;  %v8748_v6 = vld [vmem:[#allocation10 + $0x8bc] ss:$36 sps:$4 sm:$0xff]  }
 0x3e9   : > { %3286 = vmatprep.subr.bf16.mxu0 %v8670_v10  ;;  %v8743_v9 = vld [vmem:[#allocation10 + $0x438] ss:$36 sps:$4 sm:$0xff]  }
 0x3ea   : > { %v8746_v10 = vld [vmem:[#allocation10 + $0x8b8] ss:$36 sps:$4 sm:$0xff]  }
 0x3eb   : > { %3244 = vmatpush1.bf16.msra.mxu1 %v8665_v44  ;;  %v8751_v44 = vld [vmem:[#allocation10 + $0x3f4] ss:$36 sps:$4 sm:$0xff]  }
 0x3ec   : > { %3287 = vmatpush1.bf16.msra.mxu0 %v8668_v11  ;;  %3245 = vmatprep.subr.bf16.mxu1 %v8673_v12  ;;  %v8749_v11 = vld [vmem:[#allocation10 + $0x3f0] ss:$36 sps:$4 sm:$0xff]  }
 0x3ed   : > { %3288 = vmatprep.subr.bf16.mxu0 %v8676_v14  ;;  %v8752_v12 = vld [vmem:[#allocation10 + $0x870] ss:$36 sps:$4 sm:$0xff]  }
 0x3ee   : > { %v8754_v14 = vld [vmem:[#allocation10 + $0x874] ss:$36 sps:$4 sm:$0xff]  }
 0x3ef   : > { %3246 = vmatpush1.bf16.msra.mxu1 %v8671_v26  ;;  %v8757_v26 = vld [vmem:[#allocation10 + $0x3ac] ss:$36 sps:$4 sm:$0xff]  }
 0x3f0   : > { %3289 = vmatpush1.bf16.msra.mxu0 %v8674_v7  ;;  %3247 = vmatprep.subr.bf16.mxu1 %v8679_v15  ;;  %v8760_v7 = vld [vmem:[#allocation10 + $0x82c] ss:$36 sps:$4 sm:$0xff]  }
 0x3f1   : > { %3290 = vmatprep.subr.bf16.mxu0 %v8682_v3  ;;  %v8755_v15 = vld [vmem:[#allocation10 + $0x3a8] ss:$36 sps:$4 sm:$0xff]  }
 0x3f2   : > { %v8758_v3 = vld [vmem:[#allocation10 + $0x828] ss:$36 sps:$4 sm:$0xff]  }
 0x3f3   : > { %3248 = vmatpush1.bf16.msra.mxu1 %v8677_v17  ;;  %v8763_v17 = vld [vmem:[#allocation10 + $0x364] ss:$36 sps:$4 sm:$0xff]  }
 0x3f4   : > { %3291 = vmatpush1.bf16.msra.mxu0 %v8680_v38  ;;  %3261 = vmatprep.subr.bf16.mxu1 %v8685_v25  ;;  %v8766_v38 = vld [vmem:[#allocation10 + $0x7e4] ss:$36 sps:$4 sm:$0xff]  }
 0x3f5   : > { %3304 = vmatprep.subr.bf16.mxu0 %v8688_v18  ;;  %v8761_v25 = vld [vmem:[#allocation10 + $0x360] ss:$36 sps:$4 sm:$0xff]  }
 0x3f6   : > { %v8764_v18 = vld [vmem:[#allocation10 + $0x7e0] ss:$36 sps:$4 sm:$0xff]  }
 0x3f7   : > { %3262 = vmatpush2.bf16.msra.mxu1 %v8683_v19  ;;  %v8769_v19 = vld [vmem:[#allocation10 + $0x31c] ss:$36 sps:$4 sm:$0xff]  }
 0x3f8   : > { %3305 = vmatpush2.bf16.msra.mxu0 %v8686_v21  ;;  %3263 = vmatprep.subr.bf16.mxu1 %v8691_v23  ;;  %v8772_v21 = vld [vmem:[#allocation10 + $0x79c] ss:$36 sps:$4 sm:$0xff]  }
 0x3f9   : > { %3306 = vmatprep.subr.bf16.mxu0 %v8694_v16  ;;  %v8767_v23 = vld [vmem:[#allocation10 + $0x318] ss:$36 sps:$4 sm:$0xff]  }
 0x3fa   : > { %v8770_v16 = vld [vmem:[#allocation10 + $0x798] ss:$36 sps:$4 sm:$0xff]  }
 0x3fb   : > { %3264 = vmatpush2.bf16.msra.mxu1 %v8689_v5  ;;  %v8775_v5 = vld [vmem:[#allocation10 + $0x2d4] ss:$36 sps:$4 sm:$0xff]  }
 0x3fc   : > { %3307 = vmatpush2.bf16.msra.mxu0 %v8692_v24  ;;  %5276 = vmatprep.subr.bf16.mxu1 %v8697_v2  ;;  %v8778_v24 = vld [vmem:[#allocation10 + $0x754] ss:$36 sps:$4 sm:$0xff]  }
 0x3fd   : > { %5319 = vmatprep.subr.bf16.mxu0 %v8700_v27  ;;  %v8773_v2 = vld [vmem:[#allocation10 + $0x2d0] ss:$36 sps:$4 sm:$0xff]  }
 0x3fe   : > { %3266 = vmatmul.mubr.bf16.vlgmr.msra.gmra.mxu1 %v10633_v51  ;;  %v8776_v27 = vld [vmem:[#allocation10 + $0x750] ss:$36 sps:$4 sm:$0xff]  }
 0x3ff   : > { %3309 = vmatmul.mubr.bf16.vlgmr.msra.gmra.mxu0 %v10633_v51  ;;  %5277 = vmatpush1.bf16.msra.mxu1 %v8695_v28  ;;  %v8716_v51 = vld [vmem:[#allocation10 + $0x5a0] ss:$36 sps:$4 sm:$0xff]   ;;  %v8781_v28 = vld [vmem:[#allocation10 + $0x28c] ss:$36 sps:$4 sm:$0xff]  }
 0x400   : > { %5320 = vmatpush1.bf16.msra.mxu0 %v8698_v29  ;;  %5278 = vmatprep.subr.bf16.mxu1 %v8703_v4  ;;  %v8784_v29 = vld [vmem:[#allocation10 + $0x70c] ss:$36 sps:$4 sm:$0xff]  }
 0x401   : > { %5321 = vmatprep.subr.bf16.mxu0 %v8706_v30  ;;  %v8779_v4 = vld [vmem:[#allocation10 + $0x288] ss:$36 sps:$4 sm:$0xff]  }
 0x402   : > { %v8782_v30 = vld [vmem:[#allocation10 + $0x708] ss:$36 sps:$4 sm:$0xff]  }
 0x403   : > { %5279 = vmatpush1.bf16.msra.mxu1 %v8701_v31  ;;  %v8787_v31 = vld [vmem:[#allocation10 + $0x244] ss:$36 sps:$4 sm:$0xff]  }
 0x404   : > { %5322 = vmatpush1.bf16.msra.mxu0 %v8704_v32  ;;  %5280 = vmatprep.subr.bf16.mxu1 %v8709_v33  ;;  %v8790_v32 = vld [vmem:[#allocation10 + $0x6c4] ss:$36 sps:$4 sm:$0xff]  }
 0x405   : > { %5323 = vmatprep.subr.bf16.mxu0 %v8712_v34  ;;  %v8785_v33 = vld [vmem:[#allocation10 + $0x240] ss:$36 sps:$4 sm:$0xff]  }
 0x406   : > { %v8788_v34 = vld [vmem:[#allocation10 + $0x6c0] ss:$36 sps:$4 sm:$0xff]  }
 0x407   : > { %5281 = vmatpush1.bf16.msra.mxu1 %v8707_v35  ;;  %v8793_v35 = vld [vmem:[#allocation10 + $0x204] ss:$36 sps:$4 sm:$0xff]  }
 0x408   : > { %5324 = vmatpush1.bf16.msra.mxu0 %v8710_v36  ;;  %5282 = vmatprep.subr.bf16.mxu1 %v8715_v37  ;;  %v8796_v36 = vld [vmem:[#allocation10 + $0x684] ss:$36 sps:$4 sm:$0xff]  }
 0x409   : > { %5325 = vmatprep.subr.bf16.mxu0 %v8718_v40 }
 0x40b   : > { %5283 = vmatpush1.bf16.msra.mxu1 %v8713_v56 }
 0x40c   : > { %5326 = vmatpush1.bf16.msra.mxu0 %v8716_v51  ;;  %5284 = vmatprep.subr.bf16.mxu1 %v8721_v22 }
 0x40d   : > { %5327 = vmatprep.subr.bf16.mxu0 %v8724_v41 }
 0x40f   : > { %5285 = vmatpush1.bf16.msra.mxu1 %v8719_v42  ;;  %v10893_v42 = vld [vmem:[#allocation9] sm:$0xff] }
 0x410   : > { %5328 = vmatpush1.bf16.msra.mxu0 %v8722_v45  ;;  %5286 = vmatprep.subr.bf16.mxu1 %v8727_v46  ;;  %v2416_v45 = vrot.slane %v10893_v42, %v10354_v61  ;;  %v2424_v46 = vrot.slane %v10893_v42, %v10356_v62 }
 0x411   : > { %5329 = vmatprep.subr.bf16.mxu0 %v8730_v54 }
 0x413   : > { %5287 = vmatpush1.bf16.msra.mxu1 %v8725_v47 }
 0x414   : > { %5330 = vmatpush1.bf16.msra.mxu0 %v8728_v48  ;;  %5288 = vmatprep.subr.bf16.mxu1 %v8733_v49  ;;  %v2420_v48 = vrot.slane %v10893_v42, %v10358_v63  ;;  %v2428_v49 = vrot.slane %v10893_v42, %v10360_v1 }
 0x415   : > { %5331 = vmatprep.subr.bf16.mxu0 %v8736_v55 }
 0x417   : > { %5289 = vmatpush1.bf16.msra.mxu1 %v8731_v50 }
 0x418   : > { %5332 = vmatpush1.bf16.msra.mxu0 %v8734_v8  ;;  %5290 = vmatprep.subr.bf16.mxu1 %v8739_v20 }
 0x419   : > { %5333 = vmatprep.subr.bf16.mxu0 %v8742_v39 }
 0x41b   : > { %5291 = vmatpush1.bf16.msra.mxu1 %v8737_v53 }
 0x41c   : > { %5334 = vmatpush1.bf16.msra.mxu0 %v8740_v13  ;;  %5292 = vmatprep.subr.bf16.mxu1 %v8745_v52 }
 0x41d   : > { %5335 = vmatprep.subr.bf16.mxu0 %v8748_v6 }
 0x41f   : > { %5293 = vmatpush2.bf16.msra.mxu1 %v8743_v9 }
 0x420   : > { %5336 = vmatpush2.bf16.msra.mxu0 %v8746_v10  ;;  %5294 = vmatprep.subr.bf16.mxu1 %v8751_v44 }
 0x421   : > { %5337 = vmatprep.subr.bf16.mxu0 %v8754_v14 }
 0x423   : > { %5295 = vmatpush2.bf16.msra.mxu1 %v8749_v11 }
 0x424   : > { %5338 = vmatpush2.bf16.msra.mxu0 %v8752_v12  ;;  %5296 = vmatprep.subr.bf16.mxu1 %v8757_v26 }
 0x425   : > { %5339 = vmatprep.subr.bf16.mxu0 %v8760_v7 }
 0x427   : > { %5297 = vmatpush2.bf16.msra.mxu1 %v8755_v15 }
 0x428   : > { %5340 = vmatpush2.bf16.msra.mxu0 %v8758_v3  ;;  %5298 = vmatprep.subr.bf16.mxu1 %v8763_v17 }
 0x429   : > { %5341 = vmatprep.subr.bf16.mxu0 %v8766_v38 }
 0x42b   : > { %5299 = vmatpush2.bf16.msra.mxu1 %v8761_v25 }
 0x42c   : > { %5342 = vmatpush2.bf16.msra.mxu0 %v8764_v18  ;;  %5300 = vmatprep.subr.bf16.mxu1 %v8769_v19 }
 0x42d   : > { %5343 = vmatprep.subr.bf16.mxu0 %v8772_v21 }
 0x42f   : > { %5301 = vmatpush2.bf16.msra.mxu1 %v8767_v23 }
 0x430   : > { %5344 = vmatpush2.bf16.msra.mxu0 %v8770_v16  ;;  %5302 = vmatprep.subr.bf16.mxu1 %v8775_v5 }
 0x431   : > { %5345 = vmatprep.subr.bf16.mxu0 %v8778_v24 }
 0x433   : > { %5303 = vmatpush2.bf16.msra.mxu1 %v8773_v2 }
 0x434   : > { %5346 = vmatpush2.bf16.msra.mxu0 %v8776_v27  ;;  %5304 = vmatprep.subr.bf16.mxu1 %v8781_v28 }
 0x435   : > { %5347 = vmatprep.subr.bf16.mxu0 %v8784_v29 }
 0x437   : > { %5305 = vmatpush2.bf16.msra.mxu1 %v8779_v4 }
 0x438   : > { %5348 = vmatpush2.bf16.msra.mxu0 %v8782_v30  ;;  %5306 = vmatprep.subr.bf16.mxu1 %v8787_v31 }
 0x439   : > { %5349 = vmatprep.subr.bf16.mxu0 %v8790_v32 }
 0x43b   : > { %5307 = vmatpush2.bf16.msra.mxu1 %v8785_v33 }
 0x43c   : > { %5350 = vmatpush2.bf16.msra.mxu0 %v8788_v34  ;;  %5362 = vmatprep.subr.bf16.mxu1 %v8793_v35 }
 0x43d   : > { %5405 = vmatprep.subr.bf16.mxu0 %v8796_v36  ;;  %v2394_v36 = vld [vmem:[#allocation9 + $0x8] sm:$0xf] }
 0x46e   : > { %v10881_v37 = vpop.f32.mrf.mxu1  ;;  %v10883_v40 = vpop.f32.mrf.mxu0 }
 0x470   : > { %v10885_v56 = vpop.f32.mrf.mxu1  ;;  %v10887_v51 = vpop.f32.mrf.mxu0 }
 0x472   : > { %v10889_v22 = vpop.f32.mrf.mxu1  ;;  %v10891_v41 = vpop.f32.mrf.mxu0 }
 0x474   : > { %v10899_v54 = vpop.f32.mrf.mxu1  ;;  %v10901_v47 = vpop.f32.mrf.mxu0 }
 0x496   : > { %v3181_v55 = vpop.f32.mrf.mxu1  ;;  %v3224_v50 = vpop.f32.mrf.mxu0 }
 0x497   : > { %v3182_v8 = vadd.f32 %v3181_v55, %v2416_v45  ;;  %v3225_v20 = vadd.f32 %v3224_v50, %v2424_v46  ;;  %v2412_v55 = vrot.slane %v10893_v42, %v10352_v60  ;;  %v2432_v50 = vrot.slane %v2394_v36, %v10346_v57 }
 0x498   : > { %v3183_v39 = vpop.f32.mrf.mxu1  ;;  %v3226_v53 = vpop.f32.mrf.mxu0 }
 0x499   : > { %v7560_v13 = vmul.f32 -1.442695, %v3182_v8  ;;  %v7562_v52 = vmul.f32 -1.442695, %v3225_v20  ;;  %v3184_v6 = vadd.f32 %v3183_v39, %v2420_v48  ;;  %v3227_v9 = vadd.f32 %v3226_v53, %v2428_v49 }
 0x49a   : > { %v3185_v10 = vpop.f32.mrf.mxu1  ;;  %v3228_v44 = vpop.f32.mrf.mxu0  ;;  %v2440_v20 = vrot.slane %v2394_v36, %v10348_v58  ;;  %v2436_v53 = vrot.slane %v2394_v36, %v10350_v59 }
 0x49b   : > { %9301 = vpow2.f32 %v7560_v13  ;;  %v7561_v11 = vmul.f32 -1.442695, %v3184_v6  ;;  %v7563_v12 = vmul.f32 -1.442695, %v3227_v9  ;;  %v3186_v14 = vadd.f32 %v3185_v10, %v2416_v45 }
 0x49c   : > { %9303 = vpow2.f32 %v7562_v52  ;;  %v3229_v26 = vadd.f32 %v3228_v44, %v2424_v46  ;;  %v3187_v7 = vpop.f32.mrf.mxu1  ;;  %v3230_v15 = vpop.f32.mrf.mxu0  ;;  %v2400_v45 = vrot.slane %v10893_v42, %v10346_v57  ;;  %v2444_v9 = vrot.slane %v2394_v36, %v10352_v60 }
 0x49d   : > { %9305 = vpow2.f32 %v7561_v11  ;;  %v7564_v3 = vmul.f32 -1.442695, %v3186_v14  ;;  %v3188_v17 = vadd.f32 %v3187_v7, %v2420_v48  ;;  %v3231_v38 = vadd.f32 %v3230_v15, %v2428_v49 }
 0x49e   : > { %9307 = vpow2.f32 %v7563_v12  ;;  %v7566_v25 = vmul.f32 -1.442695, %v3229_v26  ;;  %v2408_v48 = vrot.slane %v10893_v42, %v10348_v58  ;;  %v2404_v49 = vrot.slane %v10893_v42, %v10350_v59 }
 0x49f   : > { %9309 = vpow2.f32 %v7564_v3  ;;  %v7565_v18 = vmul.f32 -1.442695, %v3188_v17  ;;  %v7567_v19 = vmul.f32 -1.442695, %v3231_v38  ;;  %v3096_v52 = vadd.f32 %v10881_v37, %v2400_v45 }
 0x4a0   : > { %9311 = vpow2.f32 %v7566_v25  ;;  %v3139_v44 = vadd.f32 %v10883_v40, %v2408_v48  ;;  %v3098_v11 = vadd.f32 %v10885_v56, %v2404_v49  ;;  %v3141_v42 = vadd.f32 %v10887_v51, %v2412_v55 }
 0x4a1   : > { %9313 = vpow2.f32 %v7565_v18  ;;  %v3100_v7 = vadd.f32 %v10889_v22, %v2400_v45  ;;  %v3143_v15 = vadd.f32 %v10891_v41, %v2408_v48  ;;  %v3102_v25 = vadd.f32 %v10899_v54, %v2404_v49 }
 0x4a2   : > { %9315 = vpow2.f32 %v7567_v19  ;;  %v3145_v51 = vadd.f32 %v10901_v47, %v2412_v55 }
 0x4a8   : > { %v9302_v21 = vpop.eup %9301 }
 0x4a9   : > { %v9304_v23 = vpop.eup %9303  ;;  %v3343_v5 = vadd.f32 1.0, %v9302_v21 }
 0x4aa   : > { %v9306_v16 = vpop.eup %9305  ;;  %v3345_v2 = vadd.f32 1.0, %v9304_v23  ;;  %v3396_v23 = vpop.permute.xlu0 %3395 }
 0x4ab   : > { %v9308_v24 = vpop.eup %9307  ;;  %v3344_v28 = vadd.f32 1.0, %v9306_v16  ;;  %9317 = vrcp.f32 %v3343_v5 }
 0x4ac   : > { %v9310_v27 = vpop.eup %9309  ;;  %v3346_v4 = vadd.f32 1.0, %v9308_v24  ;;  %9319 = vrcp.f32 %v3345_v2 }
 0x4ad   : > { %v9312_v29 = vpop.eup %9311  ;;  %v3347_v31 = vadd.f32 1.0, %v9310_v27  ;;  %9321 = vrcp.f32 %v3344_v28 }
 0x4ae   : > { %v9314_v30 = vpop.eup %9313  ;;  %v3349_v33 = vadd.f32 1.0, %v9312_v29  ;;  %9323 = vrcp.f32 %v3346_v4 }
 0x4af   : > { %v9316_v32 = vpop.eup %9315  ;;  %v3348_v34 = vadd.f32 1.0, %v9314_v30  ;;  %9325 = vrcp.f32 %v3347_v31 }
 0x4b0   : > { %v3350_v35 = vadd.f32 1.0, %v9316_v32  ;;  %9327 = vrcp.f32 %v3349_v33  ;;  %v3416_v33 = vpop.permute.xlu1 %3415 }
 0x4b1   : > { %9329 = vrcp.f32 %v3348_v34 }
 0x4b2   : > { %9331 = vrcp.f32 %v3350_v35 }
 0x4b8   : > { %v9318_v46 = vpop.eup %9317 }
 0x4b9   : > { %v9320_v8 = vpop.eup %9319  ;;  %v3367_v3 = vadd.f32 %v9318_v46, %v3096_v52 }
 0x4ba   : > { %v9322_v39 = vpop.eup %9321  ;;  %v3369_v18 = vadd.f32 %v9320_v8, %v3139_v44 }
 0x4bb   : > { %v9324_v13 = vpop.eup %9323  ;;  %v3368_v40 = vadd.f32 %v9322_v39, %v3098_v11 }
 0x4bc   : > { %v9326_v10 = vpop.eup %9325  ;;  %v3370_v24 = vadd.f32 %v9324_v13, %v3141_v42  ;;  %v3401_v13 = vpop.permute.xlu0 %3400 }
 0x4bd   : > { %v9328_v26 = vpop.eup %9327  ;;  %v3371_v28 = vadd.f32 %v9326_v10, %v3100_v7 }
 0x4be   : > { %v3267_v6 = vpop.f32.mrf.mxu1  ;;  %v9330_v38 = vpop.eup %9329  ;;  %v3373_v54 = vadd.f32 %v9328_v26, %v3143_v15 }
 0x4bf   : > { %v3268_v12 = vadd.f32 %v3267_v6, %v2432_v50  ;;  %v3310_v14 = vpop.f32.mrf.mxu0  ;;  %v9332_v56 = vpop.eup %9331  ;;  %v3372_v32 = vadd.f32 %v9330_v38, %v3102_v25 }
 0x4c0   : > { %v3311_v17 = vadd.f32 %v3310_v14, %v2440_v20  ;;  %v3269_v37 = vpop.f32.mrf.mxu1  ;;  %v3374_v45 = vadd.f32 %v9332_v56, %v3145_v51  ;;  %v3421_v26 = vpop.permute.xlu1 %3420 }
 0x4c1   : > { %v3270_v19 = vadd.f32 %v3269_v37, %v2436_v53  ;;  %v3312_v21 = vpop.f32.mrf.mxu0  ;;  %v3375_v16 = vadd.f32 %v3367_v3, %v3268_v12 }
 0x4c2   : > { %v3313_v5 = vadd.f32 %v3312_v21, %v2444_v9  ;;  %v3271_v22 = vpop.f32.mrf.mxu1  ;;  %v3377_v2 = vadd.f32 %v3369_v18, %v3311_v17  ;;  %v8791_v21 = vld [vmem:[#allocation10 + $0x200] ss:$36 sps:$4 sm:$0xff]  }
 0x4c3   : > { %v3376_v41 = vadd.f32 %v3368_v40, %v3270_v19  ;;  %v3272_v27 = vadd.f32 %v3271_v22, %v2432_v50  ;;  %v3314_v29 = vpop.f32.mrf.mxu0  ;;  %v3383_v46 = vmax.f32 %v3375_v16, 0.0  ;;  %v8794_v16 = vld [vmem:[#allocation10 + $0x680] ss:$36 sps:$4 sm:$0xff]   ;;  %v8797_v22 = vld [vmem:[#allocation10 + $0x1b8] ss:$36 sps:$4 sm:$0xff]  }
 0x4c4   : > { %v3378_v4 = vadd.f32 %v3370_v24, %v3313_v5  ;;  %v3315_v30 = vadd.f32 %v3314_v29, %v2440_v20  ;;  %v3273_v31 = vpop.f32.mrf.mxu1  ;;  %v3385_v8 = vmax.f32 %v3377_v2, 0.0  ;;  %v8799_v5 = vld [vmem:[#allocation10 + $0x1bc] ss:$36 sps:$4 sm:$0xff]   ;;  %v8806_v29 = vld [vmem:[#allocation10 + $0x5f0] ss:$36 sps:$4 sm:$0xff]  }
 0x4c5   : > { %v3384_v34 = vmax.f32 %v3376_v41, 0.0  ;;  %v3379_v35 = vadd.f32 %v3371_v28, %v3272_v27  ;;  %v3274_v36 = vadd.f32 %v3273_v31, %v2436_v53  ;;  %v3316_v47 = vpop.f32.mrf.mxu0  ;;  %v3403_v11 = vmul.f32 %v3396_v23, %v3383_v46  ;;  %v8802_v24 = vld [vmem:[#allocation10 + $0x63c] ss:$36 sps:$4 sm:$0xff]   ;;  %v8805_v41 = vld [vmem:[#allocation10 + $0x174] ss:$36 sps:$4 sm:$0xff]  }
 0x4c6   : > { %v3386_v48 = vmax.f32 %v3378_v4, 0.0  ;;  %v3381_v49 = vadd.f32 %v3373_v54, %v3315_v30  ;;  %v3317_v55 = vadd.f32 %v3316_v47, %v2444_v9  ;;  %v3405_v53 = vmul.f32 %v3396_v23, %v3385_v8  ;;  %v8800_v2 = vld [vmem:[#allocation10 + $0x638] ss:$36 sps:$4 sm:$0xff]   ;;  %v8803_v28 = vld [vmem:[#allocation10 + $0x170] ss:$36 sps:$4 sm:$0xff]  }
 0x4c7   : > { %v3387_v39 = vmax.f32 %v3379_v35, 0.0  ;;  %v3380_v50 = vadd.f32 %v3372_v32, %v3274_v36  ;;  %v3404_v20 = vmul.f32 %v3396_v23, %v3384_v34  ;;  %v3423_v38 = vadd.f32 %v3416_v33, %v3403_v11  ;;  %v8808_v27 = vld [vmem:[#allocation10 + $0x5f4] ss:$36 sps:$4 sm:$0xff]   ;;  %v8811_v4 = vld [vmem:[#allocation10 + $0x12c] ss:$36 sps:$4 sm:$0xff]  }
 0x4c8   : > { %v3389_v52 = vmax.f32 %v3381_v49, 0.0  ;;  %v3382_v6 = vadd.f32 %v3374_v45, %v3317_v55  ;;  %v3406_v42 = vmul.f32 %v3396_v23, %v3386_v48  ;;  %v3425_v19 = vadd.f32 %v3416_v33, %v3405_v53  ;;  %v8814_v30 = vld [vmem:[#allocation10 + $0x5ac] ss:$36 sps:$4 sm:$0xff]   ;;  %v8817_v32 = vld [vmem:[#allocation10 + $0xe4] ss:$36 sps:$4 sm:$0xff]  }
 0x4c9   : > { %v3407_v10 = vmul.f32 %v3401_v13, %v3387_v39  ;;  %v3388_v44 = vmax.f32 %v3380_v50, 0.0  ;;  %v3424_v17 = vadd.f32 %v3416_v33, %v3404_v20  ;;  %v8809_v54 = vld [vmem:[#allocation10 + $0x128] ss:$36 sps:$4 sm:$0xff]   ;;  %v8815_v34 = vld [vmem:[#allocation10 + $0xe0] ss:$36 sps:$4 sm:$0xff]  }
 0x4ca   : > { %v3409_v12 = vmul.f32 %v3401_v13, %v3389_v52  ;;  %v3390_v14 = vmax.f32 %v3382_v6, 0.0  ;;  %v3426_v25 = vadd.f32 %v3416_v33, %v3406_v42  ;;  %v8812_v31 = vld [vmem:[#allocation10 + $0x5a8] ss:$36 sps:$4 sm:$0xff]   ;;  %v8818_v35 = vld [vmem:[#allocation10 + $0x560] ss:$36 sps:$4 sm:$0xff]  }
 0x4cb   : > { %v3408_v7 = vmul.f32 %v3401_v13, %v3388_v44  ;;  %v3427_v15 = vadd.f32 %v3421_v26, %v3407_v10  ;;  %v8820_v33 = vld [vmem:[#allocation10 + $0x564] ss:$36 sps:$4 sm:$0xff]   ;;  %v8823_v36 = vld [vmem:[#allocation10 + $0x9c] ss:$36 sps:$4 sm:$0xff]   ;;  %v8829_v48 = vld [vmem:[#allocation10 + $0x54] ss:$36 sps:$4 sm:$0xff]  }
 0x4cc   : > { %v3410_v3 = vmul.f32 %v3401_v13, %v3390_v14  ;;  %v3429_v9 = vadd.f32 %v3421_v26, %v3409_v12  ;;  %v8826_v47 = vld [vmem:[#allocation10 + $0x51c] ss:$36 sps:$4 sm:$0xff]   ;;  %v8832_v49 = vld [vmem:[#allocation10 + $0x4d4] ss:$36 sps:$4 sm:$0xff]   ;;  %v8835_v39 = vld [vmem:[#allocation10 + $0xc] ss:$36 sps:$4 sm:$0xff]  }
 0x4cd   : > { %v3428_v37 = vadd.f32 %v3421_v26, %v3408_v7  ;;  %v10929_v56 = vpack.c.bf16 %v3427_v15, %v3423_v38  ;;  %v8821_v45 = vld [vmem:[#allocation10 + $0x98] ss:$36 sps:$4 sm:$0xff]   ;;  %v8827_v55 = vld [vmem:[#allocation10 + $0x50] ss:$36 sps:$4 sm:$0xff]   ;;  %v8833_v13 = vld [vmem:[#allocation10 + $0x8] ss:$36 sps:$4 sm:$0xff]  }
 0x4ce   : > { %v3430_v18 = vadd.f32 %v3421_v26, %v3410_v3  ;;  %v10933_v23 = vpack.c.bf16 %v3429_v9, %v3425_v19  ;;  %v8824_v46 = vld [vmem:[#allocation10 + $0x518] ss:$36 sps:$4 sm:$0xff]   ;;  %v8830_v8 = vld [vmem:[#allocation10 + $0x4d0] ss:$36 sps:$4 sm:$0xff]   ;;  %v8836_v52 = vld [vmem:[#allocation10 + $0x488] ss:$36 sps:$4 sm:$0xff]  }
 0x4cf   : > { %v10927_v40 = vpack.c.bf16 %v3428_v37, %v3424_v17  ;;  %v8838_v50 = vld [vmem:[#allocation10 + $0x48c] ss:$36 sps:$4 sm:$0xff]   ;;  %v8841_v6 = vld [vmem:[#allocation10 + $0x444] ss:$36 sps:$4 sm:$0xff]   ;;  %v8847_v11 = vld [vmem:[#allocation10 + $0x3fc] ss:$36 sps:$4 sm:$0xff]  }
 0x4d0   : > { %v10931_v51 = vpack.c.bf16 %v3430_v18, %v3426_v25  ;;  %v8844_v20 = vld [vmem:[#allocation10 + $0x8c4] ss:$36 sps:$4 sm:$0xff]   ;;  %v8850_v42 = vld [vmem:[#allocation10 + $0x87c] ss:$36 sps:$4 sm:$0xff]   ;;  %v8853_v53 = vld [vmem:[#allocation10 + $0x3b4] ss:$36 sps:$4 sm:$0xff]  }
 0x4d1   : > { %5308 = vmatprep.mubr.bf16.mxu1 %v10927_v40  ;;  %v8839_v10 = vld [vmem:[#allocation10 + $0x440] ss:$36 sps:$4 sm:$0xff]   ;;  %v8845_v12 = vld [vmem:[#allocation10 + $0x3f8] ss:$36 sps:$4 sm:$0xff]   ;;  %v8851_v7 = vld [vmem:[#allocation10 + $0x3b0] ss:$36 sps:$4 sm:$0xff]  }
 0x4d2   : > { %5351 = vmatprep.mubr.bf16.mxu0 %v10931_v51  ;;  %5309 = vmatmul.mubr.bf16.vlgmr.msra.gmra.mxu1 %v10929_v56  ;;  %v8842_v44 = vld [vmem:[#allocation10 + $0x8c0] ss:$36 sps:$4 sm:$0xff]   ;;  %v8848_v14 = vld [vmem:[#allocation10 + $0x878] ss:$36 sps:$4 sm:$0xff]   ;;  %v8854_v15 = vld [vmem:[#allocation10 + $0x830] ss:$36 sps:$4 sm:$0xff]  }
 0x4d3   : > { %5352 = vmatmul.mubr.bf16.vlgmr.msra.gmra.mxu0 %v10933_v23  ;;  %5363 = vmatpush1.bf16.msra.mxu1 %v8791_v21  ;;  %v8856_v26 = vld [vmem:[#allocation10 + $0x834] ss:$36 sps:$4 sm:$0xff]   ;;  %v8859_v3 = vld [vmem:[#allocation10 + $0x36c] ss:$36 sps:$4 sm:$0xff]   ;;  %v8865_v38 = vld [vmem:[#allocation10 + $0x324] ss:$36 sps:$4 sm:$0xff]  }
 0x4d4   : > { %5406 = vmatpush1.bf16.msra.mxu0 %v8794_v16  ;;  %5394 = vmatprep.mubr.bf16.mxu1 %v10927_v40  ;;  %v8862_v17 = vld [vmem:[#allocation10 + $0x7ec] ss:$36 sps:$4 sm:$0xff]   ;;  %v8868_v25 = vld [vmem:[#allocation10 + $0x7a4] ss:$36 sps:$4 sm:$0xff]   ;;  %v8871_v21 = vld [vmem:[#allocation10 + $0x2dc] ss:$36 sps:$4 sm:$0xff]  }
 0x4d5   : > { %5437 = vmatprep.mubr.bf16.mxu0 %v10931_v51  ;;  %5364 = vmatprep.subr.bf16.mxu1 %v8799_v5  ;;  %v8857_v9 = vld [vmem:[#allocation10 + $0x368] ss:$36 sps:$4 sm:$0xff]   ;;  %v8863_v18 = vld [vmem:[#allocation10 + $0x320] ss:$36 sps:$4 sm:$0xff]   ;;  %v8869_v5 = vld [vmem:[#allocation10 + $0x2d8] ss:$36 sps:$4 sm:$0xff]  }
 0x4d6   : > { %5407 = vmatprep.subr.bf16.mxu0 %v8802_v24  ;;  %v8860_v37 = vld [vmem:[#allocation10 + $0x7e8] ss:$36 sps:$4 sm:$0xff]   ;;  %v8866_v19 = vld [vmem:[#allocation10 + $0x7a0] ss:$36 sps:$4 sm:$0xff]   ;;  %v8872_v24 = vld [vmem:[#allocation10 + $0x758] ss:$36 sps:$4 sm:$0xff]  }
 0x4d7   : > { %5365 = vmatpush1.bf16.msra.mxu1 %v8797_v22  ;;  %v8874_v16 = vld [vmem:[#allocation10 + $0x75c] ss:$36 sps:$4 sm:$0xff]   ;;  %v8877_v22 = vld [vmem:[#allocation10 + $0x294] ss:$36 sps:$4 sm:$0xff]  }
 0x4d8   : > { %5408 = vmatpush1.bf16.msra.mxu0 %v8800_v2  ;;  %5366 = vmatprep.subr.bf16.mxu1 %v8805_v41  ;;  %v8880_v2 = vld [vmem:[#allocation10 + $0x714] ss:$36 sps:$4 sm:$0xff]  }
 0x4d9   : > { %5409 = vmatprep.subr.bf16.mxu0 %v8808_v27  ;;  %v8875_v41 = vld [vmem:[#allocation10 + $0x290] ss:$36 sps:$4 sm:$0xff]  }
 0x4da   : > { %v8878_v27 = vld [vmem:[#allocation10 + $0x710] ss:$36 sps:$4 sm:$0xff]  }
 0x4db   : > { %5367 = vmatpush1.bf16.msra.mxu1 %v8803_v28  ;;  %v8883_v28 = vld [vmem:[#allocation10 + $0x24c] ss:$36 sps:$4 sm:$0xff]  }
 0x4dc   : > { %5410 = vmatpush1.bf16.msra.mxu0 %v8806_v29  ;;  %5368 = vmatprep.subr.bf16.mxu1 %v8811_v4  ;;  %v8886_v29 = vld [vmem:[#allocation10 + $0x6cc] ss:$36 sps:$4 sm:$0xff]  }
 0x4dd   : > { %5411 = vmatprep.subr.bf16.mxu0 %v8814_v30  ;;  %v8881_v4 = vld [vmem:[#allocation10 + $0x248] ss:$36 sps:$4 sm:$0xff]  }
 0x4de   : > { %v8884_v30 = vld [vmem:[#allocation10 + $0x6c8] ss:$36 sps:$4 sm:$0xff]  }
 0x4df   : > { %5369 = vmatpush1.bf16.msra.mxu1 %v8809_v54  ;;  %v8889_v54 = vld [vmem:[#allocation10 + $0x20c] ss:$36 sps:$4 sm:$0xff]  }
 0x4e0   : > { %5412 = vmatpush1.bf16.msra.mxu0 %v8812_v31  ;;  %5370 = vmatprep.subr.bf16.mxu1 %v8817_v32  ;;  %v8892_v31 = vld [vmem:[#allocation10 + $0x68c] ss:$36 sps:$4 sm:$0xff]  }
 0x4e1   : > { %5413 = vmatprep.subr.bf16.mxu0 %v8820_v33  ;;  %v8887_v32 = vld [vmem:[#allocation10 + $0x208] ss:$36 sps:$4 sm:$0xff]  }
 0x4e2   : > { %v8890_v33 = vld [vmem:[#allocation10 + $0x688] ss:$36 sps:$4 sm:$0xff]  }
 0x4e3   : > { %5371 = vmatpush1.bf16.msra.mxu1 %v8815_v34  ;;  %v8895_v34 = vld [vmem:[#allocation10 + $0x1c4] ss:$36 sps:$4 sm:$0xff]  }
 0x4e4   : > { %5414 = vmatpush1.bf16.msra.mxu0 %v8818_v35  ;;  %5372 = vmatprep.subr.bf16.mxu1 %v8823_v36  ;;  %v8898_v35 = vld [vmem:[#allocation10 + $0x644] ss:$36 sps:$4 sm:$0xff]  }
 0x4e5   : > { %5415 = vmatprep.subr.bf16.mxu0 %v8826_v47  ;;  %v8893_v36 = vld [vmem:[#allocation10 + $0x1c0] ss:$36 sps:$4 sm:$0xff]  }
 0x4e6   : > { %v8896_v47 = vld [vmem:[#allocation10 + $0x640] ss:$36 sps:$4 sm:$0xff]  }
 0x4e7   : > { %5373 = vmatpush1.bf16.msra.mxu1 %v8821_v45  ;;  %v8901_v45 = vld [vmem:[#allocation10 + $0x17c] ss:$36 sps:$4 sm:$0xff]  }
 0x4e8   : > { %5416 = vmatpush1.bf16.msra.mxu0 %v8824_v46  ;;  %5374 = vmatprep.subr.bf16.mxu1 %v8829_v48  ;;  %v8904_v46 = vld [vmem:[#allocation10 + $0x5fc] ss:$36 sps:$4 sm:$0xff]  }
 0x4e9   : > { %5417 = vmatprep.subr.bf16.mxu0 %v8832_v49  ;;  %v8899_v48 = vld [vmem:[#allocation10 + $0x178] ss:$36 sps:$4 sm:$0xff]  }
 0x4ea   : > { %v8902_v49 = vld [vmem:[#allocation10 + $0x5f8] ss:$36 sps:$4 sm:$0xff]  }
 0x4eb   : > { %5375 = vmatpush1.bf16.msra.mxu1 %v8827_v55  ;;  %v8907_v55 = vld [vmem:[#allocation10 + $0x134] ss:$36 sps:$4 sm:$0xff]  }
 0x4ec   : > { %5418 = vmatpush1.bf16.msra.mxu0 %v8830_v8  ;;  %5376 = vmatprep.subr.bf16.mxu1 %v8835_v39  ;;  %v8910_v8 = vld [vmem:[#allocation10 + $0x5b4] ss:$36 sps:$4 sm:$0xff]  }
 0x4ed   : > { %5419 = vmatprep.subr.bf16.mxu0 %v8838_v50  ;;  %v8905_v39 = vld [vmem:[#allocation10 + $0x130] ss:$36 sps:$4 sm:$0xff]  }
 0x4ee   : > { %v8908_v50 = vld [vmem:[#allocation10 + $0x5b0] ss:$36 sps:$4 sm:$0xff]  }
 0x4ef   : > { %5377 = vmatpush1.bf16.msra.mxu1 %v8833_v13  ;;  %v8913_v13 = vld [vmem:[#allocation10 + $0xec] ss:$36 sps:$4 sm:$0xff]  }
 0x4f0   : > { %5420 = vmatpush1.bf16.msra.mxu0 %v8836_v52  ;;  %5378 = vmatprep.subr.bf16.mxu1 %v8841_v6  ;;  %v8916_v52 = vld [vmem:[#allocation10 + $0x56c] ss:$36 sps:$4 sm:$0xff]  }
 0x4f1   : > { %5421 = vmatprep.subr.bf16.mxu0 %v8844_v20  ;;  %v8911_v6 = vld [vmem:[#allocation10 + $0xe8] ss:$36 sps:$4 sm:$0xff]  }
 0x4f2   : > { %v8914_v20 = vld [vmem:[#allocation10 + $0x568] ss:$36 sps:$4 sm:$0xff]  }
 0x4f3   : > { %5379 = vmatpush2.bf16.msra.mxu1 %v8839_v10  ;;  %v8919_v10 = vld [vmem:[#allocation10 + $0xa4] ss:$36 sps:$4 sm:$0xff]  }
 0x4f4   : > { %5422 = vmatpush2.bf16.msra.mxu0 %v8842_v44  ;;  %5380 = vmatprep.subr.bf16.mxu1 %v8847_v11  ;;  %v8922_v44 = vld [vmem:[#allocation10 + $0x524] ss:$36 sps:$4 sm:$0xff]  }
 0x4f5   : > { %5423 = vmatprep.subr.bf16.mxu0 %v8850_v42  ;;  %v8917_v11 = vld [vmem:[#allocation10 + $0xa0] ss:$36 sps:$4 sm:$0xff]  }
 0x4f6   : > { %v8920_v42 = vld [vmem:[#allocation10 + $0x520] ss:$36 sps:$4 sm:$0xff]  }
 0x4f7   : > { %5381 = vmatpush2.bf16.msra.mxu1 %v8845_v12  ;;  %v8925_v12 = vld [vmem:[#allocation10 + $0x5c] ss:$36 sps:$4 sm:$0xff]  }
 0x4f8   : > { %5424 = vmatpush2.bf16.msra.mxu0 %v8848_v14  ;;  %5382 = vmatprep.subr.bf16.mxu1 %v8853_v53  ;;  %v8928_v14 = vld [vmem:[#allocation10 + $0x4dc] ss:$36 sps:$4 sm:$0xff]  }
 0x4f9   : > { %5425 = vmatprep.subr.bf16.mxu0 %v8856_v26  ;;  %v8923_v53 = vld [vmem:[#allocation10 + $0x58] ss:$36 sps:$4 sm:$0xff]  }
 0x4fa   : > { %v8926_v26 = vld [vmem:[#allocation10 + $0x4d8] ss:$36 sps:$4 sm:$0xff]  }
 0x4fb   : > { %5383 = vmatpush2.bf16.msra.mxu1 %v8851_v7  ;;  %v8931_v7 = vld [vmem:[#allocation10 + $0x14] ss:$36 sps:$4 sm:$0xff]  }
 0x4fc   : > { %5426 = vmatpush2.bf16.msra.mxu0 %v8854_v15  ;;  %5384 = vmatprep.subr.bf16.mxu1 %v8859_v3  ;;  %v8934_v15 = vld [vmem:[#allocation10 + $0x494] ss:$36 sps:$4 sm:$0xff]  }
 0x4fd   : > { %5427 = vmatprep.subr.bf16.mxu0 %v8862_v17  ;;  %v8929_v3 = vld [vmem:[#allocation10 + $0x10] ss:$36 sps:$4 sm:$0xff]  }
 0x4fe   : > { %v8932_v17 = vld [vmem:[#allocation10 + $0x490] ss:$36 sps:$4 sm:$0xff]  }
 0x4ff   : > { %5385 = vmatpush2.bf16.msra.mxu1 %v8857_v9  ;;  %v8937_v9 = vld [vmem:[#allocation10 + $0x44c] ss:$36 sps:$4 sm:$0xff]  }
 0x500   : > { %5428 = vmatpush2.bf16.msra.mxu0 %v8860_v37  ;;  %5386 = vmatprep.subr.bf16.mxu1 %v8865_v38  ;;  %v8940_v37 = vld [vmem:[#allocation10 + $0x8cc] ss:$36 sps:$4 sm:$0xff]  }
 0x501   : > { %5429 = vmatprep.subr.bf16.mxu0 %v8868_v25  ;;  %v8935_v38 = vld [vmem:[#allocation10 + $0x448] ss:$36 sps:$4 sm:$0xff]  }
 0x502   : > { %v8938_v25 = vld [vmem:[#allocation10 + $0x8c8] ss:$36 sps:$4 sm:$0xff]  }
 0x503   : > { %5387 = vmatpush2.bf16.msra.mxu1 %v8863_v18  ;;  %v8943_v18 = vld [vmem:[#allocation10 + $0x404] ss:$36 sps:$4 sm:$0xff]  }
 0x504   : > { %5430 = vmatpush2.bf16.msra.mxu0 %v8866_v19  ;;  %5388 = vmatprep.subr.bf16.mxu1 %v8871_v21  ;;  %v8946_v19 = vld [vmem:[#allocation10 + $0x884] ss:$36 sps:$4 sm:$0xff]  }
 0x505   : > { %5431 = vmatprep.subr.bf16.mxu0 %v8874_v16  ;;  %v8941_v21 = vld [vmem:[#allocation10 + $0x400] ss:$36 sps:$4 sm:$0xff]  }
 0x506   : > { %v8944_v16 = vld [vmem:[#allocation10 + $0x880] ss:$36 sps:$4 sm:$0xff]  }
 0x507   : > { %5389 = vmatpush2.bf16.msra.mxu1 %v8869_v5  ;;  %v8949_v5 = vld [vmem:[#allocation10 + $0x3bc] ss:$36 sps:$4 sm:$0xff]  }
 0x508   : > { %5432 = vmatpush2.bf16.msra.mxu0 %v8872_v24  ;;  %5390 = vmatprep.subr.bf16.mxu1 %v8877_v22  ;;  %v8952_v24 = vld [vmem:[#allocation10 + $0x83c] ss:$36 sps:$4 sm:$0xff]  }
 0x509   : > { %5433 = vmatprep.subr.bf16.mxu0 %v8880_v2  ;;  %v8947_v22 = vld [vmem:[#allocation10 + $0x3b8] ss:$36 sps:$4 sm:$0xff]  }
 0x50a   : > { %v8950_v2 = vld [vmem:[#allocation10 + $0x838] ss:$36 sps:$4 sm:$0xff]  }
 0x50b   : > { %5391 = vmatpush2.bf16.msra.mxu1 %v8875_v41  ;;  %v8955_v41 = vld [vmem:[#allocation10 + $0x374] ss:$36 sps:$4 sm:$0xff]  }
 0x50c   : > { %5434 = vmatpush2.bf16.msra.mxu0 %v8878_v27  ;;  %5392 = vmatprep.subr.bf16.mxu1 %v8883_v28  ;;  %v8958_v27 = vld [vmem:[#allocation10 + $0x7f4] ss:$36 sps:$4 sm:$0xff]  }
 0x50d   : > { %5435 = vmatprep.subr.bf16.mxu0 %v8886_v29  ;;  %v8953_v28 = vld [vmem:[#allocation10 + $0x370] ss:$36 sps:$4 sm:$0xff]  }
 0x50e   : > { %v8956_v29 = vld [vmem:[#allocation10 + $0x7f0] ss:$36 sps:$4 sm:$0xff]  }
 0x50f   : > { %5393 = vmatpush2.bf16.msra.mxu1 %v8881_v4  ;;  %v8961_v4 = vld [vmem:[#allocation10 + $0x32c] ss:$36 sps:$4 sm:$0xff]  }
 0x510   : > { %5436 = vmatpush2.bf16.msra.mxu0 %v8884_v30  ;;  %5448 = vmatprep.subr.bf16.mxu1 %v8889_v54  ;;  %v8964_v30 = vld [vmem:[#allocation10 + $0x7ac] ss:$36 sps:$4 sm:$0xff]  }
 0x511   : > { %5491 = vmatprep.subr.bf16.mxu0 %v8892_v31  ;;  %v8959_v54 = vld [vmem:[#allocation10 + $0x328] ss:$36 sps:$4 sm:$0xff]  }
 0x512   : > { %5395 = vmatmul.mubr.bf16.vlgmr.msra.gmra.mxu1 %v10929_v56  ;;  %v8962_v31 = vld [vmem:[#allocation10 + $0x7a8] ss:$36 sps:$4 sm:$0xff]  }
 0x513   : > { %5438 = vmatmul.mubr.bf16.vlgmr.msra.gmra.mxu0 %v10933_v23  ;;  %5449 = vmatpush1.bf16.msra.mxu1 %v8887_v32  ;;  %v8967_v32 = vld [vmem:[#allocation10 + $0x2e4] ss:$36 sps:$4 sm:$0xff]  }
 0x514   : > { %5480 = vmatprep.mubr.bf16.mxu1 %v10927_v40  ;;  %5492 = vmatpush1.bf16.msra.mxu0 %v8890_v33  ;;  %v8970_v33 = vld [vmem:[#allocation10 + $0x764] ss:$36 sps:$4 sm:$0xff]  }
 0x515   : > { %5523 = vmatprep.mubr.bf16.mxu0 %v10931_v51  ;;  %5450 = vmatprep.subr.bf16.mxu1 %v8895_v34  ;;  %v8965_v34 = vld [vmem:[#allocation10 + $0x2e0] ss:$36 sps:$4 sm:$0xff]  }
 0x516   : > { %5493 = vmatprep.subr.bf16.mxu0 %v8898_v35  ;;  %v8968_v35 = vld [vmem:[#allocation10 + $0x760] ss:$36 sps:$4 sm:$0xff]  }
 0x517   : > { %5451 = vmatpush1.bf16.msra.mxu1 %v8893_v36  ;;  %v8973_v36 = vld [vmem:[#allocation10 + $0x29c] ss:$36 sps:$4 sm:$0xff]  }
 0x518   : > { %5494 = vmatpush1.bf16.msra.mxu0 %v8896_v47  ;;  %5452 = vmatprep.subr.bf16.mxu1 %v8901_v45  ;;  %v8976_v47 = vld [vmem:[#allocation10 + $0x71c] ss:$36 sps:$4 sm:$0xff]  }
 0x519   : > { %5495 = vmatprep.subr.bf16.mxu0 %v8904_v46  ;;  %v8971_v45 = vld [vmem:[#allocation10 + $0x298] ss:$36 sps:$4 sm:$0xff]  }
 0x51a   : > { %v8974_v46 = vld [vmem:[#allocation10 + $0x718] ss:$36 sps:$4 sm:$0xff]  }
 0x51b   : > { %5453 = vmatpush1.bf16.msra.mxu1 %v8899_v48  ;;  %v8979_v48 = vld [vmem:[#allocation10 + $0x254] ss:$36 sps:$4 sm:$0xff]  }
 0x51c   : > { %5496 = vmatpush1.bf16.msra.mxu0 %v8902_v49  ;;  %5454 = vmatprep.subr.bf16.mxu1 %v8907_v55  ;;  %v8982_v49 = vld [vmem:[#allocation10 + $0x6d4] ss:$36 sps:$4 sm:$0xff]  }
 0x51d   : > { %5497 = vmatprep.subr.bf16.mxu0 %v8910_v8  ;;  %v8977_v55 = vld [vmem:[#allocation10 + $0x250] ss:$36 sps:$4 sm:$0xff]  }
 0x51e   : > { %v8980_v8 = vld [vmem:[#allocation10 + $0x6d0] ss:$36 sps:$4 sm:$0xff]  }
 0x51f   : > { %5455 = vmatpush1.bf16.msra.mxu1 %v8905_v39  ;;  %v8985_v39 = vld [vmem:[#allocation10 + $0x214] ss:$36 sps:$4 sm:$0xff]  }
 0x520   : > { %5498 = vmatpush1.bf16.msra.mxu0 %v8908_v50  ;;  %5456 = vmatprep.subr.bf16.mxu1 %v8913_v13  ;;  %v8988_v50 = vld [vmem:[#allocation10 + $0x694] ss:$36 sps:$4 sm:$0xff]  }
 0x521   : > { %5499 = vmatprep.subr.bf16.mxu0 %v8916_v52  ;;  %v8983_v13 = vld [vmem:[#allocation10 + $0x210] ss:$36 sps:$4 sm:$0xff]  }
 0x522   : > { %v8986_v52 = vld [vmem:[#allocation10 + $0x690] ss:$36 sps:$4 sm:$0xff]  }
 0x523   : > { %5457 = vmatpush1.bf16.msra.mxu1 %v8911_v6  ;;  %v8991_v6 = vld [vmem:[#allocation10 + $0x1cc] ss:$36 sps:$4 sm:$0xff]  }
 0x524   : > { %5500 = vmatpush1.bf16.msra.mxu0 %v8914_v20  ;;  %5458 = vmatprep.subr.bf16.mxu1 %v8919_v10  ;;  %v8994_v20 = vld [vmem:[#allocation10 + $0x64c] ss:$36 sps:$4 sm:$0xff]  }
 0x525   : > { %5501 = vmatprep.subr.bf16.mxu0 %v8922_v44  ;;  %v8989_v10 = vld [vmem:[#allocation10 + $0x1c8] ss:$36 sps:$4 sm:$0xff]  }
 0x526   : > { %v8992_v44 = vld [vmem:[#allocation10 + $0x648] ss:$36 sps:$4 sm:$0xff]  }
 0x527   : > { %5459 = vmatpush1.bf16.msra.mxu1 %v8917_v11  ;;  %v8997_v11 = vld [vmem:[#allocation10 + $0x184] ss:$36 sps:$4 sm:$0xff]  }
 0x528   : > { %5502 = vmatpush1.bf16.msra.mxu0 %v8920_v42  ;;  %5460 = vmatprep.subr.bf16.mxu1 %v8925_v12  ;;  %v9000_v42 = vld [vmem:[#allocation10 + $0x604] ss:$36 sps:$4 sm:$0xff]  }
 0x529   : > { %5503 = vmatprep.subr.bf16.mxu0 %v8928_v14  ;;  %v8995_v12 = vld [vmem:[#allocation10 + $0x180] ss:$36 sps:$4 sm:$0xff]  }
 0x52a   : > { %v8998_v14 = vld [vmem:[#allocation10 + $0x600] ss:$36 sps:$4 sm:$0xff]  }
 0x52b   : > { %5461 = vmatpush1.bf16.msra.mxu1 %v8923_v53  ;;  %v9003_v53 = vld [vmem:[#allocation10 + $0x13c] ss:$36 sps:$4 sm:$0xff]  }
 0x52c   : > { %5504 = vmatpush1.bf16.msra.mxu0 %v8926_v26  ;;  %5462 = vmatprep.subr.bf16.mxu1 %v8931_v7  ;;  %v9006_v26 = vld [vmem:[#allocation10 + $0x5bc] ss:$36 sps:$4 sm:$0xff]  }
 0x52d   : > { %5505 = vmatprep.subr.bf16.mxu0 %v8934_v15  ;;  %v9001_v7 = vld [vmem:[#allocation10 + $0x138] ss:$36 sps:$4 sm:$0xff]  }
 0x52e   : > { %v9004_v15 = vld [vmem:[#allocation10 + $0x5b8] ss:$36 sps:$4 sm:$0xff]  }
 0x52f   : > { %5463 = vmatpush1.bf16.msra.mxu1 %v8929_v3  ;;  %v9009_v3 = vld [vmem:[#allocation10 + $0xf4] ss:$36 sps:$4 sm:$0xff]  }
 0x530   : > { %5506 = vmatpush1.bf16.msra.mxu0 %v8932_v17  ;;  %5464 = vmatprep.subr.bf16.mxu1 %v8937_v9  ;;  %v9012_v17 = vld [vmem:[#allocation10 + $0x574] ss:$36 sps:$4 sm:$0xff]  }
 0x531   : > { %5507 = vmatprep.subr.bf16.mxu0 %v8940_v37  ;;  %v9007_v9 = vld [vmem:[#allocation10 + $0xf0] ss:$36 sps:$4 sm:$0xff]  }
 0x532   : > { %v9010_v37 = vld [vmem:[#allocation10 + $0x570] ss:$36 sps:$4 sm:$0xff]  }
 0x533   : > { %5465 = vmatpush2.bf16.msra.mxu1 %v8935_v38  ;;  %v9015_v38 = vld [vmem:[#allocation10 + $0xac] ss:$36 sps:$4 sm:$0xff]  }
 0x534   : > { %5508 = vmatpush2.bf16.msra.mxu0 %v8938_v25  ;;  %5466 = vmatprep.subr.bf16.mxu1 %v8943_v18  ;;  %v9018_v25 = vld [vmem:[#allocation10 + $0x52c] ss:$36 sps:$4 sm:$0xff]  }
 0x535   : > { %5509 = vmatprep.subr.bf16.mxu0 %v8946_v19  ;;  %v9013_v18 = vld [vmem:[#allocation10 + $0xa8] ss:$36 sps:$4 sm:$0xff]  }
 0x536   : > { %v9016_v19 = vld [vmem:[#allocation10 + $0x528] ss:$36 sps:$4 sm:$0xff]  }
 0x537   : > { %5467 = vmatpush2.bf16.msra.mxu1 %v8941_v21  ;;  %v9021_v21 = vld [vmem:[#allocation10 + $0x64] ss:$36 sps:$4 sm:$0xff]  }
 0x538   : > { %5510 = vmatpush2.bf16.msra.mxu0 %v8944_v16  ;;  %5468 = vmatprep.subr.bf16.mxu1 %v8949_v5  ;;  %v9024_v16 = vld [vmem:[#allocation10 + $0x4e4] ss:$36 sps:$4 sm:$0xff]  }
 0x539   : > { %5511 = vmatprep.subr.bf16.mxu0 %v8952_v24  ;;  %v9019_v5 = vld [vmem:[#allocation10 + $0x60] ss:$36 sps:$4 sm:$0xff]  }
 0x53a   : > { %v9022_v24 = vld [vmem:[#allocation10 + $0x4e0] ss:$36 sps:$4 sm:$0xff]  }
 0x53b   : > { %5469 = vmatpush2.bf16.msra.mxu1 %v8947_v22  ;;  %v9027_v22 = vld [vmem:[#allocation10 + $0x1c] ss:$36 sps:$4 sm:$0xff]  }
 0x53c   : > { %5512 = vmatpush2.bf16.msra.mxu0 %v8950_v2  ;;  %5470 = vmatprep.subr.bf16.mxu1 %v8955_v41  ;;  %v9030_v2 = vld [vmem:[#allocation10 + $0x49c] ss:$36 sps:$4 sm:$0xff]  }
 0x53d   : > { %5513 = vmatprep.subr.bf16.mxu0 %v8958_v27  ;;  %v9025_v41 = vld [vmem:[#allocation10 + $0x18] ss:$36 sps:$4 sm:$0xff]  }
 0x53e   : > { %v9028_v27 = vld [vmem:[#allocation10 + $0x498] ss:$36 sps:$4 sm:$0xff]  }
 0x53f   : > { %5471 = vmatpush2.bf16.msra.mxu1 %v8953_v28  ;;  %v9033_v28 = vld [vmem:[#allocation10 + $0x454] ss:$36 sps:$4 sm:$0xff]  }
 0x540   : > { %5514 = vmatpush2.bf16.msra.mxu0 %v8956_v29  ;;  %5472 = vmatprep.subr.bf16.mxu1 %v8961_v4  ;;  %v9036_v29 = vld [vmem:[#allocation10 + $0x8d4] ss:$36 sps:$4 sm:$0xff]  }
 0x541   : > { %5515 = vmatprep.subr.bf16.mxu0 %v8964_v30  ;;  %v9031_v4 = vld [vmem:[#allocation10 + $0x450] ss:$36 sps:$4 sm:$0xff]  }
 0x542   : > { %v9034_v30 = vld [vmem:[#allocation10 + $0x8d0] ss:$36 sps:$4 sm:$0xff]  }
 0x543   : > { %5473 = vmatpush2.bf16.msra.mxu1 %v8959_v54  ;;  %v9039_v54 = vld [vmem:[#allocation10 + $0x40c] ss:$36 sps:$4 sm:$0xff]  }
 0x544   : > { %5516 = vmatpush2.bf16.msra.mxu0 %v8962_v31  ;;  %5474 = vmatprep.subr.bf16.mxu1 %v8967_v32  ;;  %v9042_v31 = vld [vmem:[#allocation10 + $0x88c] ss:$36 sps:$4 sm:$0xff]  }
 0x545   : > { %5517 = vmatprep.subr.bf16.mxu0 %v8970_v33  ;;  %v9037_v32 = vld [vmem:[#allocation10 + $0x408] ss:$36 sps:$4 sm:$0xff]  }
 0x546   : > { %v9040_v33 = vld [vmem:[#allocation10 + $0x888] ss:$36 sps:$4 sm:$0xff]  }
 0x547   : > { %5475 = vmatpush2.bf16.msra.mxu1 %v8965_v34  ;;  %v9045_v34 = vld [vmem:[#allocation10 + $0x3c4] ss:$36 sps:$4 sm:$0xff]  }
 0x548   : > { %5518 = vmatpush2.bf16.msra.mxu0 %v8968_v35  ;;  %5476 = vmatprep.subr.bf16.mxu1 %v8973_v36  ;;  %v9048_v35 = vld [vmem:[#allocation10 + $0x844] ss:$36 sps:$4 sm:$0xff]  }
 0x549   : > { %5519 = vmatprep.subr.bf16.mxu0 %v8976_v47  ;;  %v9043_v36 = vld [vmem:[#allocation10 + $0x3c0] ss:$36 sps:$4 sm:$0xff]  }
 0x54a   : > { %v9046_v47 = vld [vmem:[#allocation10 + $0x840] ss:$36 sps:$4 sm:$0xff]  }
 0x54b   : > { %5477 = vmatpush2.bf16.msra.mxu1 %v8971_v45  ;;  %v9051_v45 = vld [vmem:[#allocation10 + $0x37c] ss:$36 sps:$4 sm:$0xff]  }
 0x54c   : > { %5520 = vmatpush2.bf16.msra.mxu0 %v8974_v46  ;;  %5478 = vmatprep.subr.bf16.mxu1 %v8979_v48  ;;  %v9054_v46 = vld [vmem:[#allocation10 + $0x7fc] ss:$36 sps:$4 sm:$0xff]  }
 0x54d   : > { %5521 = vmatprep.subr.bf16.mxu0 %v8982_v49  ;;  %v9049_v48 = vld [vmem:[#allocation10 + $0x378] ss:$36 sps:$4 sm:$0xff]  }
 0x54e   : > { %v9052_v49 = vld [vmem:[#allocation10 + $0x7f8] ss:$36 sps:$4 sm:$0xff]  }
 0x54f   : > { %5479 = vmatpush2.bf16.msra.mxu1 %v8977_v55  ;;  %v9057_v55 = vld [vmem:[#allocation10 + $0x334] ss:$36 sps:$4 sm:$0xff]  }
 0x550   : > { %5522 = vmatpush2.bf16.msra.mxu0 %v8980_v8  ;;  %5534 = vmatprep.subr.bf16.mxu1 %v8985_v39  ;;  %v9060_v8 = vld [vmem:[#allocation10 + $0x7b4] ss:$36 sps:$4 sm:$0xff]  }
 0x551   : > { %5577 = vmatprep.subr.bf16.mxu0 %v8988_v50  ;;  %v9055_v39 = vld [vmem:[#allocation10 + $0x330] ss:$36 sps:$4 sm:$0xff]  }
 0x552   : > { %5481 = vmatmul.mubr.bf16.vlgmr.msra.gmra.mxu1 %v10929_v56  ;;  %v9058_v50 = vld [vmem:[#allocation10 + $0x7b0] ss:$36 sps:$4 sm:$0xff]  }
 0x553   : > { %5524 = vmatmul.mubr.bf16.vlgmr.msra.gmra.mxu0 %v10933_v23  ;;  %5535 = vmatpush1.bf16.msra.mxu1 %v8983_v13  ;;  %v9063_v13 = vld [vmem:[#allocation10 + $0x2ec] ss:$36 sps:$4 sm:$0xff]  }
 0x554   : > { %5566 = vmatprep.mubr.bf16.mxu1 %v10927_v40  ;;  %5578 = vmatpush1.bf16.msra.mxu0 %v8986_v52  ;;  %v9066_v52 = vld [vmem:[#allocation10 + $0x76c] ss:$36 sps:$4 sm:$0xff]  }
 0x555   : > { %5609 = vmatprep.mubr.bf16.mxu0 %v10931_v51  ;;  %5536 = vmatprep.subr.bf16.mxu1 %v8991_v6  ;;  %v9061_v6 = vld [vmem:[#allocation10 + $0x2e8] ss:$36 sps:$4 sm:$0xff]  }
 0x556   : > { %5579 = vmatprep.subr.bf16.mxu0 %v8994_v20  ;;  %v9064_v20 = vld [vmem:[#allocation10 + $0x768] ss:$36 sps:$4 sm:$0xff]  }
 0x557   : > { %5537 = vmatpush1.bf16.msra.mxu1 %v8989_v10  ;;  %v9069_v10 = vld [vmem:[#allocation10 + $0x2a4] ss:$36 sps:$4 sm:$0xff]  }
 0x558   : > { %5580 = vmatpush1.bf16.msra.mxu0 %v8992_v44  ;;  %5538 = vmatprep.subr.bf16.mxu1 %v8997_v11  ;;  %v9072_v44 = vld [vmem:[#allocation10 + $0x724] ss:$36 sps:$4 sm:$0xff]  }
 0x559   : > { %5581 = vmatprep.subr.bf16.mxu0 %v9000_v42  ;;  %v9067_v11 = vld [vmem:[#allocation10 + $0x2a0] ss:$36 sps:$4 sm:$0xff]  }
 0x55a   : > { %v9070_v42 = vld [vmem:[#allocation10 + $0x720] ss:$36 sps:$4 sm:$0xff]  }
 0x55b   : > { %5539 = vmatpush1.bf16.msra.mxu1 %v8995_v12  ;;  %v9075_v12 = vld [vmem:[#allocation10 + $0x25c] ss:$36 sps:$4 sm:$0xff]  }
 0x55c   : > { %5582 = vmatpush1.bf16.msra.mxu0 %v8998_v14  ;;  %5540 = vmatprep.subr.bf16.mxu1 %v9003_v53  ;;  %v9078_v14 = vld [vmem:[#allocation10 + $0x6dc] ss:$36 sps:$4 sm:$0xff]  }
 0x55d   : > { %5583 = vmatprep.subr.bf16.mxu0 %v9006_v26  ;;  %v9073_v53 = vld [vmem:[#allocation10 + $0x258] ss:$36 sps:$4 sm:$0xff]  }
 0x55e   : > { %v9076_v26 = vld [vmem:[#allocation10 + $0x6d8] ss:$36 sps:$4 sm:$0xff]  }
 0x55f   : > { %5541 = vmatpush1.bf16.msra.mxu1 %v9001_v7  ;;  %v9079_v7 = vld [vmem:[#allocation10 + $0x458] ss:$36 sps:$4 sm:$0xff]  }
 0x560   : > { %5584 = vmatpush1.bf16.msra.mxu0 %v9004_v15  ;;  %5542 = vmatprep.subr.bf16.mxu1 %v9009_v3  ;;  %v9080_v15 = vld [vmem:[#allocation10 + $0x8d8] ss:$36 sps:$4 sm:$0xff]  }
 0x561   : > { %5585 = vmatprep.subr.bf16.mxu0 %v9012_v17  ;;  %v9081_v3 = vld [vmem:[#allocation10 + $0x218] ss:$36 sps:$4 sm:$0xff]  }
 0x562   : > { %v9082_v17 = vld [vmem:[#allocation10 + $0x698] ss:$36 sps:$4 sm:$0xff]  }
 0x563   : > { %5543 = vmatpush1.bf16.msra.mxu1 %v9007_v9  ;;  %v9083_v9 = vld [vmem:[#allocation10 + $0x410] ss:$36 sps:$4 sm:$0xff]  }
 0x564   : > { %5586 = vmatpush1.bf16.msra.mxu0 %v9010_v37  ;;  %5544 = vmatprep.subr.bf16.mxu1 %v9015_v38  ;;  %v9084_v37 = vld [vmem:[#allocation10 + $0x890] ss:$36 sps:$4 sm:$0xff]  }
 0x565   : > { %5587 = vmatprep.subr.bf16.mxu0 %v9018_v25  ;;  %v9085_v38 = vld [vmem:[#allocation10 + $0x1d0] ss:$36 sps:$4 sm:$0xff]  }
 0x566   : > { %v9086_v25 = vld [vmem:[#allocation10 + $0x650] ss:$36 sps:$4 sm:$0xff]  }
 0x567   : > { %5545 = vmatpush1.bf16.msra.mxu1 %v9013_v18  ;;  %v9087_v18 = vld [vmem:[#allocation10 + $0x3c8] ss:$36 sps:$4 sm:$0xff]  }
 0x568   : > { %5588 = vmatpush1.bf16.msra.mxu0 %v9016_v19  ;;  %5546 = vmatprep.subr.bf16.mxu1 %v9021_v21  ;;  %v9088_v19 = vld [vmem:[#allocation10 + $0x848] ss:$36 sps:$4 sm:$0xff]  }
 0x569   : > { %5589 = vmatprep.subr.bf16.mxu0 %v9024_v16  ;;  %v9089_v21 = vld [vmem:[#allocation10 + $0x188] ss:$36 sps:$4 sm:$0xff]  }
 0x56a   : > { %v9090_v16 = vld [vmem:[#allocation10 + $0x608] ss:$36 sps:$4 sm:$0xff]  }
 0x56b   : > { %5547 = vmatpush1.bf16.msra.mxu1 %v9019_v5  ;;  %v9091_v5 = vld [vmem:[#allocation10 + $0x380] ss:$36 sps:$4 sm:$0xff]  }
 0x56c   : > { %5590 = vmatpush1.bf16.msra.mxu0 %v9022_v24  ;;  %5548 = vmatprep.subr.bf16.mxu1 %v9027_v22  ;;  %v9092_v24 = vld [vmem:[#allocation10 + $0x800] ss:$36 sps:$4 sm:$0xff]  }
 0x56d   : > { %5591 = vmatprep.subr.bf16.mxu0 %v9030_v2  ;;  %v9093_v22 = vld [vmem:[#allocation10 + $0x140] ss:$36 sps:$4 sm:$0xff]   ;;  %v9095_v2 = vld [vmem:[#allocation10 + $0x338] ss:$36 sps:$4 sm:$0xff]  }
 0x56f   : > { %5549 = vmatpush1.bf16.msra.mxu1 %v9025_v41  ;;  %v9096_v41 = vld [vmem:[#allocation10 + $0x7b8] ss:$36 sps:$4 sm:$0xff]  }
 0x570   : > { %5592 = vmatpush1.bf16.msra.mxu0 %v9028_v27  ;;  %5550 = vmatprep.subr.bf16.mxu1 %v9033_v28  ;;  %v9098_v27 = vld [vmem:[#allocation10 + $0x578] ss:$36 sps:$4 sm:$0xff]   ;;  %v9099_v28 = vld [vmem:[#allocation10 + $0x2f0] ss:$36 sps:$4 sm:$0xff]  }
 0x571   : > { %5593 = vmatprep.subr.bf16.mxu0 %v9036_v29  ;;  %v9100_v29 = vld [vmem:[#allocation10 + $0x770] ss:$36 sps:$4 sm:$0xff]  }
 0x573   : > { %5551 = vmatpush2.bf16.msra.mxu1 %v9031_v4  ;;  %v9101_v4 = vld [vmem:[#allocation10 + $0xb0] ss:$36 sps:$4 sm:$0xff]  }
 0x574   : > { %5594 = vmatpush2.bf16.msra.mxu0 %v9034_v30  ;;  %5552 = vmatprep.subr.bf16.mxu1 %v9039_v54  ;;  %v9102_v30 = vld [vmem:[#allocation10 + $0x530] ss:$36 sps:$4 sm:$0xff]   ;;  %v9103_v54 = vld [vmem:[#allocation10 + $0x2a8] ss:$36 sps:$4 sm:$0xff]  }
 0x575   : > { %5595 = vmatprep.subr.bf16.mxu0 %v9042_v31  ;;  %v9104_v31 = vld [vmem:[#allocation10 + $0x728] ss:$36 sps:$4 sm:$0xff]  }
 0x577   : > { %5553 = vmatpush2.bf16.msra.mxu1 %v9037_v32  ;;  %v9105_v32 = vld [vmem:[#allocation10 + $0x68] ss:$36 sps:$4 sm:$0xff]  }
 0x578   : > { %5596 = vmatpush2.bf16.msra.mxu0 %v9040_v33  ;;  %5554 = vmatprep.subr.bf16.mxu1 %v9045_v34  ;;  %v9106_v33 = vld [vmem:[#allocation10 + $0x4e8] ss:$36 sps:$4 sm:$0xff]   ;;  %v9107_v34 = vld [vmem:[#allocation10 + $0x260] ss:$36 sps:$4 sm:$0xff]  }
 0x579   : > { %5597 = vmatprep.subr.bf16.mxu0 %v9048_v35  ;;  %v9108_v35 = vld [vmem:[#allocation10 + $0x6e0] ss:$36 sps:$4 sm:$0xff]  }
 0x57b   : > { %5555 = vmatpush2.bf16.msra.mxu1 %v9043_v36  ;;  %v9109_v36 = vld [vmem:[#allocation10 + $0x20] ss:$36 sps:$4 sm:$0xff]  }
 0x57c   : > { %5598 = vmatpush2.bf16.msra.mxu0 %v9046_v47  ;;  %5556 = vmatprep.subr.bf16.mxu1 %v9051_v45  ;;  %v9110_v47 = vld [vmem:[#allocation10 + $0x4a0] ss:$36 sps:$4 sm:$0xff]  }
 0x57d   : > { %5599 = vmatprep.subr.bf16.mxu0 %v9054_v46  ;;  %v9111_v45 = vld [vmem:[%s11231_s4 + $0x78] sm:$0xff]  }
 0x57e   : > { %v9112_v46 = vld [vmem:[%s11231_s4 + $0x38] sm:$0xff]  }
 0x57f   : > { %5557 = vmatpush2.bf16.msra.mxu1 %v9049_v48  ;;  %v9113_v48 = vld [vmem:[%s11231_s4 + $0x70] sm:$0xff]  }
 0x580   : > { %5600 = vmatpush2.bf16.msra.mxu0 %v9052_v49  ;;  %5558 = vmatprep.subr.bf16.mxu1 %v9057_v55  ;;  %v9114_v49 = vld [vmem:[%s11231_s4 + $0x30] sm:$0xff]   ;;  %v9115_v55 = vld [vmem:[%s11231_s4 + $0x68] sm:$0xff]  }
 0x581   : > { %5601 = vmatprep.subr.bf16.mxu0 %v9060_v8  ;;  %v9118_v8 = vld [vmem:[%s11231_s4 + $0x20] sm:$0xff]  }
 0x583   : > { %5559 = vmatpush2.bf16.msra.mxu1 %v9055_v39 }
 0x584   : > { %5602 = vmatpush2.bf16.msra.mxu0 %v9058_v50  ;;  %5560 = vmatprep.subr.bf16.mxu1 %v9063_v13 }
 0x585   : > { %5603 = vmatprep.subr.bf16.mxu0 %v9066_v52 }
 0x587   : > { %5561 = vmatpush2.bf16.msra.mxu1 %v9061_v6 }
 0x588   : > { %5604 = vmatpush2.bf16.msra.mxu0 %v9064_v20  ;;  %5562 = vmatprep.subr.bf16.mxu1 %v9069_v10  ;;  %v10994_v10 = vld [vmem:[#allocation12] sm:$0xff] }
 0x589   : > { %5605 = vmatprep.subr.bf16.mxu0 %v9072_v44  ;;  %v3770_v44 = vrot.slane %v10994_v10, %v10348_v58 }
 0x58b   : > { %5563 = vmatpush2.bf16.msra.mxu1 %v9067_v11 }
 0x58c   : > { %5606 = vmatpush2.bf16.msra.mxu0 %v9070_v42  ;;  %5564 = vmatprep.subr.bf16.mxu1 %v9075_v12 }
 0x58d   : > { %5607 = vmatprep.subr.bf16.mxu0 %v9078_v14 }
 0x58f   : > { %5565 = vmatpush2.bf16.msra.mxu1 %v9073_v53 }
 0x590   : > { %5608 = vmatpush2.bf16.msra.mxu0 %v9076_v26  ;;  %7998 = vmatprep.subr.bf16.mxu1 %v9079_v7  ;;  %v9119_v7 = vld [vmem:[%s11231_s4 + $0x58] sm:$0xff]  }
 0x591   : > { %8020 = vmatprep.subr.bf16.mxu0 %v9080_v15 }
 0x592   : > { %5567 = vmatmul.mubr.bf16.vlgmr.msra.gmra.mxu1 %v10929_v56  ;;  %v10982_v39 = vpop.f32.mrf.mxu1 }
 0x593   : > { %5610 = vmatmul.mubr.bf16.vlgmr.msra.gmra.mxu0 %v10933_v23  ;;  %7999 = vmatpush3.bf16.msra.mxu1 %v9081_v3  ;;  %v10984_v50 = vpop.f32.mrf.mxu0 }
 0x594   : > { %5652 = vmatprep.mubr.bf16.mxu1 %v10927_v40  ;;  %8021 = vmatpush3.bf16.msra.mxu0 %v9082_v17  ;;  %v9094_v40 = vld [vmem:[#allocation10 + $0x5c0] ss:$36 sps:$4 sm:$0xff]   ;;  %v10986_v13 = vpop.f32.mrf.mxu1 }
 0x595   : > { %5693 = vmatprep.mubr.bf16.mxu0 %v10931_v51  ;;  %8000 = vmatprep.subr.bf16.mxu1 %v9083_v9  ;;  %v9097_v51 = vld [vmem:[#allocation10 + $0xf8] ss:$36 sps:$4 sm:$0xff]   ;;  %v10988_v52 = vpop.f32.mrf.mxu0 }
 0x596   : > { %8022 = vmatprep.subr.bf16.mxu0 %v9084_v37  ;;  %v10990_v6 = vpop.f32.mrf.mxu1  ;;  %v9120_v17 = vld [vmem:[%s11231_s4 + $0x18] sm:$0xff]  }
 0x597   : > { %8001 = vmatpush3.bf16.msra.mxu1 %v9085_v38  ;;  %v10992_v20 = vpop.f32.mrf.mxu0 }
 0x598   : > { %8023 = vmatpush3.bf16.msra.mxu0 %v9086_v25  ;;  %8002 = vmatprep.subr.bf16.mxu1 %v9087_v18  ;;  %v10998_v11 = vpop.f32.mrf.mxu1  ;;  %v9121_v25 = vld [vmem:[%s11231_s4 + $0x50] sm:$0xff]  }
 0x599   : > { %8024 = vmatprep.subr.bf16.mxu0 %v9088_v19  ;;  %v11000_v42 = vpop.f32.mrf.mxu0  ;;  %v9122_v19 = vld [vmem:[%s11231_s4 + $0x10] sm:$0xff]  }
 0x59b   : > { %8003 = vmatpush3.bf16.msra.mxu1 %v9089_v21  ;;  %v9123_v21 = vld [vmem:[%s11231_s4 + $0x48] sm:$0xff]  }
 0x59c   : > { %8025 = vmatpush3.bf16.msra.mxu0 %v9090_v16  ;;  %8004 = vmatprep.subr.bf16.mxu1 %v9091_v5  ;;  %v9124_v16 = vld [vmem:[%s11231_s4 + $0x8] sm:$0xff]   ;;  %v9125_v5 = vld [vmem:[%s11231_s4 + $0x40] sm:$0xff]  }
 0x59d   : > { %8026 = vmatprep.subr.bf16.mxu0 %v9092_v24  ;;  %v9126_v24 = vld [vmem:[%s11231_s4] sm:$0xff]  }
 0x59f   : > { %8005 = vmatpush3.bf16.msra.mxu1 %v9093_v22  ;;  %v9127_v22 = vld [vmem:[%s11231_s4 + $0xb8] sm:$0xff]  }
 0x5a0   : > { %8027 = vmatpush3.bf16.msra.mxu0 %v9094_v40  ;;  %8006 = vmatprep.subr.bf16.mxu1 %v9095_v2  ;;  %v9128_v40 = vld [vmem:[%s11231_s4 + $0xb0] sm:$0xff]   ;;  %v9129_v2 = vld [vmem:[%s11231_s4 + $0xa8] sm:$0xff]  }
 0x5a1   : > { %8028 = vmatprep.subr.bf16.mxu0 %v9096_v41  ;;  %v9130_v41 = vld [vmem:[%s11231_s4 + $0xa0] sm:$0xff]  }
 0x5a3   : > { %8007 = vmatpush3.bf16.msra.mxu1 %v9097_v51  ;;  %v9131_v51 = vld [vmem:[%s11231_s4 + $0x98] sm:$0xff]  }
 0x5a4   : > { %8029 = vmatpush3.bf16.msra.mxu0 %v9098_v27  ;;  %8008 = vmatprep.subr.bf16.mxu1 %v9099_v28  ;;  %v9132_v27 = vld [vmem:[%s11231_s4 + $0x90] sm:$0xff]   ;;  %v9133_v28 = vld [vmem:[%s11231_s4 + $0x88] sm:$0xff]  }
 0x5a5   : > { %8030 = vmatprep.subr.bf16.mxu0 %v9100_v29  ;;  %v9134_v29 = vld [vmem:[%s11231_s4 + $0x80] sm:$0xff]  }
 0x5a7   : > { %8009 = vmatpush3.bf16.msra.mxu1 %v9101_v4 }
 0x5a8   : > { %8031 = vmatpush3.bf16.msra.mxu0 %v9102_v30  ;;  %8010 = vmatprep.subr.bf16.mxu1 %v9103_v54 }
 0x5a9   : > { %8032 = vmatprep.subr.bf16.mxu0 %v9104_v31 }
 0x5ab   : > { %8011 = vmatpush3.bf16.msra.mxu1 %v9105_v32  ;;  %v3778_v32 = vrot.slane %v10994_v10, %v10354_v61 }
 0x5ac   : > { %8033 = vmatpush3.bf16.msra.mxu0 %v9106_v33  ;;  %8012 = vmatprep.subr.bf16.mxu1 %v9107_v34  ;;  %v3774_v33 = vrot.slane %v10994_v10, %v10352_v60 }
 0x5ad   : > { %8034 = vmatprep.subr.bf16.mxu0 %v9108_v35 }
 0x5af   : > { %8013 = vmatpush3.bf16.msra.mxu1 %v9109_v36 }
 0x5b0   : > { %8035 = vmatpush3.bf16.msra.mxu0 %v9110_v47  ;;  %8042 = vmatprep.subr.bf16.mxu1 %v9111_v45 }
 0x5b1   : > { %8116 = vmatprep.subr.bf16.mxu0 %v9779_v43 }
 0x5b2   : > { %5653 = vmatmul.mubr.bf16.vlgmr.msra.gmra.mxu1 %v10929_v56  ;;  %v9116_v56 = vld [vmem:[%s11231_s4 + $0x28] sm:$0xff]  }
 0x5b3   : > { %5694 = vmatmul.mubr.bf16.vlgmr.msra.gmra.mxu0 %v10933_v23  ;;  %8043 = vmatpush3.bf16.msra.mxu1 %v9112_v46  ;;  %v9117_v23 = vld [vmem:[%s11231_s4 + $0x60] sm:$0xff]  }
 0x5b4   : > { %8044 = vmatprep.subr.bf16.mxu1 %v9113_v48  ;;  %8132 = vmatprep.mubr.msk.bf16.mxu0 %vm9780_vm1, %v9779_v43 }
 0x5b5   : > { %8117 = vmatpush3.bf16.msra.mxu0 %v9127_v22 }
 0x5b6   : > { %8118 = vmatprep.subr.bf16.mxu0 %v9779_v43 }
 0x5b7   : > { %8045 = vmatpush3.bf16.msra.mxu1 %v9114_v49 }
 0x5b8   : > { %8046 = vmatprep.subr.bf16.mxu1 %v9115_v55 }
 0x5b9   : > { %8119 = vmatpush3.bf16.msra.mxu0 %v9128_v40  ;;  %v3762_v40 = vrot.slane %v10994_v10, %v10346_v57 }
 0x5ba   : > { %8120 = vmatprep.subr.bf16.mxu0 %v9779_v43 }
 0x5bb   : > { %8047 = vmatpush3.bf16.msra.mxu1 %v9116_v56 }
 0x5bc   : > { %8048 = vmatprep.subr.bf16.mxu1 %v9117_v23 }
 0x5bd   : > { %8121 = vmatpush3.bf16.msra.mxu0 %v9129_v2 }
 0x5be   : > { %8122 = vmatprep.subr.bf16.mxu0 %v9779_v43 }
 0x5bf   : > { %8049 = vmatpush3.bf16.msra.mxu1 %v9118_v8 }
 0x5c0   : > { %8050 = vmatprep.subr.bf16.mxu1 %v9119_v7 }
 0x5c1   : > { %8123 = vmatpush3.bf16.msra.mxu0 %v9130_v41  ;;  %v3786_v41 = vrot.slane %v10994_v10, %v10356_v62 }
 0x5c2   : > { %8124 = vmatprep.subr.bf16.mxu0 %v9779_v43 }
 0x5c3   : > { %8051 = vmatpush3.bf16.msra.mxu1 %v9120_v17 }
 0x5c4   : > { %8052 = vmatprep.subr.bf16.mxu1 %v9121_v25 }
 0x5c5   : > { %8125 = vmatpush3.bf16.msra.mxu0 %v9131_v51 }
 0x5c6   : > { %8126 = vmatprep.subr.bf16.mxu0 %v9779_v43 }
 0x5c7   : > { %8053 = vmatpush3.bf16.msra.mxu1 %v9122_v19 }
 0x5c8   : > { %8054 = vmatprep.subr.bf16.mxu1 %v9123_v21 }
 0x5c9   : > { %8127 = vmatpush3.bf16.msra.mxu0 %v9132_v27  ;;  %v3790_v27 = vrot.slane %v10994_v10, %v10360_v1 }
 0x5ca   : > { %8128 = vmatprep.subr.bf16.mxu0 %v9779_v43 }
 0x5cb   : > { %8055 = vmatpush3.bf16.msra.mxu1 %v9124_v16 }
 0x5cc   : > { %8056 = vmatprep.subr.bf16.mxu1 %v9125_v5 }
 0x5cd   : > { %8129 = vmatpush3.bf16.msra.mxu0 %v9133_v28  ;;  %v5315_v28 = vadd.f32 %v10990_v6, %v3762_v40 }
 0x5ce   : > { %8130 = vmatprep.subr.bf16.mxu0 %v9779_v43 }
 0x5cf   : > { %8057 = vmatpush3.bf16.msra.mxu1 %v9126_v24  ;;  %v3766_v24 = vrot.slane %v10994_v10, %v10350_v59  ;;  %v5358_v1 = vadd.f32 %v10992_v20, %v5315_v28 }
 0x5d0   : > { %8136 = vmatprep.subr.bf16.mxu1 %v9779_v43 }
 0x5d1   : > { %8131 = vmatpush3.bf16.msra.mxu0 %v9134_v29 }
 0x5d2   : > { %v5396_v12 = vpop.f32.mrf.mxu1 }
 0x5d3   : > { %v5397_v14 = vadd.f32 %v5396_v12, %v3770_v44  ;;  %v5439_v53 = vpop.f32.mrf.mxu0 }
 0x5d4   : > { %v5398_v26 = vpop.f32.mrf.mxu1 }
 0x5d5   : > { %v11005_v15 = vadd.f32 %v5439_v53, %v5397_v14  ;;  %v5441_v3 = vpop.f32.mrf.mxu0  ;;  %v5399_v45 = vadd.f32 %v5398_v26, %v3774_v33 }
 0x5d6   : > { %v5400_v9 = vpop.f32.mrf.mxu1 }
 0x5d7   : > { %v5401_v37 = vadd.f32 %v5400_v9, %v3770_v44  ;;  %v5443_v38 = vpop.f32.mrf.mxu0  ;;  %v5442_v56 = vadd.f32 %v5441_v3, %v5399_v45  ;;  %v3782_v3 = vrot.slane %v10994_v10, %v10358_v63 }
 0x5d8   : > { %v5402_v4 = vpop.f32.mrf.mxu1 }
 0x5d9   : > { %v11013_v18 = vadd.f32 %v5443_v38, %v5401_v37  ;;  %v5445_v54 = vpop.f32.mrf.mxu0  ;;  %v5403_v35 = vadd.f32 %v5402_v4, %v3774_v33  ;;  %v7857_v14 = vmul.f32 -1.442695, %v5442_v56  ;;  %v5313_v4 = vadd.f32 %v10986_v13, %v3766_v24 }
 0x5db   : > { %v5446_v49 = vadd.f32 %v5445_v54, %v5403_v35 }
 0x5dd   : > { %v7860_v44 = vmul.f32 -1.442695, %v5446_v49 }
 0x5df   : > { %9333 = vpow2.f32 %v7860_v44 }
 0x5ec   : > { %v9334_v7 = vpop.eup %9333 }
 0x5ed   : > { %v5723_v26 = vadd.f32 1.0, %v9334_v7 }
 0x612   : > { %v5482_v30 = vpop.f32.mrf.mxu1 }
 0x613   : > { %v5525_v34 = vpop.f32.mrf.mxu0  ;;  %v5483_v47 = vadd.f32 %v5482_v30, %v3778_v32 }
 0x614   : > { %v5484_v31 = vpop.f32.mrf.mxu1 }
 0x615   : > { %v5527_v46 = vpop.f32.mrf.mxu0  ;;  %v5526_v55 = vadd.f32 %v5525_v34, %v5483_v47  ;;  %v5485_v16 = vadd.f32 %v5484_v31, %v3782_v3  ;;  %v5311_v31 = vadd.f32 %v10982_v39, %v3762_v40 }
 0x616   : > { %v5486_v36 = vpop.f32.mrf.mxu1 }
 0x617   : > { %v5487_v48 = vadd.f32 %v5486_v36, %v3778_v32  ;;  %v5529_v23 = vpop.f32.mrf.mxu0  ;;  %v7858_v12 = vmul.f32 -1.442695, %v5526_v55  ;;  %v5528_v22 = vadd.f32 %v5527_v46, %v5485_v16  ;;  %v5317_v32 = vadd.f32 %v10998_v11, %v3766_v24 }
 0x618   : > { %v5488_v21 = vpop.f32.mrf.mxu1  ;;  %v5356_v46 = vadd.f32 %v10988_v52, %v5313_v4  ;;  %v5354_v11 = vadd.f32 %v10984_v50, %v5311_v31 }
 0x619   : > { %v5530_v8 = vadd.f32 %v5529_v23, %v5487_v48  ;;  %9335 = vpow2.f32 %v7858_v12  ;;  %v5489_v5 = vadd.f32 %v5488_v21, %v3782_v3  ;;  %v5531_v2 = vpop.f32.mrf.mxu0  ;;  %v7859_v30 = vmul.f32 -1.442695, %v5528_v22 }
 0x61a   : > { %9337 = vpow2.f32 %v7857_v14  ;;  %v5360_v55 = vadd.f32 %v11000_v42, %v5317_v32 }
 0x61b   : > { %v7861_v53 = vmul.f32 -1.442695, %v5530_v8  ;;  %v5532_v51 = vadd.f32 %v5531_v2, %v5489_v5  ;;  %v7568_v2 = vld [vmem:[#allocation12 + $0x8] ss:$0 sm:$0xff] }
 0x61d   : > { %9339 = vpow2.f32 %v7861_v53  ;;  %v7862_v36 = vmul.f32 -1.442695, %v5532_v51 }
 0x61e   : > { %9341 = vrcp.f32 %v5723_v26 }
 0x626   : > { %v9336_v17 = vpop.eup %9335 }
 0x627   : > { %v9338_v9 = vpop.eup %9337  ;;  %v5721_v38 = vadd.f32 1.0, %v9336_v17 }
 0x628   : > { %v5720_v25 = vadd.f32 1.0, %v9338_v9 }
 0x629   : > { %9343 = vrcp.f32 %v5721_v38 }
 0x62a   : > { %v9340_v37 = vpop.eup %9339  ;;  %9345 = vrcp.f32 %v5720_v25 }
 0x62b   : > { %v5724_v19 = vadd.f32 1.0, %v9340_v37  ;;  %v9342_v35 = vpop.eup %9341 }
 0x62c   : > { %v5741_v23 = vadd.f32 %v9342_v35, %v5358_v1 }
 0x62d   : > { %9347 = vrcp.f32 %v5724_v19 }
 0x62e   : > { %9349 = vpow2.f32 %v7859_v30 }
 0x62f   : > { %9351 = vpow2.f32 %v7862_v36 }
 0x636   : > { %v9344_v45 = vpop.eup %9343 }
 0x637   : > { %v9346_v6 = vpop.eup %9345  ;;  %v5739_v44 = vadd.f32 %v9344_v45, %v5356_v46 }
 0x638   : > { %v5738_v14 = vadd.f32 %v9346_v6, %v5354_v11  ;;  %v9144_v11 = vld [vmem:[#allocation13 + $0xc8] ss:$24 sps:$4 sm:$0xff]  }
 0x63a   : > { %v9348_v39 = vpop.eup %9347 }
 0x63b   : > { %v5742_v9 = vadd.f32 %v9348_v39, %v5360_v55  ;;  %v9350_v21 = vpop.eup %9349  ;;  %v9140_v39 = vld [vmem:[#allocation13 + $0xfc] ss:$24 sps:$4 sm:$0xff]   ;;  %v9146_v55 = vld [vmem:[#allocation13 + $0xcc] ss:$24 sps:$4 sm:$0xff]  }
 0x63c   : > { %v9352_v16 = vpop.eup %9351  ;;  %v5722_v5 = vadd.f32 1.0, %v9350_v21  ;;  %6377 = vmatprep.subr.bf16.mxu0 %v9140_v39  ;;  %v9149_v21 = vld [vmem:[#allocation13 + $0x94] ss:$24 sps:$4 sm:$0xff]  }
 0x63d   : > { %v5725_v24 = vadd.f32 1.0, %v9352_v16  ;;  %v9147_v16 = vld [vmem:[#allocation13 + $0x90] ss:$24 sps:$4 sm:$0xff]  }
 0x63e   : > { %9353 = vrcp.f32 %v5722_v5  ;;  %v9155_v5 = vld [vmem:[#allocation13 + $0x64] ss:$24 sps:$4 sm:$0xff]  }
 0x63f   : > { %9355 = vrcp.f32 %v5725_v24  ;;  %v9153_v24 = vld [vmem:[#allocation13 + $0x60] ss:$24 sps:$4 sm:$0xff]  }
 0x640   : > { %v9195_v39 = vld [vmem:[#allocation16 + $0x78] ss:$12 sps:$4 sm:$0xff]  }
 0x652   : > { %v5568_v29 = vpop.f32.mrf.mxu1 }
 0x653   : > { %v5611_v54 = vpop.f32.mrf.mxu0  ;;  %v5569_v33 = vadd.f32 %v5568_v29, %v3786_v41 }
 0x654   : > { %v5570_v34 = vpop.f32.mrf.mxu1 }
 0x655   : > { %v5571_v62 = vadd.f32 %v5570_v34, %v3790_v27  ;;  %v5613_v47 = vpop.f32.mrf.mxu0  ;;  %v5612_v56 = vadd.f32 %v5611_v54, %v5569_v33  ;;  %v9354_v54 = vpop.eup %9353 }
 0x656   : > { %v5572_v10 = vpop.f32.mrf.mxu1  ;;  %v9356_v35 = vpop.eup %9355  ;;  %v5740_v36 = vadd.f32 %v9354_v54, %v11005_v15  ;;  %v9150_v15 = vld [vmem:[#allocation13 + $0x98] ss:$24 sps:$4 sm:$0xff]  }
 0x657   : > { %v5614_v13 = vadd.f32 %v5613_v47, %v5571_v62  ;;  %v5573_v48 = vadd.f32 %v5572_v10, %v3786_v41  ;;  %v5615_v49 = vpop.f32.mrf.mxu0  ;;  %v5744_v37 = vadd.f32 %v5738_v14, %v5612_v56  ;;  %v5743_v10 = vadd.f32 %v9356_v35, %v11013_v18  ;;  %v9152_v56 = vld [vmem:[#allocation13 + $0x9c] ss:$24 sps:$4 sm:$0xff]   ;;  %v9156_v18 = vld [vmem:[#allocation13 + $0x68] ss:$24 sps:$4 sm:$0xff]  }
 0x658   : > { %v5574_v8 = vpop.f32.mrf.mxu1 }
 0x659   : > { %v5616_v12 = vadd.f32 %v5615_v49, %v5573_v48  ;;  %v5575_v20 = vadd.f32 %v5574_v8, %v3790_v27  ;;  %v5617_v53 = vpop.f32.mrf.mxu0  ;;  %v5745_v7 = vadd.f32 %v5739_v44, %v5614_v13  ;;  %v5750_v3 = vmax.f32 %v5744_v37, 0.0  ;;  %v9138_v49 = vld [vmem:[#allocation13 + $0xf8] ss:$24 sps:$4 sm:$0xff]  }
 0x65b   : > { %v5747_v52 = vadd.f32 %v5741_v23, %v5616_v12  ;;  %v5618_v17 = vadd.f32 %v5617_v53, %v5575_v20  ;;  %v5751_v25 = vmax.f32 %v5745_v7, 0.0  ;;  %v9158_v23 = vld [vmem:[#allocation13 + $0x6c] ss:$24 sps:$4 sm:$0xff]  }
 0x65d   : > { %v5748_v26 = vadd.f32 %v5742_v9, %v5618_v17  ;;  %v5753_v38 = vmax.f32 %v5747_v52, 0.0 }
 0x65f   : > { %v5754_v50 = vmax.f32 %v5748_v26, 0.0  ;;  %v5756_v19 = vpack.c.bf16 %v5753_v38, %v5750_v3  ;;  %v9137_v38 = vld [vmem:[#allocation13 + $0xf4] ss:$24 sps:$4 sm:$0xff]   ;;  %v9143_v3 = vld [vmem:[#allocation13 + $0xc4] ss:$24 sps:$4 sm:$0xff]  }
 0x661   : > { %v5757_v42 = vpack.c.bf16 %v5754_v50, %v5751_v25  ;;  %v9135_v50 = vld [vmem:[#allocation13 + $0xf0] ss:$24 sps:$4 sm:$0xff]  }
 0x663   : > { %5983 = vmatprep.mubr.bf16.mxu1 %v5757_v42  ;;  %v9381_v42 = vld [vmem:[#allocation4] sm:$0xff]  }
 0x664   : > { %5984 = vmatmul.mubr.bf16.vlgmr.msra.gmra.mxu1 %v5756_v19  ;;  %v9141_v19 = vld [vmem:[#allocation13 + $0xc0] ss:$24 sps:$4 sm:$0xff]  }
 0x665   : > { %8138 = vmatprep.mubr.msk.bf16.mxu1 %vm9780_vm1, %v9779_v43 }
 0x672   : > { %v8014_v22 = vpop.f32.mrf.mxu1 }
 0x673   : > { %v8036_v40 = vpop.f32.mrf.mxu0 }
 0x674   : > { %v8015_v41 = vpop.f32.mrf.mxu1 }
 0x675   : > { %v8016_v51 = vadd.f32 %v8015_v41, %v8014_v22  ;;  %v8037_v27 = vpop.f32.mrf.mxu0  ;;  %v9161_v22 = vld [vmem:[#allocation13 + $0x34] ss:$24 sps:$4 sm:$0xff]  }
 0x676   : > { %v8017_v28 = vpop.f32.mrf.mxu1  ;;  %v8038_v4 = vadd.f32 %v8037_v27, %v8036_v40  ;;  %v9159_v40 = vld [vmem:[#allocation13 + $0x30] ss:$24 sps:$4 sm:$0xff]   ;;  %v9164_v41 = vld [vmem:[#allocation13 + $0x3c] ss:$24 sps:$4 sm:$0xff]   ;;  %v9165_v27 = vld [vmem:[#allocation13] ss:$24 sps:$4 sm:$0xff]  }
 0x677   : > { %v5655_v29 = vadd.f32 %v8016_v51, %v7568_v2  ;;  %v8039_v30 = vpop.f32.mrf.mxu0  ;;  %v9167_v51 = vld [vmem:[#allocation13 + $0x4] ss:$24 sps:$4 sm:$0xff]  }
 0x678   : > { %v8018_v31 = vpop.f32.mrf.mxu1 }
 0x679   : > { %v5696_v32 = vadd.f32 %v8038_v4, %v5655_v29  ;;  %v8019_v33 = vadd.f32 %v8018_v31, %v8017_v28  ;;  %v8040_v34 = vpop.f32.mrf.mxu0  ;;  %v9170_v28 = vld [vmem:[#allocation13 + $0xc] ss:$24 sps:$4 sm:$0xff]   ;;  %v9168_v29 = vld [vmem:[#allocation13 + $0x8] ss:$24 sps:$4 sm:$0xff]  }
 0x67a   : > { %v8041_v47 = vadd.f32 %v8040_v34, %v8039_v30  ;;  %v9173_v4 = vld [vmem:[#allocation13 + $0x104] ss:$24 sps:$4 sm:$0xff]  }
 0x67b   : > { %v5658_v62 = vadd.f32 %v8019_v33, %v7568_v2  ;;  %v5746_v45 = vadd.f32 %v5740_v36, %v5696_v32  ;;  %v9162_v2 = vld [vmem:[#allocation13 + $0x38] ss:$24 sps:$4 sm:$0xff]  }
 0x67c   : > { %v9191_v30 = vld [vmem:[#allocation16 + $0xac] ss:$12 sps:$4 sm:$0xff]  }
 0x67d   : > { %v5699_v1 = vadd.f32 %v8041_v47, %v5658_v62  ;;  %v5752_v46 = vmax.f32 %v5746_v45, 0.0  ;;  %v9171_v36 = vld [vmem:[#allocation13 + $0x100] ss:$24 sps:$4 sm:$0xff]   ;;  %v9176_v47 = vld [vmem:[#allocation13 + $0xd4] ss:$24 sps:$4 sm:$0xff]  }
 0x67e   : > { %v9189_v45 = vld [vmem:[#allocation16 + $0xa8] ss:$12 sps:$4 sm:$0xff]  }
 0x67f   : > { %v5749_v6 = vadd.f32 %v5743_v10, %v5699_v1  ;;  %v9194_v1 = vld [vmem:[#allocation16 + $0x94] ss:$12 sps:$4 sm:$0xff]  }
 0x680   : > { %v9174_v10 = vld [vmem:[#allocation13 + $0xd0] ss:$24 sps:$4 sm:$0xff]  }
 0x681   : > { %v5755_v13 = vmax.f32 %v5749_v6, 0.0  ;;  %v9179_v6 = vld [vmem:[#allocation13 + $0xa4] ss:$24 sps:$4 sm:$0xff]  }
 0x683   : > { %v5758_v48 = vpack.c.bf16 %v5755_v13, %v5752_v46  ;;  %v9192_v46 = vld [vmem:[#allocation16 + $0x90] ss:$12 sps:$4 sm:$0xff]  }
 0x684   : > { %v9197_v13 = vld [vmem:[#allocation16 + $0x7c] ss:$12 sps:$4 sm:$0xff]  }
 0x685   : > { %8133 = vmatmul.mubr.bf16.vlgmr.msra.gmra.mxu0 %v5758_v48  ;;  %v9177_v48 = vld [vmem:[#allocation13 + $0xa0] ss:$24 sps:$4 sm:$0xff]  }
 0x686   : > { %6405 = vmatprep.mubr.bf16.mxu0 %v9778_v0  ;;  %6378 = vmatpush1.bf16.msra.mxu0 %v9138_v49  ;;  %v9182_v49 = vld [vmem:[#allocation13 + $0x74] ss:$24 sps:$4 sm:$0xff]  }
 0x687   : > { %6379 = vmatprep.subr.bf16.mxu0 %v9146_v55  ;;  %v9185_v55 = vld [vmem:[#allocation13 + $0x44] ss:$24 sps:$4 sm:$0xff]  }
 0x68a   : > { %6380 = vmatpush1.bf16.msra.mxu0 %v9144_v11  ;;  %v9180_v11 = vld [vmem:[#allocation13 + $0x70] ss:$24 sps:$4 sm:$0xff]  }
 0x68b   : > { %6381 = vmatprep.subr.bf16.mxu0 %v9152_v56  ;;  %v9186_v56 = vld [vmem:[#allocation13 + $0x10] ss:$24 sps:$4 sm:$0xff]  }
 0x68e   : > { %6382 = vmatpush1.bf16.msra.mxu0 %v9150_v15  ;;  %v9188_v15 = vld [vmem:[#allocation13 + $0x14] ss:$24 sps:$4 sm:$0xff]  }
 0x68f   : > { %6383 = vmatprep.subr.bf16.mxu0 %v9158_v23  ;;  %v9198_v23 = vld [vmem:[#allocation16 + $0x60] ss:$12 sps:$4 sm:$0xff]  }
 0x692   : > { %6384 = vmatpush1.bf16.msra.mxu0 %v9156_v18  ;;  %v9200_v18 = vld [vmem:[#allocation16 + $0x64] ss:$12 sps:$4 sm:$0xff]  }
 0x693   : > { %6385 = vmatprep.subr.bf16.mxu0 %v9164_v41  ;;  %v9236_v41 = vld [vmem:[#allocation16 + $0x110] ss:$12 sps:$4 sm:$0xff]  }
 0x696   : > { %6386 = vmatpush1.bf16.msra.mxu0 %v9162_v2  ;;  %v9235_v2 = vld [vmem:[#allocation16 + $0x10c] ss:$12 sps:$4 sm:$0xff]  }
 0x697   : > { %6387 = vmatprep.subr.bf16.mxu0 %v9170_v28  ;;  %v9240_v28 = vld [vmem:[#allocation16 + $0xf4] ss:$12 sps:$4 sm:$0xff]  }
 0x69a   : > { %6388 = vmatpush1.bf16.msra.mxu0 %v9168_v29  ;;  %v9241_v29 = vld [vmem:[#allocation16 + $0xf8] ss:$12 sps:$4 sm:$0xff]  }
 0x69b   : > { %6866 = vmatprep.subr.bf16.mxu0 %v9191_v30  ;;  %v9242_v30 = vld [vmem:[#allocation16 + $0x38] ss:$12 sps:$4 sm:$0xff]  }
 0x724   : > { %v8058_v8 = vpop.f32.mrf.mxu1 }
 0x726   : > { %v8059_v44 = vpop.f32.mrf.mxu1 }
 0x727   : > { %v8060_v7 = vadd.f32 %v8059_v44, %v8058_v8  ;;  %v9203_v8 = vld [vmem:[#allocation16 + $0x4c] ss:$12 sps:$4 sm:$0xff]   ;;  %v9201_v44 = vld [vmem:[#allocation16 + $0x48] ss:$12 sps:$4 sm:$0xff]  }
 0x728   : > { %v8061_v12 = vpop.f32.mrf.mxu1 }
 0x72a   : > { %v8062_v20 = vpop.f32.mrf.mxu1 }
 0x72b   : > { %v8063_v52 = vadd.f32 %v8062_v20, %v8061_v12  ;;  %v9206_v12 = vld [vmem:[#allocation16 + $0x34] ss:$12 sps:$4 sm:$0xff]   ;;  %v9204_v20 = vld [vmem:[#allocation16 + $0x30] ss:$12 sps:$4 sm:$0xff]  }
 0x745   : > { %v6026_v14 = vpop.f32.mrf.mxu0 }
 0x746   : > { %v6027_v9 = vadd.f32 %v8060_v7, %v6026_v14  ;;  %v9209_v14 = vld [vmem:[#allocation16 + $0x1c] ss:$12 sps:$4 sm:$0xff]   ;;  %v9212_v7 = vld [vmem:[#allocation16 + $0x4] ss:$12 sps:$4 sm:$0xff]  }
 0x747   : > { %v8134_v53 = vpop.f32.mrf.mxu0 }
 0x748   : > { %v9207_v53 = vld [vmem:[#allocation16 + $0x18] ss:$12 sps:$4 sm:$0xff]  }
 0x749   : > { %v6029_v17 = vpop.f32.mrf.mxu0 }
 0x74a   : > { %v6030_v37 = vadd.f32 %v8063_v52, %v6029_v17  ;;  %v9210_v52 = vld [vmem:[#allocation16] ss:$12 sps:$4 sm:$0xff]  }
 0x74b   : > { %v8135_v26 = vpop.f32.mrf.mxu0  ;;  %v9215_v17 = vld [vmem:[#allocation16 + $0x16c] ss:$12 sps:$4 sm:$0xff]  }
 0x74c   : > { %v6033_v25 = vpack.c.bf16 %v6030_v37, %v6027_v9  ;;  %v9216_v9 = vld [vmem:[#allocation16 + $0x170] ss:$12 sps:$4 sm:$0xff]   ;;  %v9213_v37 = vld [vmem:[#allocation16 + $0x168] ss:$12 sps:$4 sm:$0xff]  }
 0x74d   : > { %v9217_v26 = vld [vmem:[#allocation16 + $0xb0] ss:$12 sps:$4 sm:$0xff]  }
 0x74e   : > { %8137 = vmatpush3.bf16.msra.mxu1 %v6033_v25  ;;  %v9221_v25 = vld [vmem:[#allocation16 + $0x158] ss:$12 sps:$4 sm:$0xff]  }
 0x74f   : > { %6334 = vmatprep.subr.bf16.mxu1 %v9137_v38  ;;  %v9220_v38 = vld [vmem:[#allocation16 + $0x154] ss:$12 sps:$4 sm:$0xff]  }
 0x751   : > { %8139 = vmatmul.mubr.msk.bf16.vlgmr.msra.gmra.mxu1 %vm2220_vm2, %v9381_v42  ;;  %v9225_v42 = vld [vmem:[#allocation16 + $0x13c] ss:$12 sps:$4 sm:$0xff]  }
 0x752   : > { %6335 = vmatpush1.bf16.msra.mxu1 %v9135_v50  ;;  %6362 = vmatprep.mubr.bf16.mxu1 %v9778_v0  ;;  %v9218_v50 = vld [vmem:[#allocation16 + $0x150] ss:$12 sps:$4 sm:$0xff]  }
 0x753   : > { %6336 = vmatprep.subr.bf16.mxu1 %v9143_v3  ;;  %v9222_v3 = vld [vmem:[#allocation16 + $0x98] ss:$12 sps:$4 sm:$0xff]  }
 0x756   : > { %6337 = vmatpush1.bf16.msra.mxu1 %v9141_v19  ;;  %v9226_v19 = vld [vmem:[#allocation16 + $0x140] ss:$12 sps:$4 sm:$0xff]  }
 0x757   : > { %6338 = vmatprep.subr.bf16.mxu1 %v9149_v21  ;;  %v9223_v21 = vld [vmem:[#allocation16 + $0x138] ss:$12 sps:$4 sm:$0xff]  }
 0x75a   : > { %6339 = vmatpush1.bf16.msra.mxu1 %v9147_v16  ;;  %v9227_v16 = vld [vmem:[#allocation16 + $0x80] ss:$12 sps:$4 sm:$0xff]  }
 0x75b   : > { %6340 = vmatprep.subr.bf16.mxu1 %v9155_v5  ;;  %v9230_v5 = vld [vmem:[#allocation16 + $0x124] ss:$12 sps:$4 sm:$0xff]  }
 0x75e   : > { %6341 = vmatpush1.bf16.msra.mxu1 %v9153_v24  ;;  %v9231_v24 = vld [vmem:[#allocation16 + $0x128] ss:$12 sps:$4 sm:$0xff]  }
 0x75f   : > { %6342 = vmatprep.subr.bf16.mxu1 %v9161_v22  ;;  %v9228_v22 = vld [vmem:[#allocation16 + $0x120] ss:$12 sps:$4 sm:$0xff]  }
 0x762   : > { %6343 = vmatpush1.bf16.msra.mxu1 %v9159_v40  ;;  %v9232_v40 = vld [vmem:[#allocation16 + $0x68] ss:$12 sps:$4 sm:$0xff]  }
 0x763   : > { %6344 = vmatprep.subr.bf16.mxu1 %v9167_v51  ;;  %v9233_v51 = vld [vmem:[#allocation16 + $0x108] ss:$12 sps:$4 sm:$0xff]  }
 0x766   : > { %6345 = vmatpush1.bf16.msra.mxu1 %v9165_v27  ;;  %v9237_v27 = vld [vmem:[#allocation16 + $0x50] ss:$12 sps:$4 sm:$0xff]  }
 0x767   : > { %6420 = vmatprep.subr.bf16.mxu1 %v9173_v4  ;;  %v9238_v4 = vld [vmem:[#allocation16 + $0xf0] ss:$12 sps:$4 sm:$0xff]  }
 0x811   : > { %v6068_v54 = vpop.f32.mrf.mxu1 }
 0x812   : > { %v6075_v33 = vmax.f32 %v6068_v54, 0.0  ;;  %v9245_v54 = vld [vmem:[#allocation16 + $0xdc] ss:$12 sps:$4 sm:$0xff]  }
 0x813   : > { %v8140_v31 = vpop.f32.mrf.mxu1 }
 0x814   : > { %v9246_v31 = vld [vmem:[#allocation16 + $0xe0] ss:$12 sps:$4 sm:$0xff]  }
 0x815   : > { %v6071_v32 = vpop.f32.mrf.mxu1 }
 0x816   : > { %v6076_v34 = vmax.f32 %v6071_v32, 0.0  ;;  %v9243_v32 = vld [vmem:[#allocation16 + $0xd8] ss:$12 sps:$4 sm:$0xff]  }
 0x817   : > { %v8141_v35 = vpop.f32.mrf.mxu1 }
 0x818   : > { %v6077_v62 = vpack.c.bf16 %v6076_v34, %v6075_v33  ;;  %v9247_v33 = vld [vmem:[#allocation16 + $0x20] ss:$12 sps:$4 sm:$0xff]   ;;  %v9250_v34 = vld [vmem:[#allocation16 + $0xc4] ss:$12 sps:$4 sm:$0xff]   ;;  %v9251_v35 = vld [vmem:[#allocation16 + $0xc8] ss:$12 sps:$4 sm:$0xff]  }
 0x81a   : > { %7924 = vmatmul.mubr.msk.bf16.vlgmr.msra.gmra.mxu1 %vm6326_vm4, %v6077_v62  ;;  %7925 = vmatmul.mubr.msk.bf16.vlgmr.msra.gmra.mxu0 %vm6326_vm4, %v6077_v62 }
 0x81b   : > { %6421 = vmatpush1.bf16.msra.mxu1 %v9171_v36  ;;  %6448 = vmatprep.mubr.bf16.mxu1 %v9778_v0  ;;  %v9183_v0 = vld [vmem:[#allocation13 + $0x40] ss:$24 sps:$4 sm:$0xff]   ;;  %v9248_v36 = vld [vmem:[#allocation16 + $0xc0] ss:$12 sps:$4 sm:$0xff]  }
 0x81c   : > { %6422 = vmatprep.subr.bf16.mxu1 %v9176_v47  ;;  %6867 = vmatpush1.bf16.msra.mxu0 %v9189_v45  ;;  %v6114_v47 = vld [vmem:[#allocation15] sm:$0x3f] }
 0x81d   : > { %6868 = vmatprep.subr.bf16.mxu0 %v9194_v1  ;;  %v6127_v45 = vrot.slane %v6114_v47, %v10348_v58  ;;  %v6131_v1 = vrot.slane %v6114_v47, %v10352_v60 }
 0x81f   : > { %6423 = vmatpush1.bf16.msra.mxu1 %v9174_v10 }
 0x820   : > { %6424 = vmatprep.subr.bf16.mxu1 %v9179_v6  ;;  %6869 = vmatpush1.bf16.msra.mxu0 %v9192_v46 }
 0x821   : > { %6870 = vmatprep.subr.bf16.mxu0 %v9197_v13 }
 0x823   : > { %6425 = vmatpush1.bf16.msra.mxu1 %v9177_v48 }
 0x824   : > { %6426 = vmatprep.subr.bf16.mxu1 %v9182_v49  ;;  %6871 = vmatpush1.bf16.msra.mxu0 %v9195_v39 }
 0x825   : > { %6872 = vmatprep.subr.bf16.mxu0 %v9200_v18 }
 0x827   : > { %6427 = vmatpush1.bf16.msra.mxu1 %v9180_v11 }
 0x828   : > { %6428 = vmatprep.subr.bf16.mxu1 %v9185_v55  ;;  %6873 = vmatpush1.bf16.msra.mxu0 %v9198_v23 }
 0x829   : > { %6874 = vmatprep.subr.bf16.mxu0 %v9203_v8 }
 0x82b   : > { %6429 = vmatpush1.bf16.msra.mxu1 %v9183_v0 }
 0x82c   : > { %6430 = vmatprep.subr.bf16.mxu1 %v9188_v15  ;;  %6875 = vmatpush1.bf16.msra.mxu0 %v9201_v44 }
 0x82d   : > { %6876 = vmatprep.subr.bf16.mxu0 %v9206_v12 }
 0x82f   : > { %6431 = vmatpush1.bf16.msra.mxu1 %v9186_v56 }
 0x830   : > { %6877 = vmatpush1.bf16.msra.mxu0 %v9204_v20  ;;  %8075 = vmatprep.subr.bf16.mxu1 %v9216_v9 }
 0x831   : > { %6878 = vmatprep.subr.bf16.mxu0 %v9209_v14 }
 0x832   : > { %7926 = vmatmul.mubr.msk.bf16.vlgmr.msra.gmra.mxu1 %vm6326_vm4, %v6077_v62  ;;  %v9252_v62 = vld [vmem:[#allocation16 + $0x8] ss:$12 sps:$4 sm:$0xff]  }
 0x833   : > { %8076 = vmatpush3.bf16.msra.mxu1 %v9217_v26 }
 0x834   : > { %6879 = vmatpush1.bf16.msra.mxu0 %v9207_v53  ;;  %8077 = vmatprep.subr.bf16.mxu1 %v9221_v25  ;;  %v6135_v25 = vrot.slane %v6114_v47, %v10354_v61 }
 0x835   : > { %6880 = vmatprep.subr.bf16.mxu0 %v9212_v7 }
 0x837   : > { %8078 = vmatpush3.bf16.msra.mxu1 %v9222_v3  ;;  %v6139_v3 = vrot.slane %v6114_v47, %v10358_v63 }
 0x838   : > { %6881 = vmatpush1.bf16.msra.mxu0 %v9210_v52  ;;  %8079 = vmatprep.subr.bf16.mxu1 %v9226_v19 }
 0x839   : > { %6882 = vmatprep.subr.bf16.mxu0 %v9215_v17 }
 0x83b   : > { %8080 = vmatpush3.bf16.msra.mxu1 %v9227_v16 }
 0x83c   : > { %6883 = vmatpush2.bf16.msra.mxu0 %v9213_v37  ;;  %8081 = vmatprep.subr.bf16.mxu1 %v9231_v24  ;;  %v6119_v37 = vrot.slane %v6114_v47, %v10346_v57 }
 0x83d   : > { %6884 = vmatprep.subr.bf16.mxu0 %v9220_v38  ;;  %v6123_v38 = vrot.slane %v6114_v47, %v10350_v59 }
 0x83f   : > { %8082 = vmatpush3.bf16.msra.mxu1 %v9232_v40 }
 0x840   : > { %6885 = vmatpush2.bf16.msra.mxu0 %v9218_v50  ;;  %8083 = vmatprep.subr.bf16.mxu1 %v9236_v41 }
 0x841   : > { %6886 = vmatprep.subr.bf16.mxu0 %v9225_v42 }
 0x843   : > { %8084 = vmatpush3.bf16.msra.mxu1 %v9237_v27 }
 0x844   : > { %6887 = vmatpush2.bf16.msra.mxu0 %v9223_v21  ;;  %8085 = vmatprep.subr.bf16.mxu1 %v9241_v29 }
 0x845   : > { %6888 = vmatprep.subr.bf16.mxu0 %v9230_v5 }
 0x847   : > { %8086 = vmatpush3.bf16.msra.mxu1 %v9242_v30 }
 0x848   : > { %6889 = vmatpush2.bf16.msra.mxu0 %v9228_v22  ;;  %8087 = vmatprep.subr.bf16.mxu1 %v9246_v31 }
 0x849   : > { %6890 = vmatprep.subr.bf16.mxu0 %v9235_v2 }
 0x84b   : > { %8088 = vmatpush3.bf16.msra.mxu1 %v9247_v33 }
 0x84c   : > { %6891 = vmatpush2.bf16.msra.mxu0 %v9233_v51  ;;  %8089 = vmatprep.subr.bf16.mxu1 %v9251_v35 }
 0x84d   : > { %6892 = vmatprep.subr.bf16.mxu0 %v9240_v28 }
 0x84f   : > { %8090 = vmatpush3.bf16.msra.mxu1 %v9252_v62 }
 0x850   : > { %6893 = vmatpush2.bf16.msra.mxu0 %v9238_v4  ;;  %8142 = vmatprep.subr.bf16.mxu1 %v9779_v43 }
 0x851   : > { %6894 = vmatprep.subr.bf16.mxu0 %v9245_v54  ;;  %v6505_v54 = vpop.permute.xlu1 %6504 }
 0x854   : > { %6895 = vmatpush2.bf16.msra.mxu0 %v9243_v32 }
 0x855   : > { %6896 = vmatprep.subr.bf16.mxu0 %v9250_v34  ;;  %v6500_v34 = vpop.permute.xlu0 %6499 }
 0x858   : > { %6897 = vmatpush2.bf16.msra.mxu0 %v9248_v36 }
 0x8da   : > { %v6407_v10 = vpop.f32.mrf.mxu0  ;;  %v6364_v18 = vpop.f32.mrf.mxu1 }
 0x8db   : > { %v6408_v6 = vadd.f32 %v6407_v10, %v6127_v45  ;;  %v6365_v50 = vadd.f32 %v6364_v18, %v6119_v37  ;;  %v9255_v18 = vld [vmem:[%s11232_s21 + $0x28] sm:$0xff]  }
 0x8dc   : > { %v6409_v46 = vpop.f32.mrf.mxu0  ;;  %v6366_v23 = vpop.f32.mrf.mxu1 }
 0x8dd   : > { %v7927_v13 = vmul.f32 -1.442695, %v6408_v6  ;;  %v6410_v48 = vadd.f32 %v6409_v46, %v6131_v1  ;;  %v6367_v21 = vadd.f32 %v6366_v23, %v6123_v38  ;;  %v6521_v6 = vpop.permute.xlu1 %6520  ;;  %v9256_v23 = vld [vmem:[%s11232_s21 + $0x20] sm:$0xff]  }
 0x8de   : > { %v6411_v49 = vpop.f32.mrf.mxu0  ;;  %v6368_v12 = vpop.f32.mrf.mxu1 }
 0x8df   : > { %9357 = vpow2.f32 %v7927_v13  ;;  %v7928_v39 = vmul.f32 -1.442695, %v6410_v48  ;;  %v6412_v11 = vadd.f32 %v6411_v49, %v6127_v45  ;;  %v6369_v22 = vadd.f32 %v6368_v12, %v6119_v37  ;;  %v6516_v13 = vpop.permute.xlu0 %6515  ;;  %v9260_v12 = vld [vmem:[%s11232_s21] sm:$0xff]  }
 0x8e0   : > { %v6413_v55 = vpop.f32.mrf.mxu0  ;;  %v6370_v52 = vpop.f32.mrf.mxu1 }
 0x8e1   : > { %9359 = vpow2.f32 %v7928_v39  ;;  %v7929_v0 = vmul.f32 -1.442695, %v6412_v11  ;;  %v6414_v15 = vadd.f32 %v6413_v55, %v6131_v1  ;;  %v6371_v28 = vadd.f32 %v6370_v52, %v6123_v38 }
 0x8e3   : > { %9361 = vpow2.f32 %v7929_v0  ;;  %v7930_v56 = vmul.f32 -1.442695, %v6414_v15  ;;  %v9253_v15 = vld [vmem:[%s11232_s21 + $0x38] sm:$0xff]  }
 0x8e5   : > { %9363 = vpow2.f32 %v7930_v56  ;;  %v9254_v56 = vld [vmem:[%s11232_s21 + $0x30] sm:$0xff]  }
 0x8ec   : > { %v9358_v8 = vpop.eup %9357 }
 0x8ed   : > { %v6471_v60 = vadd.f32 1.0, %v9358_v8  ;;  %v9257_v8 = vld [vmem:[%s11232_s21 + $0x18] sm:$0xff]  }
 0x8ee   : > { %v9360_v44 = vpop.eup %9359 }
 0x8ef   : > { %9365 = vrcp.f32 %v6471_v60  ;;  %v6472_v20 = vadd.f32 1.0, %v9360_v44  ;;  %v9258_v60 = vld [vmem:[%s11232_s21 + $0x10] sm:$0xff]   ;;  %v9259_v44 = vld [vmem:[%s11232_s21 + $0x8] sm:$0xff]  }
 0x8f0   : > { %v9362_v14 = vpop.eup %9361 }
 0x8f1   : > { %9367 = vrcp.f32 %v6472_v20  ;;  %v6473_v53 = vadd.f32 1.0, %v9362_v14  ;;  %v6593_v20 = vld [vmem:[#allocation18] sm:$0x7] }
 0x8f2   : > { %v9364_v7 = vpop.eup %9363  ;;  %v6450_v9 = vpop.f32.mrf.mxu1  ;;  %v6602_v14 = vrot.slane %v6593_v20, %v10350_v59  ;;  %v6598_v59 = vrot.slane %v6593_v20, %v10346_v57 }
 0x8f3   : > { %9369 = vrcp.f32 %v6473_v53  ;;  %v6474_v17 = vadd.f32 1.0, %v9364_v7  ;;  %v6451_v24 = vadd.f32 %v6450_v9, %v6135_v25 }
 0x8f4   : > { %v6452_v26 = vpop.f32.mrf.mxu1 }
 0x8f5   : > { %9371 = vrcp.f32 %v6474_v17  ;;  %v6453_v40 = vadd.f32 %v6452_v26, %v6139_v3 }
 0x8f6   : > { %v6454_v19 = vpop.f32.mrf.mxu1 }
 0x8f7   : > { %v6455_v4 = vadd.f32 %v6454_v19, %v6135_v25 }
 0x8f8   : > { %v6456_v27 = vpop.f32.mrf.mxu1 }
 0x8f9   : > { %v6457_v32 = vadd.f32 %v6456_v27, %v6139_v3 }
 0x8fc   : > { %v9366_v42 = vpop.eup %9365 }
 0x8fd   : > { %v6483_v16 = vadd.f32 %v9366_v42, %v6365_v50 }
 0x8fe   : > { %v9368_v5 = vpop.eup %9367 }
 0x8ff   : > { %v6484_v2 = vadd.f32 %v9368_v5, %v6367_v21  ;;  %v6487_v51 = vadd.f32 %v6483_v16, %v6451_v24  ;;  %v6606_v24 = vrot.slane %v6593_v20, %v10348_v58  ;;  %v7981_v58 = vld [vmem:[#allocation19] ss:$0 sm:$0xff] }
 0x900   : > { %v9370_v41 = vpop.eup %9369 }
 0x901   : > { %v6488_v29 = vadd.f32 %v6484_v2, %v6453_v40  ;;  %v6485_v30 = vadd.f32 %v9370_v41, %v6369_v22  ;;  %v6491_v35 = vmax.f32 %v6487_v51, 0.0 }
 0x902   : > { %v9372_v61 = vpop.eup %9371 }
 0x903   : > { %v6492_v31 = vmax.f32 %v6488_v29, 0.0  ;;  %v6489_v63 = vadd.f32 %v6485_v30, %v6455_v4  ;;  %v6486_v33 = vadd.f32 %v9372_v61, %v6371_v28  ;;  %v6507_v10 = vmul.f32 %v6500_v34, %v6491_v35 }
 0x905   : > { %v6493_v36 = vmax.f32 %v6489_v63, 0.0  ;;  %v6490_v62 = vadd.f32 %v6486_v33, %v6457_v32  ;;  %v6508_v47 = vmul.f32 %v6500_v34, %v6492_v31  ;;  %v6523_v11 = vadd.f32 %v6516_v13, %v6507_v10 }
 0x907   : > { %v6509_v45 = vmul.f32 %v6505_v54, %v6493_v36  ;;  %v6494_v1 = vmax.f32 %v6490_v62, 0.0  ;;  %v6524_v49 = vadd.f32 %v6516_v13, %v6508_v47 }
 0x909   : > { %v6510_v46 = vmul.f32 %v6505_v54, %v6494_v1  ;;  %v6525_v48 = vadd.f32 %v6521_v6, %v6509_v45 }
 0x90b   : > { %v6526_v39 = vadd.f32 %v6521_v6, %v6510_v46  ;;  %v6527_v0 = vpack.c.bf16 %v6525_v48, %v6523_v11 }
 0x90d   : > { %v6528_v55 = vpack.c.bf16 %v6526_v39, %v6524_v49 }
 0x90f   : > { %6898 = vmatprep.mubr.bf16.mxu0 %v6528_v55  ;;  %6941 = vmatprep.mubr.bf16.mxu1 %v6528_v55 }
 0x910   : > { %6899 = vmatmul.mubr.bf16.vlgmr.msra.gmra.mxu0 %v6527_v0  ;;  %6942 = vmatmul.mubr.bf16.vlgmr.msra.gmra.mxu1 %v6527_v0 }
 0x911   : > { %8158 = vmatprep.mubr.msk.bf16.mxu1 %vm9780_vm1, %v9779_v43  ;;  %8143 = vmatpush3.bf16.msra.mxu1 %v9253_v15 }
 0x912   : > { %8144 = vmatprep.subr.bf16.mxu1 %v9779_v43 }
 0x915   : > { %8145 = vmatpush3.bf16.msra.mxu1 %v9254_v56 }
 0x916   : > { %8146 = vmatprep.subr.bf16.mxu1 %v9779_v43 }
 0x919   : > { %8147 = vmatpush3.bf16.msra.mxu1 %v9255_v18 }
 0x91a   : > { %8148 = vmatprep.subr.bf16.mxu1 %v9779_v43 }
 0x91d   : > { %8149 = vmatpush3.bf16.msra.mxu1 %v9256_v23 }
 0x91e   : > { %8150 = vmatprep.subr.bf16.mxu1 %v9779_v43 }
 0x921   : > { %8151 = vmatpush3.bf16.msra.mxu1 %v9257_v8 }
 0x922   : > { %8152 = vmatprep.subr.bf16.mxu1 %v9779_v43 }
 0x925   : > { %8153 = vmatpush3.bf16.msra.mxu1 %v9258_v60 }
 0x926   : > { %8154 = vmatprep.subr.bf16.mxu1 %v9779_v43 }
 0x929   : > { %8155 = vmatpush3.bf16.msra.mxu1 %v9259_v44 }
 0x92a   : > { %8156 = vmatprep.subr.bf16.mxu1 %v9779_v43 }
 0x92d   : > { %8157 = vmatpush3.bf16.msra.mxu1 %v9260_v12 }
 0x9d0   : > { %v6900_v53 = vpop.f32.mrf.mxu0  ;;  %v8091_v50 = vpop.f32.mrf.mxu1 }
 0x9d1   : > { %v6901_v5 = vadd.f32 %v6900_v53, %v6598_v59 }
 0x9d2   : > { %v6902_v7 = vpop.f32.mrf.mxu0  ;;  %v8092_v19 = vpop.f32.mrf.mxu1 }
 0x9d3   : > { %v6903_v52 = vadd.f32 %v6902_v7, %v6602_v14  ;;  %v8093_v22 = vadd.f32 %v8092_v19, %v8091_v50 }
 0x9d4   : > { %v6904_v17 = vpop.f32.mrf.mxu0  ;;  %v8094_v21 = vpop.f32.mrf.mxu1 }
 0x9d5   : > { %v7979_v9 = vmul.f32 -1.442695, %v6903_v52  ;;  %v6944_v51 = vadd.f32 %v8093_v22, %v6606_v24  ;;  %v6905_v27 = vadd.f32 %v6904_v17, %v6598_v59 }
 0x9d6   : > { %v6906_v37 = vpop.f32.mrf.mxu0  ;;  %v8095_v16 = vpop.f32.mrf.mxu1 }
 0x9d7   : > { %9373 = vpow2.f32 %v7979_v9  ;;  %v6907_v26 = vadd.f32 %v6906_v37, %v6602_v14  ;;  %v8096_v41 = vadd.f32 %v8095_v16, %v8094_v21 }
 0x9d9   : > { %v7980_v38 = vmul.f32 -1.442695, %v6907_v26  ;;  %v6947_v4 = vadd.f32 %v8096_v41, %v6606_v24 }
 0x9db   : > { %9375 = vpow2.f32 %v7980_v38 }
 0x9e4   : > { %v9374_v25 = vpop.eup %9373 }
 0x9e5   : > { %v6956_v43 = vadd.f32 1.0, %v9374_v25 }
 0x9e7   : > { %9377 = vrcp.f32 %v6956_v43 }
 0x9e8   : > { %v9376_v3 = vpop.eup %9375 }
 0x9e9   : > { %v6957_v42 = vadd.f32 1.0, %v9376_v3 }
 0x9eb   : > { %9379 = vrcp.f32 %v6957_v42 }
 0x9f4   : > { %v9378_v40 = vpop.eup %9377 }
 0x9f5   : > { %v6962_v2 = vadd.f32 %v9378_v40, %v6901_v5 }
 0x9f7   : > { %v6964_v29 = vadd.f32 %v6962_v2, %v6944_v51 }
 0x9f8   : > { %v9380_v28 = vpop.eup %9379 }
 0x9f9   : > { %v6963_v30 = vadd.f32 %v9380_v28, %v6905_v27  ;;  %v6966_v54 = vmax.f32 %v6964_v29, 0.0 }
 0x9fb   : > { %v6965_v61 = vadd.f32 %v6963_v30, %v6947_v4 }
 0x9fd   : > { %v6967_v31 = vmax.f32 %v6965_v61, 0.0 }
 0x9ff   : > { %v6968_v57 = vpack.c.bf16 %v6967_v31, %v6966_v54 }
 0xa01   : > { %8159 = vmatmul.mubr.bf16.vlgmr.msra.gmra.mxu1 %v6968_v57 }
 0xac1   : > { %v7074_v63 = vpop.f32.mrf.mxu1 }
 0xac2   : > { %v7075_v32 = vadd.f32 %v7981_v58, %v7074_v63 }
 0xac3   : > { %v8160_v33 = vpop.f32.mrf.mxu1 }
 0xac4   : > { %7082 = vst.msk [vmem:[%s797_s25] sm:$0xff] %vm7081_vm5, %v7075_v32 }
 0xac5   : > { %v7077_v34 = vpop.f32.mrf.mxu1 }
 0xac6   : > { %v7078_v35 = vadd.f32 %v7981_v58, %v7077_v34 }
 0xac7   : > { %v8161_v36 = vpop.f32.mrf.mxu1 }
 0xac8   : > { %7083 = vst.msk [vmem:[%s797_s25 + $0x8] sm:$0xff] %vm7081_vm5, %v7078_v35 }
 0xac9 PF: > { %p36_p13 = scmp.ge.s32.totalorder %s10018_s0, 4   ;;  %s11234_s1 = smov %s9746_s22 }
 0xaca   : > { %s11235_s22 = smov %s9750_s23  ;;  %s11236_s23 = smov %s10029_s29 }
 0xacb   : > { %s11237_s24 = smov %s10018_s0  ;;  %38 = sbr.rel (!%p36_p13) target bundleno = 21 (0x15), region = 184 }
 0xad0   :  { %7105 = vsyncpa [#allocation3], 1 }
 0xad1   :  { %7107 = vsyncpa [#allocation3 + $0x1], 1 }
 0xad2   :  { %7108 = vsyncpa [#allocation5], 1 }
 0xad3   :  { %7109 = vsyncpa [#allocation8], 1 }
 0xad4   :  { %7110 = vsyncpa [#allocation11], 1 }
 0xad5   :  { %7111 = vsyncpa [#allocation14], 1 }
 0xad6   :  { %7112 = vsyncpa [#allocation17], 1 }
 0xad7   :  { %7113 = vsyncpa [#allocation20], 1 }

</bundles_post_ra>
